<compile_context>
chip_gen: v5e
topology: v5e:2x2
jax: 0.10.0
libtpu: 0.0.40
codegen_flags: <defaults>
</compile_context>

<pallas_src>
import functools

import jax
import jax.numpy as jnp
from jax.experimental import pallas as pl
from jax.experimental.pallas import tpu as pltpu


def _round_up(x, m):
    return (x + m - 1) // m * m


def _vmem_cap_bytes():
    try:
        return int(pltpu.get_tpu_info().vmem_capacity_bytes)
    except Exception:
        return 64 * 1024 * 1024


def _vmem_limit(block_bytes):
    cap = _vmem_cap_bytes()
    limit = int(block_bytes * 1.3) + (2 << 20)   # blocks + headroom
    limit = max(limit, 8 << 20)
    return min(limit, (cap * 3) // 4)


def _single_buffered(shape, index_map):
    """BlockSpec for a grid-invariant operand (weights): one VMEM copy."""
    try:
        return pl.BlockSpec(shape, index_map, pipeline_mode=pl.Buffered(1))
    except Exception:  # pipeline_mode unavailable -> fall back to default
        return pl.BlockSpec(shape, index_map)


# ---------------------------------------------------------------------------
# Kernel 1 (two-pass path): pre-gates, parallel over time blocks.
#   pre_gates = x @ W_ih^T + (b_ih + b_hh)
# ---------------------------------------------------------------------------
def _pregates_kernel(x_ref, w_ih_ref, b_ref, g_ref, *, compute_dtype):
    t_blk, b, d = x_ref.shape
    x2 = x_ref[...].reshape(t_blk * b, d).astype(compute_dtype)
    g = jnp.dot(x2, w_ih_ref[...], preferred_element_type=jnp.float32)
    g = g + b_ref[...]
    g_ref[...] = g.reshape(t_blk, b, g_ref.shape[-1]).astype(g_ref.dtype)


# ---------------------------------------------------------------------------
# Shared serial recurrence over one time block.
# ---------------------------------------------------------------------------
def _recurrence_block(g_ref, w_hh_ref, out_ref, h_scr, c_scr, *,
                      t_blk, hidden_pad, compute_dtype, unroll,
                      seq_len, block_start, apply_mask):
    H = hidden_pad

    def step(i, carry):
        h, c = carry
        # Only the recurrent matmul stays on the serial critical path.
        gates = g_ref[i].astype(jnp.float32) + jnp.dot(
            h.astype(compute_dtype), w_hh_ref[...],
            preferred_element_type=jnp.float32)
        # PyTorch gate order [i, f, g, o]; H_pad multiple of 128 -> lane-aligned
        # views.  Gate math stays in f32 (v5e-safe; bf16 gate math is a
        # v6e/v7x-only micro-opt we intentionally skip for accuracy).
        i_g = jax.nn.sigmoid(gates[:, 0 * H:1 * H])
        f_g = jax.nn.sigmoid(gates[:, 1 * H:2 * H])
        g_g = jnp.tanh(gates[:, 2 * H:3 * H])
        o_g = jax.nn.sigmoid(gates[:, 3 * H:4 * H])
        c_new = f_g * c + i_g * g_g
        h_new = o_g * jnp.tanh(c_new)
        if apply_mask:          # only instantiated for the last time block
            valid = (block_start + i) < seq_len
            h_new = jnp.where(valid, h_new, h)
            c_new = jnp.where(valid, c_new, c)
        out_ref[i] = h_new.astype(out_ref.dtype)     # lane-dense VMEM store
        return h_new, c_new

    h_f, c_f = jax.lax.fori_loop(0, t_blk, step, (h_scr[...], c_scr[...]),
                                 unroll=unroll)
    h_scr[...] = h_f
    c_scr[...] = c_f


def _maybe_masked_recurrence(g_ref, w_hh_ref, out_ref, cn_ref, h_scr, c_scr, *,
                             t_blk, seq_len, hidden_pad, compute_dtype, unroll):
    t_idx = pl.program_id(1)          # grid = (batch_blocks, time_blocks)
    n_t = pl.num_programs(1)

    @pl.when(t_idx == 0)
    def _():
        # PyTorch default: zero initial hidden/cell state (per batch block,
        # since the time axis is the innermost grid axis).
        h_scr[...] = jnp.zeros_like(h_scr)
        c_scr[...] = jnp.zeros_like(c_scr)

    run = functools.partial(
        _recurrence_block, g_ref, w_hh_ref, out_ref, h_scr, c_scr,
        t_blk=t_blk, hidden_pad=hidden_pad, compute_dtype=compute_dtype,
        unroll=unroll, seq_len=seq_len, block_start=t_idx * t_blk)

    if seq_len % t_blk == 0:
        run(apply_mask=False)          # no padded steps anywhere
    else:
        @pl.when(t_idx != n_t - 1)
        def _():
            run(apply_mask=False)      # full blocks: no per-step selects

        @pl.when(t_idx == n_t - 1)
        def _():
            run(apply_mask=True)       # only the last block carries the mask

    @pl.when(t_idx == n_t - 1)
    def _():
        cn_ref[...] = c_scr[...].astype(cn_ref.dtype)


# ---------------------------------------------------------------------------
# Kernel 2 (two-pass path): sequential recurrence over pre-gates blocks.
# ---------------------------------------------------------------------------
def _lstm_recurrence_kernel(g_ref, w_hh_ref, out_ref, cn_ref, h_scr, c_scr, *,
                            t_blk, seq_len, hidden_pad, compute_dtype, unroll):
    _maybe_masked_recurrence(g_ref, w_hh_ref, out_ref, cn_ref, h_scr, c_scr,
                             t_blk=t_blk, seq_len=seq_len,
                             hidden_pad=hidden_pad,
                             compute_dtype=compute_dtype, unroll=unroll)


# ---------------------------------------------------------------------------
# Fused single-pass kernel: pre-gate matmul + recurrence per time block.
# (Used when there is only one batch block -> no pre_gates HBM round trip.)
# ---------------------------------------------------------------------------
def _lstm_fused_kernel(x_ref, w_ih_ref, b_ref, w_hh_ref, out_ref, cn_ref,
                       g_scr, h_scr, c_scr, *,
                       t_blk, seq_len, hidden_pad, compute_dtype, unroll):
    t, b, d = x_ref.shape
    x2 = x_ref[...].reshape(t * b, d).astype(compute_dtype)
    g = jnp.dot(x2, w_ih_ref[...], preferred_element_type=jnp.float32)
    g = g + b_ref[...]
    g_scr[...] = g.reshape(t, b, 4 * hidden_pad).astype(g_scr.dtype)

    _maybe_masked_recurrence(g_scr, w_hh_ref, out_ref, cn_ref, h_scr, c_scr,
                             t_blk=t_blk, seq_len=seq_len,
                             hidden_pad=hidden_pad,
                             compute_dtype=compute_dtype, unroll=unroll)


# ---------------------------------------------------------------------------
# Wrapper
# ---------------------------------------------------------------------------
def lstm_encoder_forward(x, w_ih, w_hh, b_ih, b_hh, *,
                         t_block=32, batch_block=None,
                         compute_dtype=jnp.bfloat16,
                         fuse_pregates=None):
    """Pallas forward of lstm_encoder (single-layer nn.LSTM, time-major).

    x    : (S, B, D) float32
    w_ih : (4H, D), w_hh : (4H, H), b_ih/b_hh : (4H,)  -- PyTorch nn.LSTM layout.
    Returns (lstm_out, (h_n, c_n)).
    """
    S, B, D = x.shape
    H = w_hh.shape[1]
    f32 = jnp.float32
    compute_dtype = jnp.dtype(compute_dtype)
    is_f32 = compute_dtype == jnp.dtype(jnp.float32)
    x_dtype = f32 if is_f32 else jnp.bfloat16     # HBM dtype of x
    g_dtype = f32 if is_f32 else jnp.bfloat16     # dtype of stored pre-gates

    # TPU-friendly geometry: lanes (last dim) multiple of 128; batch padded to
    # the sublane packing (8 for f32, 16 for bf16 so reshapes are layout-free
    # and a v7x megacore split batch_block = B_pad // 2 stays a multiple of 8).
    H_pad = _round_up(H, 128)
    D_pad = _round_up(D, 128)
    b_mult = 8 if is_f32 else 16
    B_pad = _round_up(B, b_mult)
    # Large time block fills the MXU M dim (t_blk*B) and amortizes per-grid-step
    # overhead; clamp for short sequences so we don't over-pad time.
    t_blk = max(1, min(int(t_block), _round_up(S, 8)))
    S_pad = _round_up(S, t_blk)
    unroll = min(t_blk, 8)            # bounded unroll of the serial loop

    B_blk = B_pad if batch_block is None else int(batch_block)
    assert B_blk % 8 == 0 and B_pad % B_blk == 0, (
        f"batch_block must be a multiple of 8 dividing padded batch {B_pad}, "
        f"got {B_blk}")

    n_tb = S_pad // t_blk
    n_bb = B_pad // B_blk
    if fuse_pregates is None:
        # With a single batch block there is no cross-TC recurrence parallelism
        # to preserve -> fuse and skip the pre_gates HBM round trip.  With >=2
        # batch blocks keep two passes (pass 1 shards over time blocks).
        fuse_pregates = (n_bb == 1)

    # Zero-pad the input, cast to the compute dtype in the wrapper (halves the
    # pass-1 DMA for bf16).  Padded rows/cols/steps are inert (see masking).
    x_p = jnp.zeros((S_pad, B_pad, D_pad), x_dtype)
    x_p = x_p.at[:S, :B, :D].set(jnp.asarray(x, x_dtype))

    # Per-gate padded + transposed weights so the kernels do plain x @ W.
    def pack(w, in_dim, in_pad):
        w4 = jnp.asarray(w, f32).reshape(4, H, in_dim)
        w4 = jnp.pad(w4, ((0, 0), (0, H_pad - H), (0, in_pad - in_dim)))
        return jnp.transpose(w4, (2, 0, 1)).reshape(in_pad, 4 * H_pad)

    w_ih_t = pack(w_ih, D, D_pad).astype(compute_dtype)   # (D_pad, 4*H_pad)
    w_hh_t = pack(w_hh, H, H_pad).astype(compute_dtype)   # (H_pad, 4*H_pad)

    bias = (jnp.asarray(b_ih, f32) + jnp.asarray(b_hh, f32)).reshape(4, H)
    bias = jnp.pad(bias, ((0, 0), (0, H_pad - H))).reshape(1, 4 * H_pad)

    xb = jnp.dtype(x_dtype).itemsize
    wb = jnp.dtype(compute_dtype).itemsize
    gb = jnp.dtype(g_dtype).itemsize
    ob = 4  # f32 outputs / state scratch

    rec_kwargs = dict(t_blk=t_blk, seq_len=S, hidden_pad=H_pad,
                      compute_dtype=compute_dtype, unroll=unroll)
    out_shapes = (jax.ShapeDtypeStruct((S_pad, B_pad, H_pad), f32),
                  jax.ShapeDtypeStruct((B_pad, H_pad), f32))
    out_specs = [pl.BlockSpec((t_blk, B_blk, H_pad), lambda b, t: (t, b, 0)),
                 pl.BlockSpec((B_blk, H_pad), lambda b, t: (b, 0))]
    state_scratch = [pltpu.VMEM((B_blk, H_pad), f32),    # h state
                     pltpu.VMEM((B_blk, H_pad), f32)]    # c state

    if fuse_pregates:
        vmem_need = (2 * t_blk * B_blk * D_pad * xb          # x block (x2 buf)
                     + D_pad * 4 * H_pad * wb                # W_ih^T (x1)
                     + H_pad * 4 * H_pad * wb                # W_hh^T (x1)
                     + 2 * 4 * H_pad * 4                     # bias
                     + 2 * t_blk * B_blk * H_pad * ob        # out block
                     + 2 * B_blk * H_pad * ob                # c_n block
                     + t_blk * B_blk * 4 * H_pad * gb        # gates scratch
                     + 2 * B_blk * H_pad * 4)                # h/c scratch
        out_p, cn_p = pl.pallas_call(
            functools.partial(_lstm_fused_kernel, **rec_kwargs),
            out_shape=out_shapes,
            grid_spec=pltpu.PrefetchScalarGridSpec(
                num_scalar_prefetch=0,
                grid=(n_bb, n_tb),
                in_specs=[
                    pl.BlockSpec((t_blk, B_blk, D_pad), lambda b, t: (t, b, 0)),
                    _single_buffered((D_pad, 4 * H_pad), lambda b, t: (0, 0)),
                    pl.BlockSpec((1, 4 * H_pad), lambda b, t: (0, 0)),
                    _single_buffered((H_pad, 4 * H_pad), lambda b, t: (0, 0)),
                ],
                out_specs=out_specs,
                scratch_shapes=[pltpu.VMEM((t_blk, B_blk, 4 * H_pad), g_dtype)]
                + state_scratch,
            ),
            compiler_params=pltpu.CompilerParams(
                dimension_semantics=("parallel", "arbitrary"),
                vmem_limit_bytes=_vmem_limit(vmem_need)),
        )(x_p, w_ih_t, bias, w_hh_t)
    else:
        # ---- Pass 1: pre-gates (parallel over time blocks). ----
        p1_need = (2 * t_blk * B_pad * D_pad * xb
                   + D_pad * 4 * H_pad * wb
                   + 2 * 4 * H_pad * 4
                   + 2 * t_blk * B_pad * 4 * H_pad * gb)
        pre_gates = pl.pallas_call(
            functools.partial(_pregates_kernel, compute_dtype=compute_dtype),
            out_shape=jax.ShapeDtypeStruct((S_pad, B_pad, 4 * H_pad), g_dtype),
            grid_spec=pltpu.PrefetchScalarGridSpec(
                num_scalar_prefetch=0,
                grid=(n_tb,),
                in_specs=[
                    pl.BlockSpec((t_blk, B_pad, D_pad), lambda t: (t, 0, 0)),
                    _single_buffered((D_pad, 4 * H_pad), lambda t: (0, 0)),
                    pl.BlockSpec((1, 4 * H_pad), lambda t: (0, 0)),
                ],
                out_specs=pl.BlockSpec((t_blk, B_pad, 4 * H_pad),
                                       lambda t: (t, 0, 0)),
            ),
            compiler_params=pltpu.CompilerParams(
                dimension_semantics=("parallel",),
                vmem_limit_bytes=_vmem_limit(p1_need)),
        )(x_p, w_ih_t, bias)

        # ---- Pass 2: sequential recurrence over time blocks. ----
        p2_need = (2 * t_blk * B_blk * 4 * H_pad * gb
                   + H_pad * 4 * H_pad * wb
                   + 2 * t_blk * B_blk * H_pad * ob
                   + 2 * B_blk * H_pad * ob
                   + 2 * B_blk * H_pad * 4)
        out_p, cn_p = pl.pallas_call(
            functools.partial(_lstm_recurrence_kernel, **rec_kwargs),
            out_shape=out_shapes,
            grid_spec=pltpu.PrefetchScalarGridSpec(
                num_scalar_prefetch=0,
                grid=(n_bb, n_tb),
                in_specs=[
                    pl.BlockSpec((t_blk, B_blk, 4 * H_pad),
                                 lambda b, t: (t, b, 0)),
                    _single_buffered((H_pad, 4 * H_pad), lambda b, t: (0, 0)),
                ],
                out_specs=out_specs,
                scratch_shapes=state_scratch,
            ),
            compiler_params=pltpu.CompilerParams(
                dimension_semantics=("parallel", "arbitrary"),
                vmem_limit_bytes=_vmem_limit(p2_need)),
        )(pre_gates, w_hh_t)

    lstm_out = out_p[:S, :B, :H]
    h_n = lstm_out[S - 1:S]            # (1, B, H): last hidden state
    c_n = cn_p[:B, :H][None]           # (1, B, H)
    return lstm_out, (h_n, c_n)


def lstm_encoder_reference(x, w_ih, w_hh, b_ih, b_hh):
    """Pure-JAX reference matching torch.nn.LSTM semantics (num_layers=1)."""
    S, B, D = x.shape
    H = w_hh.shape[1]

    def step(carry, x_t):
        h, c = carry
        gates = x_t @ w_ih.T + b_ih + h @ w_hh.T + b_hh
        i, f, g, o = jnp.split(gates, 4, axis=-1)
        i = jax.nn.sigmoid(i)
        f = jax.nn.sigmoid(f)
        g = jnp.tanh(g)
        o = jax.nn.sigmoid(o)
        c = f * c + i * g
        h = o * jnp.tanh(c)
        return (h, c), h

    init = (jnp.zeros((B, H), jnp.float32), jnp.zeros((B, H), jnp.float32))
    (h, c), out = jax.lax.scan(step, init, x)
    return out, (h[None], c[None])


if __name__ == "__main__":
    # Small shapes consistent with forward(x_input: (seq_len, batch, input_dim)).
    seq_len, batch, input_dim, hidden_size = 8, 2, 16, 32

    key = jax.random.PRNGKey(0)
    kx, k1, k2, k3, k4, kx2, kx3 = jax.random.split(key, 7)

    # Deterministic parameter init mirroring PyTorch's U(-1/sqrt(H), 1/sqrt(H)).
    k = 1.0 / jnp.sqrt(jnp.float32(hidden_size))
    w_ih = jax.random.uniform(k1, (4 * hidden_size, input_dim), jnp.float32, -k, k)
    w_hh = jax.random.uniform(k2, (4 * hidden_size, hidden_size), jnp.float32, -k, k)
    b_ih = jax.random.uniform(k3, (4 * hidden_size,), jnp.float32, -k, k)
    b_hh = jax.random.uniform(k4, (4 * hidden_size,), jnp.float32, -k, k)

    x = jax.random.normal(kx, (seq_len, batch, input_dim), jnp.float32)
    ref_out, (ref_h, ref_c) = lstm_encoder_reference(x, w_ih, w_hh, b_ih, b_hh)

    # --- f32, fused single-pass path (default for one batch block). ---
    out32, (h32, c32) = jax.block_until_ready(
        lstm_encoder_forward(x, w_ih, w_hh, b_ih, b_hh,
                             compute_dtype=jnp.float32))
    assert out32.shape == (seq_len, batch, hidden_size)
    assert h32.shape == (1, batch, hidden_size)
    assert c32.shape == (1, batch, hidden_size)
    assert jnp.allclose(out32, ref_out, atol=1e-4, rtol=1e-4)
    assert jnp.allclose(h32, ref_h, atol=1e-4, rtol=1e-4)
    assert jnp.allclose(c32, ref_c, atol=1e-4, rtol=1e-4)

    # --- f32, explicit two-pass path (pre-gates kernel + recurrence kernel). ---
    out2p, (h2p, c2p) = jax.block_until_ready(
        lstm_encoder_forward(x, w_ih, w_hh, b_ih, b_hh,
                             compute_dtype=jnp.float32, fuse_pregates=False))
    assert jnp.allclose(out2p, ref_out, atol=1e-4, rtol=1e-4)
    assert jnp.allclose(h2p, ref_h, atol=1e-4, rtol=1e-4)
    assert jnp.allclose(c2p, ref_c, atol=1e-4, rtol=1e-4)

    # --- bf16 default (fast path): bf16 x / weights / stored pre-gates. ---
    out16, (h16, c16) = jax.block_until_ready(
        lstm_encoder_forward(x, w_ih, w_hh, b_ih, b_hh))
    assert jnp.allclose(out16, ref_out, atol=6e-2, rtol=6e-2)
    assert jnp.allclose(h16, ref_h, atol=6e-2, rtol=6e-2)
    assert jnp.allclose(c16, ref_c, atol=6e-2, rtol=6e-2)

    # --- ragged seq_len: exercises the masked last-block branch. ---
    x2 = jax.random.normal(kx2, (13, batch, input_dim), jnp.float32)
    ref2_out, (ref2_h, ref2_c) = lstm_encoder_reference(x2, w_ih, w_hh, b_ih, b_hh)
    out2, (h2, c2) = jax.block_until_ready(
        lstm_encoder_forward(x2, w_ih, w_hh, b_ih, b_hh,
                             compute_dtype=jnp.float32))
    assert out2.shape == (13, batch, hidden_size)
    assert jnp.allclose(out2, ref2_out, atol=1e-4, rtol=1e-4)
    assert jnp.allclose(h2, ref2_h, atol=1e-4, rtol=1e-4)
    assert jnp.allclose(c2, ref2_c, atol=1e-4, rtol=1e-4)

    # --- multi-batch-block split (megacore-style), two-pass path auto. ---
    x3 = jax.random.normal(kx3, (seq_len, 10, input_dim), jnp.float32)
    ref3_out, (ref3_h, ref3_c) = lstm_encoder_reference(x3, w_ih, w_hh, b_ih, b_hh)
    out3, (h3, c3) = jax.block_until_ready(
        lstm_encoder_forward(x3, w_ih, w_hh, b_ih, b_hh,
                             compute_dtype=jnp.float32, batch_block=8))
    assert out3.shape == (seq_len, 10, hidden_size)
    assert jnp.allclose(out3, ref3_out, atol=1e-4, rtol=1e-4)
    assert jnp.allclose(h3, ref3_h, atol=1e-4, rtol=1e-4)
    assert jnp.allclose(c3, ref3_c, atol=1e-4, rtol=1e-4)

    print("KERNEL_OK")
</pallas_src>

<mosaic_0001>
module attributes {stable_mosaic.version = 11 : i64} {
  func.func @_lstm_fused_kernel(%arg0: i32, %arg1: i32, %arg2: memref<8x8x128xf32, #tpu.memory_space<vmem>>, %arg3: memref<128x512xf32, #tpu.memory_space<vmem>>, %arg4: memref<1x512xf32, #tpu.memory_space<vmem>>, %arg5: memref<128x512xf32, #tpu.memory_space<vmem>>, %arg6: memref<8x8x128xf32, #tpu.memory_space<vmem>>, %arg7: memref<8x128xf32, #tpu.memory_space<vmem>>, %arg8: memref<8x8x512xf32, #tpu.memory_space<vmem>>, %arg9: memref<8x128xf32, #tpu.memory_space<vmem>>, %arg10: memref<8x128xf32, #tpu.memory_space<vmem>>) attributes {dimension_semantics = [#tpu.dimension_semantics<parallel>, #tpu.dimension_semantics<arbitrary>], iteration_bounds = array<i64: 1, 1>, scalar_prefetch = 0 : i64, scratch_operands = 3 : i64, tpu.core_type = #tpu.core_type<tc>, window_params = [{transform_indices = @transform_0, window_bounds = array<i64: 8, 8, 128>}, {pipeline_mode = #tpu.pipeline_mode<synchronous>, transform_indices = @transform_1, window_bounds = array<i64: 128, 512>}, {pipeline_mode = #tpu.pipeline_mode<synchronous>, transform_indices = @transform_2, window_bounds = array<i64: 1, 512>}, {pipeline_mode = #tpu.pipeline_mode<synchronous>, transform_indices = @transform_3, window_bounds = array<i64: 128, 512>}, {transform_indices = @transform_4, window_bounds = array<i64: 8, 8, 128>}, {transform_indices = @transform_5, window_bounds = array<i64: 8, 128>}]} {
    %c0 = arith.constant 0 : index
    %c0_0 = arith.constant 0 : index
    %c0_1 = arith.constant 0 : index
    %0 = vector.load %arg2[%c0, %c0_0, %c0_1] : memref<8x8x128xf32, #tpu.memory_space<vmem>>, vector<8x8x128xf32>
    %1 = vector.shape_cast %0 : vector<8x8x128xf32> to vector<64x128xf32>
    %c0_2 = arith.constant 0 : index
    %c0_3 = arith.constant 0 : index
    %2 = vector.load %arg3[%c0_2, %c0_3] : memref<128x512xf32, #tpu.memory_space<vmem>>, vector<128x512xf32>
    %cst = arith.constant dense<0.000000e+00> : vector<64x512xf32>
    %3 = tpu.matmul %1, %2, %cst {dimension_numbers = #tpu.dot_dimension_numbers<[1], [0], [0], [1], [0, 0, 1, 1], [], []>} : vector<64x128xf32>, vector<128x512xf32>, vector<64x512xf32> -> vector<64x512xf32>
    %c0_4 = arith.constant 0 : index
    %c0_5 = arith.constant 0 : index
    %4 = vector.load %arg4[%c0_4, %c0_5] : memref<1x512xf32, #tpu.memory_space<vmem>>, vector<1x512xf32>
    %5 = vector.broadcast %4 : vector<1x512xf32> to vector<64x512xf32>
    %6 = arith.addf %3, %5 : vector<64x512xf32>
    %7 = vector.shape_cast %6 : vector<64x512xf32> to vector<8x8x512xf32>
    %c0_6 = arith.constant 0 : index
    %c0_7 = arith.constant 0 : index
    %c0_8 = arith.constant 0 : index
    %8 = vector.load %arg8[%c0_6, %c0_7, %c0_8] : memref<8x8x512xf32, #tpu.memory_space<vmem>>, vector<8x8x512xf32>
    tpu.vector_store %arg8[%c0_6, %c0_7, %c0_8], %7 {strides = array<i32>} : memref<8x8x512xf32, #tpu.memory_space<vmem>>, vector<8x8x512xf32>,
    %c0_i32 = arith.constant 0 : i32
    %9 = arith.cmpi eq, %arg1, %c0_i32 : i32
    %10 = arith.extui %9 : i1 to i32
    %c0_i32_9 = arith.constant 0 : i32
    %11 = arith.cmpi ne, %10, %c0_i32_9 : i32
    scf.if %11 {
      %cst_101 = arith.constant 0.000000e+00 : f32
      %299 = vector.broadcast %cst_101 : f32 to vector<8x128xf32>
      %c0_102 = arith.constant 0 : index
      %c0_103 = arith.constant 0 : index
      %300 = vector.load %arg9[%c0_102, %c0_103] : memref<8x128xf32, #tpu.memory_space<vmem>>, vector<8x128xf32>
      tpu.vector_store %arg9[%c0_102, %c0_103], %299 {strides = array<i32>} : memref<8x128xf32, #tpu.memory_space<vmem>>, vector<8x128xf32>,
      %cst_104 = arith.constant 0.000000e+00 : f32
      %301 = vector.broadcast %cst_104 : f32 to vector<8x128xf32>
      %c0_105 = arith.constant 0 : index
      %c0_106 = arith.constant 0 : index
      %302 = vector.load %arg10[%c0_105, %c0_106] : memref<8x128xf32, #tpu.memory_space<vmem>>, vector<8x128xf32>
      tpu.vector_store %arg10[%c0_105, %c0_106], %301 {strides = array<i32>} : memref<8x128xf32, #tpu.memory_space<vmem>>, vector<8x128xf32>,
    } else {
    }
    %c0_10 = arith.constant 0 : index
    %c0_11 = arith.constant 0 : index
    %12 = vector.load %arg9[%c0_10, %c0_11] : memref<8x128xf32, #tpu.memory_space<vmem>>, vector<8x128xf32>
    %c0_12 = arith.constant 0 : index
    %c0_13 = arith.constant 0 : index
    %13 = vector.load %arg10[%c0_12, %c0_13] : memref<8x128xf32, #tpu.memory_space<vmem>>, vector<8x128xf32>
    %c0_i32_14 = arith.constant 0 : i32
    %14 = arith.index_cast %c0_i32_14 : i32 to index
    %c0_15 = arith.constant 0 : index
    %c0_16 = arith.constant 0 : index
    %15 = vector.load %arg8[%14, %c0_15, %c0_16] : memref<8x8x512xf32, #tpu.memory_space<vmem>>, vector<1x8x512xf32>
    %16 = vector.shape_cast %15 : vector<1x8x512xf32> to vector<8x512xf32>
    %c0_17 = arith.constant 0 : index
    %c0_18 = arith.constant 0 : index
    %17 = vector.load %arg5[%c0_17, %c0_18] : memref<128x512xf32, #tpu.memory_space<vmem>>, vector<128x512xf32>
    %cst_19 = arith.constant dense<0.000000e+00> : vector<8x512xf32>
    %18 = tpu.matmul %12, %17, %cst_19 {dimension_numbers = #tpu.dot_dimension_numbers<[1], [0], [0], [1], [0, 0, 1, 1], [], []>} : vector<8x128xf32>, vector<128x512xf32>, vector<8x512xf32> -> vector<8x512xf32>
    %19 = arith.addf %16, %18 : vector<8x512xf32>
    %20 = vector.extract_strided_slice %19 {offsets = [0, 0], sizes = [8, 128], strides = [1, 1]} : vector<8x512xf32> to vector<8x128xf32>
    %21 = arith.negf %20 : vector<8x128xf32>
    %22 = math.exp %21 : vector<8x128xf32>
    %cst_20 = arith.constant 1.000000e+00 : f32
    %23 = vector.broadcast %cst_20 : f32 to vector<8x128xf32>
    %24 = arith.addf %23, %22 : vector<8x128xf32>
    %25 = arith.divf %23, %24 : vector<8x128xf32>
    %26 = vector.extract_strided_slice %19 {offsets = [0, 128], sizes = [8, 128], strides = [1, 1]} : vector<8x512xf32> to vector<8x128xf32>
    %27 = arith.negf %26 : vector<8x128xf32>
    %28 = math.exp %27 : vector<8x128xf32>
    %cst_21 = arith.constant 1.000000e+00 : f32
    %29 = vector.broadcast %cst_21 : f32 to vector<8x128xf32>
    %30 = arith.addf %29, %28 : vector<8x128xf32>
    %31 = arith.divf %29, %30 : vector<8x128xf32>
    %32 = vector.extract_strided_slice %19 {offsets = [0, 256], sizes = [8, 128], strides = [1, 1]} : vector<8x512xf32> to vector<8x128xf32>
    %33 = math.tanh %32 : vector<8x128xf32>
    %34 = vector.extract_strided_slice %19 {offsets = [0, 384], sizes = [8, 128], strides = [1, 1]} : vector<8x512xf32> to vector<8x128xf32>
    %35 = arith.negf %34 : vector<8x128xf32>
    %36 = math.exp %35 : vector<8x128xf32>
    %cst_22 = arith.constant 1.000000e+00 : f32
    %37 = vector.broadcast %cst_22 : f32 to vector<8x128xf32>
    %38 = arith.addf %37, %36 : vector<8x128xf32>
    %39 = arith.divf %37, %38 : vector<8x128xf32>
    %40 = arith.mulf %31, %13 : vector<8x128xf32>
    %41 = arith.mulf %25, %33 : vector<8x128xf32>
    %42 = arith.addf %40, %41 : vector<8x128xf32>
    %43 = math.tanh %42 : vector<8x128xf32>
    %44 = arith.mulf %39, %43 : vector<8x128xf32>
    %45 = arith.index_cast %c0_i32_14 : i32 to index
    %c0_23 = arith.constant 0 : index
    %c0_24 = arith.constant 0 : index
    %46 = vector.load %arg6[%45, %c0_23, %c0_24] : memref<8x8x128xf32, #tpu.memory_space<vmem>>, vector<1x8x128xf32>
    %47 = vector.shape_cast %46 : vector<1x8x128xf32> to vector<8x128xf32>
    %48 = vector.shape_cast %44 : vector<8x128xf32> to vector<1x8x128xf32>
    tpu.vector_store %arg6[%45, %c0_23, %c0_24], %48 {strides = array<i32>} : memref<8x8x128xf32, #tpu.memory_space<vmem>>, vector<1x8x128xf32>,
    %c1_i32 = arith.constant 1 : i32
    %49 = arith.index_cast %c1_i32 : i32 to index
    %c0_25 = arith.constant 0 : index
    %c0_26 = arith.constant 0 : index
    %50 = vector.load %arg8[%49, %c0_25, %c0_26] : memref<8x8x512xf32, #tpu.memory_space<vmem>>, vector<1x8x512xf32>
    %51 = vector.shape_cast %50 : vector<1x8x512xf32> to vector<8x512xf32>
    %c0_27 = arith.constant 0 : index
    %c0_28 = arith.constant 0 : index
    %52 = vector.load %arg5[%c0_27, %c0_28] : memref<128x512xf32, #tpu.memory_space<vmem>>, vector<128x512xf32>
    %cst_29 = arith.constant dense<0.000000e+00> : vector<8x512xf32>
    %53 = tpu.matmul %44, %52, %cst_29 {dimension_numbers = #tpu.dot_dimension_numbers<[1], [0], [0], [1], [0, 0, 1, 1], [], []>} : vector<8x128xf32>, vector<128x512xf32>, vector<8x512xf32> -> vector<8x512xf32>
    %54 = arith.addf %51, %53 : vector<8x512xf32>
    %55 = vector.extract_strided_slice %54 {offsets = [0, 0], sizes = [8, 128], strides = [1, 1]} : vector<8x512xf32> to vector<8x128xf32>
    %56 = arith.negf %55 : vector<8x128xf32>
    %57 = math.exp %56 : vector<8x128xf32>
    %cst_30 = arith.constant 1.000000e+00 : f32
    %58 = vector.broadcast %cst_30 : f32 to vector<8x128xf32>
    %59 = arith.addf %58, %57 : vector<8x128xf32>
    %60 = arith.divf %58, %59 : vector<8x128xf32>
    %61 = vector.extract_strided_slice %54 {offsets = [0, 128], sizes = [8, 128], strides = [1, 1]} : vector<8x512xf32> to vector<8x128xf32>
    %62 = arith.negf %61 : vector<8x128xf32>
    %63 = math.exp %62 : vector<8x128xf32>
    %cst_31 = arith.constant 1.000000e+00 : f32
    %64 = vector.broadcast %cst_31 : f32 to vector<8x128xf32>
    %65 = arith.addf %64, %63 : vector<8x128xf32>
    %66 = arith.divf %64, %65 : vector<8x128xf32>
    %67 = vector.extract_strided_slice %54 {offsets = [0, 256], sizes = [8, 128], strides = [1, 1]} : vector<8x512xf32> to vector<8x128xf32>
    %68 = math.tanh %67 : vector<8x128xf32>
    %69 = vector.extract_strided_slice %54 {offsets = [0, 384], sizes = [8, 128], strides = [1, 1]} : vector<8x512xf32> to vector<8x128xf32>
    %70 = arith.negf %69 : vector<8x128xf32>
    %71 = math.exp %70 : vector<8x128xf32>
    %cst_32 = arith.constant 1.000000e+00 : f32
    %72 = vector.broadcast %cst_32 : f32 to vector<8x128xf32>
    %73 = arith.addf %72, %71 : vector<8x128xf32>
    %74 = arith.divf %72, %73 : vector<8x128xf32>
    %75 = arith.mulf %66, %42 : vector<8x128xf32>
    %76 = arith.mulf %60, %68 : vector<8x128xf32>
    %77 = arith.addf %75, %76 : vector<8x128xf32>
    %78 = math.tanh %77 : vector<8x128xf32>
    %79 = arith.mulf %74, %78 : vector<8x128xf32>
    %80 = arith.index_cast %c1_i32 : i32 to index
    %c0_33 = arith.constant 0 : index
    %c0_34 = arith.constant 0 : index
    %81 = vector.load %arg6[%80, %c0_33, %c0_34] : memref<8x8x128xf32, #tpu.memory_space<vmem>>, vector<1x8x128xf32>
    %82 = vector.shape_cast %81 : vector<1x8x128xf32> to vector<8x128xf32>
    %83 = vector.shape_cast %79 : vector<8x128xf32> to vector<1x8x128xf32>
    tpu.vector_store %arg6[%80, %c0_33, %c0_34], %83 {strides = array<i32>} : memref<8x8x128xf32, #tpu.memory_space<vmem>>, vector<1x8x128xf32>,
    %c2_i32 = arith.constant 2 : i32
    %84 = arith.index_cast %c2_i32 : i32 to index
    %c0_35 = arith.constant 0 : index
    %c0_36 = arith.constant 0 : index
    %85 = vector.load %arg8[%84, %c0_35, %c0_36] : memref<8x8x512xf32, #tpu.memory_space<vmem>>, vector<1x8x512xf32>
    %86 = vector.shape_cast %85 : vector<1x8x512xf32> to vector<8x512xf32>
    %c0_37 = arith.constant 0 : index
    %c0_38 = arith.constant 0 : index
    %87 = vector.load %arg5[%c0_37, %c0_38] : memref<128x512xf32, #tpu.memory_space<vmem>>, vector<128x512xf32>
    %cst_39 = arith.constant dense<0.000000e+00> : vector<8x512xf32>
    %88 = tpu.matmul %79, %87, %cst_39 {dimension_numbers = #tpu.dot_dimension_numbers<[1], [0], [0], [1], [0, 0, 1, 1], [], []>} : vector<8x128xf32>, vector<128x512xf32>, vector<8x512xf32> -> vector<8x512xf32>
    %89 = arith.addf %86, %88 : vector<8x512xf32>
    %90 = vector.extract_strided_slice %89 {offsets = [0, 0], sizes = [8, 128], strides = [1, 1]} : vector<8x512xf32> to vector<8x128xf32>
    %91 = arith.negf %90 : vector<8x128xf32>
    %92 = math.exp %91 : vector<8x128xf32>
    %cst_40 = arith.constant 1.000000e+00 : f32
    %93 = vector.broadcast %cst_40 : f32 to vector<8x128xf32>
    %94 = arith.addf %93, %92 : vector<8x128xf32>
    %95 = arith.divf %93, %94 : vector<8x128xf32>
    %96 = vector.extract_strided_slice %89 {offsets = [0, 128], sizes = [8, 128], strides = [1, 1]} : vector<8x512xf32> to vector<8x128xf32>
    %97 = arith.negf %96 : vector<8x128xf32>
    %98 = math.exp %97 : vector<8x128xf32>
    %cst_41 = arith.constant 1.000000e+00 : f32
    %99 = vector.broadcast %cst_41 : f32 to vector<8x128xf32>
    %100 = arith.addf %99, %98 : vector<8x128xf32>
    %101 = arith.divf %99, %100 : vector<8x128xf32>
    %102 = vector.extract_strided_slice %89 {offsets = [0, 256], sizes = [8, 128], strides = [1, 1]} : vector<8x512xf32> to vector<8x128xf32>
    %103 = math.tanh %102 : vector<8x128xf32>
    %104 = vector.extract_strided_slice %89 {offsets = [0, 384], sizes = [8, 128], strides = [1, 1]} : vector<8x512xf32> to vector<8x128xf32>
    %105 = arith.negf %104 : vector<8x128xf32>
    %106 = math.exp %105 : vector<8x128xf32>
    %cst_42 = arith.constant 1.000000e+00 : f32
    %107 = vector.broadcast %cst_42 : f32 to vector<8x128xf32>
    %108 = arith.addf %107, %106 : vector<8x128xf32>
    %109 = arith.divf %107, %108 : vector<8x128xf32>
    %110 = arith.mulf %101, %77 : vector<8x128xf32>
    %111 = arith.mulf %95, %103 : vector<8x128xf32>
    %112 = arith.addf %110, %111 : vector<8x128xf32>
    %113 = math.tanh %112 : vector<8x128xf32>
    %114 = arith.mulf %109, %113 : vector<8x128xf32>
    %115 = arith.index_cast %c2_i32 : i32 to index
    %c0_43 = arith.constant 0 : index
    %c0_44 = arith.constant 0 : index
    %116 = vector.load %arg6[%115, %c0_43, %c0_44] : memref<8x8x128xf32, #tpu.memory_space<vmem>>, vector<1x8x128xf32>
    %117 = vector.shape_cast %116 : vector<1x8x128xf32> to vector<8x128xf32>
    %118 = vector.shape_cast %114 : vector<8x128xf32> to vector<1x8x128xf32>
    tpu.vector_store %arg6[%115, %c0_43, %c0_44], %118 {strides = array<i32>} : memref<8x8x128xf32, #tpu.memory_space<vmem>>, vector<1x8x128xf32>,
    %c3_i32 = arith.constant 3 : i32
    %119 = arith.index_cast %c3_i32 : i32 to index
    %c0_45 = arith.constant 0 : index
    %c0_46 = arith.constant 0 : index
    %120 = vector.load %arg8[%119, %c0_45, %c0_46] : memref<8x8x512xf32, #tpu.memory_space<vmem>>, vector<1x8x512xf32>
    %121 = vector.shape_cast %120 : vector<1x8x512xf32> to vector<8x512xf32>
    %c0_47 = arith.constant 0 : index
    %c0_48 = arith.constant 0 : index
    %122 = vector.load %arg5[%c0_47, %c0_48] : memref<128x512xf32, #tpu.memory_space<vmem>>, vector<128x512xf32>
    %cst_49 = arith.constant dense<0.000000e+00> : vector<8x512xf32>
    %123 = tpu.matmul %114, %122, %cst_49 {dimension_numbers = #tpu.dot_dimension_numbers<[1], [0], [0], [1], [0, 0, 1, 1], [], []>} : vector<8x128xf32>, vector<128x512xf32>, vector<8x512xf32> -> vector<8x512xf32>
    %124 = arith.addf %121, %123 : vector<8x512xf32>
    %125 = vector.extract_strided_slice %124 {offsets = [0, 0], sizes = [8, 128], strides = [1, 1]} : vector<8x512xf32> to vector<8x128xf32>
    %126 = arith.negf %125 : vector<8x128xf32>
    %127 = math.exp %126 : vector<8x128xf32>
    %cst_50 = arith.constant 1.000000e+00 : f32
    %128 = vector.broadcast %cst_50 : f32 to vector<8x128xf32>
    %129 = arith.addf %128, %127 : vector<8x128xf32>
    %130 = arith.divf %128, %129 : vector<8x128xf32>
    %131 = vector.extract_strided_slice %124 {offsets = [0, 128], sizes = [8, 128], strides = [1, 1]} : vector<8x512xf32> to vector<8x128xf32>
    %132 = arith.negf %131 : vector<8x128xf32>
    %133 = math.exp %132 : vector<8x128xf32>
    %cst_51 = arith.constant 1.000000e+00 : f32
    %134 = vector.broadcast %cst_51 : f32 to vector<8x128xf32>
    %135 = arith.addf %134, %133 : vector<8x128xf32>
    %136 = arith.divf %134, %135 : vector<8x128xf32>
    %137 = vector.extract_strided_slice %124 {offsets = [0, 256], sizes = [8, 128], strides = [1, 1]} : vector<8x512xf32> to vector<8x128xf32>
    %138 = math.tanh %137 : vector<8x128xf32>
    %139 = vector.extract_strided_slice %124 {offsets = [0, 384], sizes = [8, 128], strides = [1, 1]} : vector<8x512xf32> to vector<8x128xf32>
    %140 = arith.negf %139 : vector<8x128xf32>
    %141 = math.exp %140 : vector<8x128xf32>
    %cst_52 = arith.constant 1.000000e+00 : f32
    %142 = vector.broadcast %cst_52 : f32 to vector<8x128xf32>
    %143 = arith.addf %142, %141 : vector<8x128xf32>
    %144 = arith.divf %142, %143 : vector<8x128xf32>
    %145 = arith.mulf %136, %112 : vector<8x128xf32>
    %146 = arith.mulf %130, %138 : vector<8x128xf32>
    %147 = arith.addf %145, %146 : vector<8x128xf32>
    %148 = math.tanh %147 : vector<8x128xf32>
    %149 = arith.mulf %144, %148 : vector<8x128xf32>
    %150 = arith.index_cast %c3_i32 : i32 to index
    %c0_53 = arith.constant 0 : index
    %c0_54 = arith.constant 0 : index
    %151 = vector.load %arg6[%150, %c0_53, %c0_54] : memref<8x8x128xf32, #tpu.memory_space<vmem>>, vector<1x8x128xf32>
    %152 = vector.shape_cast %151 : vector<1x8x128xf32> to vector<8x128xf32>
    %153 = vector.shape_cast %149 : vector<8x128xf32> to vector<1x8x128xf32>
    tpu.vector_store %arg6[%150, %c0_53, %c0_54], %153 {strides = array<i32>} : memref<8x8x128xf32, #tpu.memory_space<vmem>>, vector<1x8x128xf32>,
    %c4_i32 = arith.constant 4 : i32
    %154 = arith.index_cast %c4_i32 : i32 to index
    %c0_55 = arith.constant 0 : index
    %c0_56 = arith.constant 0 : index
    %155 = vector.load %arg8[%154, %c0_55, %c0_56] : memref<8x8x512xf32, #tpu.memory_space<vmem>>, vector<1x8x512xf32>
    %156 = vector.shape_cast %155 : vector<1x8x512xf32> to vector<8x512xf32>
    %c0_57 = arith.constant 0 : index
    %c0_58 = arith.constant 0 : index
    %157 = vector.load %arg5[%c0_57, %c0_58] : memref<128x512xf32, #tpu.memory_space<vmem>>, vector<128x512xf32>
    %cst_59 = arith.constant dense<0.000000e+00> : vector<8x512xf32>
    %158 = tpu.matmul %149, %157, %cst_59 {dimension_numbers = #tpu.dot_dimension_numbers<[1], [0], [0], [1], [0, 0, 1, 1], [], []>} : vector<8x128xf32>, vector<128x512xf32>, vector<8x512xf32> -> vector<8x512xf32>
    %159 = arith.addf %156, %158 : vector<8x512xf32>
    %160 = vector.extract_strided_slice %159 {offsets = [0, 0], sizes = [8, 128], strides = [1, 1]} : vector<8x512xf32> to vector<8x128xf32>
    %161 = arith.negf %160 : vector<8x128xf32>
    %162 = math.exp %161 : vector<8x128xf32>
    %cst_60 = arith.constant 1.000000e+00 : f32
    %163 = vector.broadcast %cst_60 : f32 to vector<8x128xf32>
    %164 = arith.addf %163, %162 : vector<8x128xf32>
    %165 = arith.divf %163, %164 : vector<8x128xf32>
    %166 = vector.extract_strided_slice %159 {offsets = [0, 128], sizes = [8, 128], strides = [1, 1]} : vector<8x512xf32> to vector<8x128xf32>
    %167 = arith.negf %166 : vector<8x128xf32>
    %168 = math.exp %167 : vector<8x128xf32>
    %cst_61 = arith.constant 1.000000e+00 : f32
    %169 = vector.broadcast %cst_61 : f32 to vector<8x128xf32>
    %170 = arith.addf %169, %168 : vector<8x128xf32>
    %171 = arith.divf %169, %170 : vector<8x128xf32>
    %172 = vector.extract_strided_slice %159 {offsets = [0, 256], sizes = [8, 128], strides = [1, 1]} : vector<8x512xf32> to vector<8x128xf32>
    %173 = math.tanh %172 : vector<8x128xf32>
    %174 = vector.extract_strided_slice %159 {offsets = [0, 384], sizes = [8, 128], strides = [1, 1]} : vector<8x512xf32> to vector<8x128xf32>
    %175 = arith.negf %174 : vector<8x128xf32>
    %176 = math.exp %175 : vector<8x128xf32>
    %cst_62 = arith.constant 1.000000e+00 : f32
    %177 = vector.broadcast %cst_62 : f32 to vector<8x128xf32>
    %178 = arith.addf %177, %176 : vector<8x128xf32>
    %179 = arith.divf %177, %178 : vector<8x128xf32>
    %180 = arith.mulf %171, %147 : vector<8x128xf32>
    %181 = arith.mulf %165, %173 : vector<8x128xf32>
    %182 = arith.addf %180, %181 : vector<8x128xf32>
    %183 = math.tanh %182 : vector<8x128xf32>
    %184 = arith.mulf %179, %183 : vector<8x128xf32>
    %185 = arith.index_cast %c4_i32 : i32 to index
    %c0_63 = arith.constant 0 : index
    %c0_64 = arith.constant 0 : index
    %186 = vector.load %arg6[%185, %c0_63, %c0_64] : memref<8x8x128xf32, #tpu.memory_space<vmem>>, vector<1x8x128xf32>
    %187 = vector.shape_cast %186 : vector<1x8x128xf32> to vector<8x128xf32>
    %188 = vector.shape_cast %184 : vector<8x128xf32> to vector<1x8x128xf32>
    tpu.vector_store %arg6[%185, %c0_63, %c0_64], %188 {strides = array<i32>} : memref<8x8x128xf32, #tpu.memory_space<vmem>>, vector<1x8x128xf32>,
    %c5_i32 = arith.constant 5 : i32
    %189 = arith.index_cast %c5_i32 : i32 to index
    %c0_65 = arith.constant 0 : index
    %c0_66 = arith.constant 0 : index
    %190 = vector.load %arg8[%189, %c0_65, %c0_66] : memref<8x8x512xf32, #tpu.memory_space<vmem>>, vector<1x8x512xf32>
    %191 = vector.shape_cast %190 : vector<1x8x512xf32> to vector<8x512xf32>
    %c0_67 = arith.constant 0 : index
    %c0_68 = arith.constant 0 : index
    %192 = vector.load %arg5[%c0_67, %c0_68] : memref<128x512xf32, #tpu.memory_space<vmem>>, vector<128x512xf32>
    %cst_69 = arith.constant dense<0.000000e+00> : vector<8x512xf32>
    %193 = tpu.matmul %184, %192, %cst_69 {dimension_numbers = #tpu.dot_dimension_numbers<[1], [0], [0], [1], [0, 0, 1, 1], [], []>} : vector<8x128xf32>, vector<128x512xf32>, vector<8x512xf32> -> vector<8x512xf32>
    %194 = arith.addf %191, %193 : vector<8x512xf32>
    %195 = vector.extract_strided_slice %194 {offsets = [0, 0], sizes = [8, 128], strides = [1, 1]} : vector<8x512xf32> to vector<8x128xf32>
    %196 = arith.negf %195 : vector<8x128xf32>
    %197 = math.exp %196 : vector<8x128xf32>
    %cst_70 = arith.constant 1.000000e+00 : f32
    %198 = vector.broadcast %cst_70 : f32 to vector<8x128xf32>
    %199 = arith.addf %198, %197 : vector<8x128xf32>
    %200 = arith.divf %198, %199 : vector<8x128xf32>
    %201 = vector.extract_strided_slice %194 {offsets = [0, 128], sizes = [8, 128], strides = [1, 1]} : vector<8x512xf32> to vector<8x128xf32>
    %202 = arith.negf %201 : vector<8x128xf32>
    %203 = math.exp %202 : vector<8x128xf32>
    %cst_71 = arith.constant 1.000000e+00 : f32
    %204 = vector.broadcast %cst_71 : f32 to vector<8x128xf32>
    %205 = arith.addf %204, %203 : vector<8x128xf32>
    %206 = arith.divf %204, %205 : vector<8x128xf32>
    %207 = vector.extract_strided_slice %194 {offsets = [0, 256], sizes = [8, 128], strides = [1, 1]} : vector<8x512xf32> to vector<8x128xf32>
    %208 = math.tanh %207 : vector<8x128xf32>
    %209 = vector.extract_strided_slice %194 {offsets = [0, 384], sizes = [8, 128], strides = [1, 1]} : vector<8x512xf32> to vector<8x128xf32>
    %210 = arith.negf %209 : vector<8x128xf32>
    %211 = math.exp %210 : vector<8x128xf32>
    %cst_72 = arith.constant 1.000000e+00 : f32
    %212 = vector.broadcast %cst_72 : f32 to vector<8x128xf32>
    %213 = arith.addf %212, %211 : vector<8x128xf32>
    %214 = arith.divf %212, %213 : vector<8x128xf32>
    %215 = arith.mulf %206, %182 : vector<8x128xf32>
    %216 = arith.mulf %200, %208 : vector<8x128xf32>
    %217 = arith.addf %215, %216 : vector<8x128xf32>
    %218 = math.tanh %217 : vector<8x128xf32>
    %219 = arith.mulf %214, %218 : vector<8x128xf32>
    %220 = arith.index_cast %c5_i32 : i32 to index
    %c0_73 = arith.constant 0 : index
    %c0_74 = arith.constant 0 : index
    %221 = vector.load %arg6[%220, %c0_73, %c0_74] : memref<8x8x128xf32, #tpu.memory_space<vmem>>, vector<1x8x128xf32>
    %222 = vector.shape_cast %221 : vector<1x8x128xf32> to vector<8x128xf32>
    %223 = vector.shape_cast %219 : vector<8x128xf32> to vector<1x8x128xf32>
    tpu.vector_store %arg6[%220, %c0_73, %c0_74], %223 {strides = array<i32>} : memref<8x8x128xf32, #tpu.memory_space<vmem>>, vector<1x8x128xf32>,
    %c6_i32 = arith.constant 6 : i32
    %224 = arith.index_cast %c6_i32 : i32 to index
    %c0_75 = arith.constant 0 : index
    %c0_76 = arith.constant 0 : index
    %225 = vector.load %arg8[%224, %c0_75, %c0_76] : memref<8x8x512xf32, #tpu.memory_space<vmem>>, vector<1x8x512xf32>
    %226 = vector.shape_cast %225 : vector<1x8x512xf32> to vector<8x512xf32>
    %c0_77 = arith.constant 0 : index
    %c0_78 = arith.constant 0 : index
    %227 = vector.load %arg5[%c0_77, %c0_78] : memref<128x512xf32, #tpu.memory_space<vmem>>, vector<128x512xf32>
    %cst_79 = arith.constant dense<0.000000e+00> : vector<8x512xf32>
    %228 = tpu.matmul %219, %227, %cst_79 {dimension_numbers = #tpu.dot_dimension_numbers<[1], [0], [0], [1], [0, 0, 1, 1], [], []>} : vector<8x128xf32>, vector<128x512xf32>, vector<8x512xf32> -> vector<8x512xf32>
    %229 = arith.addf %226, %228 : vector<8x512xf32>
    %230 = vector.extract_strided_slice %229 {offsets = [0, 0], sizes = [8, 128], strides = [1, 1]} : vector<8x512xf32> to vector<8x128xf32>
    %231 = arith.negf %230 : vector<8x128xf32>
    %232 = math.exp %231 : vector<8x128xf32>
    %cst_80 = arith.constant 1.000000e+00 : f32
    %233 = vector.broadcast %cst_80 : f32 to vector<8x128xf32>
    %234 = arith.addf %233, %232 : vector<8x128xf32>
    %235 = arith.divf %233, %234 : vector<8x128xf32>
    %236 = vector.extract_strided_slice %229 {offsets = [0, 128], sizes = [8, 128], strides = [1, 1]} : vector<8x512xf32> to vector<8x128xf32>
    %237 = arith.negf %236 : vector<8x128xf32>
    %238 = math.exp %237 : vector<8x128xf32>
    %cst_81 = arith.constant 1.000000e+00 : f32
    %239 = vector.broadcast %cst_81 : f32 to vector<8x128xf32>
    %240 = arith.addf %239, %238 : vector<8x128xf32>
    %241 = arith.divf %239, %240 : vector<8x128xf32>
    %242 = vector.extract_strided_slice %229 {offsets = [0, 256], sizes = [8, 128], strides = [1, 1]} : vector<8x512xf32> to vector<8x128xf32>
    %243 = math.tanh %242 : vector<8x128xf32>
    %244 = vector.extract_strided_slice %229 {offsets = [0, 384], sizes = [8, 128], strides = [1, 1]} : vector<8x512xf32> to vector<8x128xf32>
    %245 = arith.negf %244 : vector<8x128xf32>
    %246 = math.exp %245 : vector<8x128xf32>
    %cst_82 = arith.constant 1.000000e+00 : f32
    %247 = vector.broadcast %cst_82 : f32 to vector<8x128xf32>
    %248 = arith.addf %247, %246 : vector<8x128xf32>
    %249 = arith.divf %247, %248 : vector<8x128xf32>
    %250 = arith.mulf %241, %217 : vector<8x128xf32>
    %251 = arith.mulf %235, %243 : vector<8x128xf32>
    %252 = arith.addf %250, %251 : vector<8x128xf32>
    %253 = math.tanh %252 : vector<8x128xf32>
    %254 = arith.mulf %249, %253 : vector<8x128xf32>
    %255 = arith.index_cast %c6_i32 : i32 to index
    %c0_83 = arith.constant 0 : index
    %c0_84 = arith.constant 0 : index
    %256 = vector.load %arg6[%255, %c0_83, %c0_84] : memref<8x8x128xf32, #tpu.memory_space<vmem>>, vector<1x8x128xf32>
    %257 = vector.shape_cast %256 : vector<1x8x128xf32> to vector<8x128xf32>
    %258 = vector.shape_cast %254 : vector<8x128xf32> to vector<1x8x128xf32>
    tpu.vector_store %arg6[%255, %c0_83, %c0_84], %258 {strides = array<i32>} : memref<8x8x128xf32, #tpu.memory_space<vmem>>, vector<1x8x128xf32>,
    %c7_i32 = arith.constant 7 : i32
    %259 = arith.index_cast %c7_i32 : i32 to index
    %c0_85 = arith.constant 0 : index
    %c0_86 = arith.constant 0 : index
    %260 = vector.load %arg8[%259, %c0_85, %c0_86] : memref<8x8x512xf32, #tpu.memory_space<vmem>>, vector<1x8x512xf32>
    %261 = vector.shape_cast %260 : vector<1x8x512xf32> to vector<8x512xf32>
    %c0_87 = arith.constant 0 : index
    %c0_88 = arith.constant 0 : index
    %262 = vector.load %arg5[%c0_87, %c0_88] : memref<128x512xf32, #tpu.memory_space<vmem>>, vector<128x512xf32>
    %cst_89 = arith.constant dense<0.000000e+00> : vector<8x512xf32>
    %263 = tpu.matmul %254, %262, %cst_89 {dimension_numbers = #tpu.dot_dimension_numbers<[1], [0], [0], [1], [0, 0, 1, 1], [], []>} : vector<8x128xf32>, vector<128x512xf32>, vector<8x512xf32> -> vector<8x512xf32>
    %264 = arith.addf %261, %263 : vector<8x512xf32>
    %265 = vector.extract_strided_slice %264 {offsets = [0, 0], sizes = [8, 128], strides = [1, 1]} : vector<8x512xf32> to vector<8x128xf32>
    %266 = arith.negf %265 : vector<8x128xf32>
    %267 = math.exp %266 : vector<8x128xf32>
    %cst_90 = arith.constant 1.000000e+00 : f32
    %268 = vector.broadcast %cst_90 : f32 to vector<8x128xf32>
    %269 = arith.addf %268, %267 : vector<8x128xf32>
    %270 = arith.divf %268, %269 : vector<8x128xf32>
    %271 = vector.extract_strided_slice %264 {offsets = [0, 128], sizes = [8, 128], strides = [1, 1]} : vector<8x512xf32> to vector<8x128xf32>
    %272 = arith.negf %271 : vector<8x128xf32>
    %273 = math.exp %272 : vector<8x128xf32>
    %cst_91 = arith.constant 1.000000e+00 : f32
    %274 = vector.broadcast %cst_91 : f32 to vector<8x128xf32>
    %275 = arith.addf %274, %273 : vector<8x128xf32>
    %276 = arith.divf %274, %275 : vector<8x128xf32>
    %277 = vector.extract_strided_slice %264 {offsets = [0, 256], sizes = [8, 128], strides = [1, 1]} : vector<8x512xf32> to vector<8x128xf32>
    %278 = math.tanh %277 : vector<8x128xf32>
    %279 = vector.extract_strided_slice %264 {offsets = [0, 384], sizes = [8, 128], strides = [1, 1]} : vector<8x512xf32> to vector<8x128xf32>
    %280 = arith.negf %279 : vector<8x128xf32>
    %281 = math.exp %280 : vector<8x128xf32>
    %cst_92 = arith.constant 1.000000e+00 : f32
    %282 = vector.broadcast %cst_92 : f32 to vector<8x128xf32>
    %283 = arith.addf %282, %281 : vector<8x128xf32>
    %284 = arith.divf %282, %283 : vector<8x128xf32>
    %285 = arith.mulf %276, %252 : vector<8x128xf32>
    %286 = arith.mulf %270, %278 : vector<8x128xf32>
    %287 = arith.addf %285, %286 : vector<8x128xf32>
    %288 = math.tanh %287 : vector<8x128xf32>
    %289 = arith.mulf %284, %288 : vector<8x128xf32>
    %290 = arith.index_cast %c7_i32 : i32 to index
    %c0_93 = arith.constant 0 : index
    %c0_94 = arith.constant 0 : index
    %291 = vector.load %arg6[%290, %c0_93, %c0_94] : memref<8x8x128xf32, #tpu.memory_space<vmem>>, vector<1x8x128xf32>
    %292 = vector.shape_cast %291 : vector<1x8x128xf32> to vector<8x128xf32>
    %293 = vector.shape_cast %289 : vector<8x128xf32> to vector<1x8x128xf32>
    tpu.vector_store %arg6[%290, %c0_93, %c0_94], %293 {strides = array<i32>} : memref<8x8x128xf32, #tpu.memory_space<vmem>>, vector<1x8x128xf32>,
    %c8_i32 = arith.constant 8 : i32
    %c0_95 = arith.constant 0 : index
    %c0_96 = arith.constant 0 : index
    %294 = vector.load %arg9[%c0_95, %c0_96] : memref<8x128xf32, #tpu.memory_space<vmem>>, vector<8x128xf32>
    tpu.vector_store %arg9[%c0_95, %c0_96], %289 {strides = array<i32>} : memref<8x128xf32, #tpu.memory_space<vmem>>, vector<8x128xf32>,
    %c0_97 = arith.constant 0 : index
    %c0_98 = arith.constant 0 : index
    %295 = vector.load %arg10[%c0_97, %c0_98] : memref<8x128xf32, #tpu.memory_space<vmem>>, vector<8x128xf32>
    tpu.vector_store %arg10[%c0_97, %c0_98], %287 {strides = array<i32>} : memref<8x128xf32, #tpu.memory_space<vmem>>, vector<8x128xf32>,
    %c0_i32_99 = arith.constant 0 : i32
    %296 = arith.cmpi eq, %arg1, %c0_i32_99 : i32
    %297 = arith.extui %296 : i1 to i32
    %c0_i32_100 = arith.constant 0 : i32
    %298 = arith.cmpi ne, %297, %c0_i32_100 : i32
    scf.if %298 {
      %c0_101 = arith.constant 0 : index
      %c0_102 = arith.constant 0 : index
      %299 = vector.load %arg10[%c0_101, %c0_102] : memref<8x128xf32, #tpu.memory_space<vmem>>, vector<8x128xf32>
      %c0_103 = arith.constant 0 : index
      %c0_104 = arith.constant 0 : index
      %300 = vector.load %arg7[%c0_103, %c0_104] : memref<8x128xf32, #tpu.memory_space<vmem>>, vector<8x128xf32>
      tpu.vector_store %arg7[%c0_103, %c0_104], %299 {strides = array<i32>} : memref<8x128xf32, #tpu.memory_space<vmem>>, vector<8x128xf32>,
    } else {
    }
    return
  }
  func.func @transform_0(%arg0: i32, %arg1: i32) -> (i32, i32, i32) {
    %c0_i32 = arith.constant 0 : i32
    %c0_i32_0 = arith.constant 0 : i32
    return %arg1, %arg0, %c0_i32 : i32, i32, i32
  }
  func.func @transform_1(%arg0: i32, %arg1: i32) -> (i32, i32) {
    %c0_i32 = arith.constant 0 : i32
    %c0_i32_0 = arith.constant 0 : i32
    %c0_i32_1 = arith.constant 0 : i32
    return %c0_i32, %c0_i32_0 : i32, i32
  }
  func.func @transform_2(%arg0: i32, %arg1: i32) -> (i32, i32) {
    %c0_i32 = arith.constant 0 : i32
    %c0_i32_0 = arith.constant 0 : i32
    %c0_i32_1 = arith.constant 0 : i32
    return %c0_i32, %c0_i32_0 : i32, i32
  }
  func.func @transform_3(%arg0: i32, %arg1: i32) -> (i32, i32) {
    %c0_i32 = arith.constant 0 : i32
    %c0_i32_0 = arith.constant 0 : i32
    %c0_i32_1 = arith.constant 0 : i32
    return %c0_i32, %c0_i32_0 : i32, i32
  }
  func.func @transform_4(%arg0: i32, %arg1: i32) -> (i32, i32, i32) {
    %c0_i32 = arith.constant 0 : i32
    %c0_i32_0 = arith.constant 0 : i32
    return %arg1, %arg0, %c0_i32 : i32, i32, i32
  }
  func.func @transform_5(%arg0: i32, %arg1: i32) -> (i32, i32) {
    %c0_i32 = arith.constant 0 : i32
    %c0_i32_0 = arith.constant 0 : i32
    return %arg0, %c0_i32 : i32, i32
  }
}

</mosaic_0001>

<bundles_post_ra>
// kernel: tpu_custom_call.1
= control target key start
LH: loop header
LB: loop body
LE: loop exit
PB: predicated region body
PF: predicated region fallthrough
CT: control target
= control target key end

     0   :  { %11 = vsyncpa [#allocation6], 0  ;;  %s3620_s0 = inlined_call_operand.hbm [shape: f32[8,8,128], index: 0, kind: input, shape index: {}]   ;;  %s3621_s1 = inlined_call_operand.hbm [shape: f32[128,512], index: 1, kind: input, shape index: {}]   ;;  %s3622_s2 = inlined_call_operand.hbm [shape: f32[1,512], index: 2, kind: input, shape index: {}]   ;;  %s3623_s3 = inlined_call_operand.hbm [shape: f32[128,512], index: 3, kind: input, shape index: {}]   ;;  %s3624_s4 = inlined_call_operand.hbm [shape: f32[8,8,128], index: 4, kind: output, shape index: {0}]   ;;  %s3625_s5 = inlined_call_operand.hbm [shape: f32[8,128], index: 5, kind: output, shape index: {1}]  }
   0x1   :  { %12 = vsyncpa [#allocation9], 0 }
   0x2   :  { %13 = vsyncpa [#allocation12], 0 }
   0x3   :  { %14 = vsyncpa [#allocation7], 0  ;;  %s33_s20 = sshll.u32 %s3621_s1, 4  ;;  %s34_s20 = int_to_ptr.hbm [resolvable:$true] %s33_s20 }
   0x4   :  { %15 = vsyncpa [#allocation15], 0  ;;  %s2471_s21 = smov [#allocation8]   ;;  %s20_s25 = sshll.u32 %s3620_s0, 4  ;;  %s21_s25 = int_to_ptr.hbm [resolvable:$true] %s20_s25 }
   0x5   :  { %s35_s22 = sshll.u32 %s2471_s21, 4  ;;  %s2472_s26 = smov 512   ;;  %s36_s22 = int_to_ptr.vmem [resolvable:$true] %s35_s22 }
   0x6   :  { %s2473_s27 = smov 32   ;;  %s2474_s28 = smov [#allocation5]  }
   0x7   :  { %41 = dma.hbm_to_vmem [thread:$0]  %s34_s20, 8192, %s36_s22, [#allocation9], %s2472_s26, %s2472_s26, %s2473_s27  }
   0x8   :  { %s22_s29 = sshll.u32 %s2474_s28, 4  ;;  %s2475_s30 = smov 128   ;;  %s23_s29 = int_to_ptr.vmem [resolvable:$true] %s22_s29 }
   0x9   :  { %s2476_s6 = smov 8   ;;  %s47_s8 = sshll.u32 %s3622_s2, 4  ;;  %s48_s8 = int_to_ptr.hbm [resolvable:$true] %s47_s8 }
   0xa   :  { %28 = dma.hbm_to_vmem [thread:$0]  %s21_s25, 1024, %s23_s29, [#allocation6], %s2475_s30, %s2475_s30, %s2476_s6  }
   0xb   :  { %s2477_s9 = smov [#allocation10]   ;;  %s57_s12 = sshll.u32 %s3623_s3, 4  ;;  %s58_s12 = int_to_ptr.hbm [resolvable:$true] %s57_s12 }
   0xc   :  { %s49_s0 = sshll.u32 %s2477_s9, 4  ;;  %s2478_s13 = smov [#allocation11]   ;;  %s50_s0 = int_to_ptr.vmem [resolvable:$true] %s49_s0 }
   0xd   :  { %52 = dma.hbm_to_vmem [thread:$0]  %s48_s8, 64, %s50_s0, [#allocation9]  }
   0xe   :  { %s59_s14 = sshll.u32 %s2478_s13, 4  ;;  %s60_s14 = int_to_ptr.vmem [resolvable:$true] %s59_s14 }
   0xf   :  { %65 = dma.hbm_to_vmem [thread:$0]  %s58_s12, 8192, %s60_s14, [#allocation12], %s2472_s26, %s2472_s26, %s2473_s27  }
  0x10   :  { %2461 = dma.done.wait [#allocation6], 1024  }
  0x11   :  { %2462 = vsyncadd [#allocation6], 4294966272 }
  0x12   :  { %2463 = dma.done.wait [#allocation9], 8256  }
  0x13   :  { %2464 = vsyncadd [#allocation9], 4294959040 }
  0x14   :  { %2465 = dma.done.wait [#allocation12], 8192  }
  0x15   :  { %2466 = vsyncadd [#allocation12], 4294959104  ;;  %v150_v0 = vld [vmem:[#allocation8 + $0x1e0] sm:$0xff]  ;;  %v151_v1 = vld [vmem:[#allocation8 + $0x1e8] sm:$0xff]  ;;  %s2480_s2 = smov [#allocation14]   ;;  %s2137_s17 = sshll.u32 %s3625_s5, 4  ;;  %s2138_s17 = int_to_ptr.hbm [resolvable:$true] %s2137_s17 }
  0x16   :  { %v152_v2 = vld [vmem:[#allocation8 + $0x1f0] sm:$0xff]  ;;  %164 = vmatpush.msra.mxu0 %v150_v0  ;;  %205 = vmatpush.msra.mxu1 %v151_v1  ;;  %v153_v3 = vld [vmem:[#allocation8 + $0x1f8] sm:$0xff]  ;;  %v146_v4 = vld [vmem:[#allocation8 + $0x1c0] sm:$0xff]  ;;  %s2135_s3 = sshll.u32 %s2480_s2, 4  ;;  %s2481_s18 = smov [#allocation13]   ;;  %s2136_s3 = int_to_ptr.vmem [resolvable:$true] %s2135_s3 }
  0x17   :  { %v147_v5 = vld [vmem:[#allocation8 + $0x1c8] sm:$0xff]  ;;  %246 = vmatpush.msra.mxu2 %v152_v2  ;;  %287 = vmatpush.msra.mxu3 %v153_v3  ;;  %v148_v6 = vld [vmem:[#allocation8 + $0x1d0] sm:$0xff]  ;;  %v149_v7 = vld [vmem:[#allocation8 + $0x1d8] sm:$0xff]  ;;  %s2121_s19 = sshll.u32 %s2481_s18, 4  ;;  %s2123_s21 = sshll.u32 %s3624_s4, 4  ;;  %s2122_s19 = int_to_ptr.vmem [resolvable:$true] %s2121_s19  ;;  %s2124_s21 = int_to_ptr.hbm [resolvable:$true] %s2123_s21 }
  0x18   :  { %v142_v8 = vld [vmem:[#allocation8 + $0x1a0] sm:$0xff]  ;;  %165 = vmatpush.msra.mxu0 %v146_v4  ;;  %206 = vmatpush.msra.mxu1 %v147_v5  ;;  %v143_v9 = vld [vmem:[#allocation8 + $0x1a8] sm:$0xff]  ;;  %v144_v10 = vld [vmem:[#allocation8 + $0x1b0] sm:$0xff] }
  0x19   :  { %v145_v11 = vld [vmem:[#allocation8 + $0x1b8] sm:$0xff]  ;;  %247 = vmatpush.msra.mxu2 %v148_v6  ;;  %288 = vmatpush.msra.mxu3 %v149_v7  ;;  %v138_v12 = vld [vmem:[#allocation8 + $0x180] sm:$0xff]  ;;  %v139_v13 = vld [vmem:[#allocation8 + $0x188] sm:$0xff] }
  0x1a   :  { %166 = vmatpush.msra.mxu0 %v142_v8  ;;  %207 = vmatpush.msra.mxu1 %v143_v9  ;;  %v140_v14 = vld [vmem:[#allocation8 + $0x190] sm:$0xff]  ;;  %v141_v15 = vld [vmem:[#allocation8 + $0x198] sm:$0xff]  ;;  %v134_v16 = vld [vmem:[#allocation8 + $0x160] sm:$0xff] }
  0x1b   :  { %248 = vmatpush.msra.mxu2 %v144_v10  ;;  %289 = vmatpush.msra.mxu3 %v145_v11  ;;  %v135_v17 = vld [vmem:[#allocation8 + $0x168] sm:$0xff]  ;;  %v136_v18 = vld [vmem:[#allocation8 + $0x170] sm:$0xff]  ;;  %v137_v19 = vld [vmem:[#allocation8 + $0x178] sm:$0xff] }
  0x1c   :  { %167 = vmatpush.msra.mxu0 %v138_v12  ;;  %208 = vmatpush.msra.mxu1 %v139_v13  ;;  %v130_v20 = vld [vmem:[#allocation8 + $0x140] sm:$0xff]  ;;  %v131_v21 = vld [vmem:[#allocation8 + $0x148] sm:$0xff]  ;;  %v132_v22 = vld [vmem:[#allocation8 + $0x150] sm:$0xff] }
  0x1d   :  { %249 = vmatpush.msra.mxu2 %v140_v14  ;;  %290 = vmatpush.msra.mxu3 %v141_v15  ;;  %v133_v23 = vld [vmem:[#allocation8 + $0x158] sm:$0xff]  ;;  %v126_v24 = vld [vmem:[#allocation8 + $0x120] sm:$0xff]  ;;  %v127_v25 = vld [vmem:[#allocation8 + $0x128] sm:$0xff] }
  0x1e   :  { %168 = vmatpush.msra.mxu0 %v134_v16  ;;  %209 = vmatpush.msra.mxu1 %v135_v17  ;;  %v128_v26 = vld [vmem:[#allocation8 + $0x130] sm:$0xff]  ;;  %v129_v27 = vld [vmem:[#allocation8 + $0x138] sm:$0xff]  ;;  %v122_v28 = vld [vmem:[#allocation8 + $0x100] sm:$0xff] }
  0x1f   :  { %250 = vmatpush.msra.mxu2 %v136_v18  ;;  %291 = vmatpush.msra.mxu3 %v137_v19  ;;  %v123_v29 = vld [vmem:[#allocation8 + $0x108] sm:$0xff]  ;;  %v124_v30 = vld [vmem:[#allocation8 + $0x110] sm:$0xff]  ;;  %v125_v31 = vld [vmem:[#allocation8 + $0x118] sm:$0xff] }
  0x20   :  { %169 = vmatpush.msra.mxu0 %v130_v20  ;;  %210 = vmatpush.msra.mxu1 %v131_v21  ;;  %v118_v32 = vld [vmem:[#allocation8 + $0xe0] sm:$0xff]  ;;  %v119_v33 = vld [vmem:[#allocation8 + $0xe8] sm:$0xff]  ;;  %v120_v34 = vld [vmem:[#allocation8 + $0xf0] sm:$0xff] }
  0x21   :  { %251 = vmatpush.msra.mxu2 %v132_v22  ;;  %292 = vmatpush.msra.mxu3 %v133_v23  ;;  %v121_v35 = vld [vmem:[#allocation8 + $0xf8] sm:$0xff]  ;;  %v114_v36 = vld [vmem:[#allocation8 + $0xc0] sm:$0xff]  ;;  %v115_v37 = vld [vmem:[#allocation8 + $0xc8] sm:$0xff] }
  0x22   :  { %170 = vmatpush.msra.mxu0 %v126_v24  ;;  %211 = vmatpush.msra.mxu1 %v127_v25  ;;  %v116_v38 = vld [vmem:[#allocation8 + $0xd0] sm:$0xff]  ;;  %v117_v39 = vld [vmem:[#allocation8 + $0xd8] sm:$0xff]  ;;  %v110_v40 = vld [vmem:[#allocation8 + $0xa0] sm:$0xff] }
  0x23   :  { %252 = vmatpush.msra.mxu2 %v128_v26  ;;  %293 = vmatpush.msra.mxu3 %v129_v27  ;;  %v111_v41 = vld [vmem:[#allocation8 + $0xa8] sm:$0xff]  ;;  %v112_v42 = vld [vmem:[#allocation8 + $0xb0] sm:$0xff]  ;;  %v113_v43 = vld [vmem:[#allocation8 + $0xb8] sm:$0xff] }
  0x24   :  { %171 = vmatpush.msra.mxu0 %v122_v28  ;;  %212 = vmatpush.msra.mxu1 %v123_v29  ;;  %v106_v44 = vld [vmem:[#allocation8 + $0x80] sm:$0xff]  ;;  %v107_v45 = vld [vmem:[#allocation8 + $0x88] sm:$0xff]  ;;  %v108_v46 = vld [vmem:[#allocation8 + $0x90] sm:$0xff] }
  0x25   :  { %253 = vmatpush.msra.mxu2 %v124_v30  ;;  %294 = vmatpush.msra.mxu3 %v125_v31  ;;  %v109_v47 = vld [vmem:[#allocation8 + $0x98] sm:$0xff]  ;;  %v102_v48 = vld [vmem:[#allocation8 + $0x60] sm:$0xff]  ;;  %v103_v49 = vld [vmem:[#allocation8 + $0x68] sm:$0xff] }
  0x26   :  { %172 = vmatpush.msra.mxu0 %v118_v32  ;;  %213 = vmatpush.msra.mxu1 %v119_v33  ;;  %v104_v50 = vld [vmem:[#allocation8 + $0x70] sm:$0xff]  ;;  %v105_v51 = vld [vmem:[#allocation8 + $0x78] sm:$0xff]  ;;  %v98_v52 = vld [vmem:[#allocation8 + $0x40] sm:$0xff] }
  0x27   :  { %254 = vmatpush.msra.mxu2 %v120_v34  ;;  %295 = vmatpush.msra.mxu3 %v121_v35  ;;  %v99_v53 = vld [vmem:[#allocation8 + $0x48] sm:$0xff]  ;;  %v100_v54 = vld [vmem:[#allocation8 + $0x50] sm:$0xff]  ;;  %v101_v55 = vld [vmem:[#allocation8 + $0x58] sm:$0xff] }
  0x28   :  { %173 = vmatpush.msra.mxu0 %v114_v36  ;;  %214 = vmatpush.msra.mxu1 %v115_v37  ;;  %v94_v56 = vld [vmem:[#allocation8 + $0x20] sm:$0xff]  ;;  %v95_v57 = vld [vmem:[#allocation8 + $0x28] sm:$0xff]  ;;  %v96_v58 = vld [vmem:[#allocation8 + $0x30] sm:$0xff] }
  0x29   :  { %255 = vmatpush.msra.mxu2 %v116_v38  ;;  %296 = vmatpush.msra.mxu3 %v117_v39  ;;  %v97_v59 = vld [vmem:[#allocation8 + $0x38] sm:$0xff]  ;;  %v90_v60 = vld [vmem:[#allocation8] sm:$0xff]  ;;  %v91_v61 = vld [vmem:[#allocation8 + $0x8] sm:$0xff] }
  0x2a   :  { %174 = vmatpush.msra.mxu0 %v110_v40  ;;  %215 = vmatpush.msra.mxu1 %v111_v41  ;;  %v92_v62 = vld [vmem:[#allocation8 + $0x10] sm:$0xff]  ;;  %v93_v63 = vld [vmem:[#allocation8 + $0x18] sm:$0xff]  ;;  %v82_v0 = vld [vmem:[#allocation5] sm:$0xff] }
  0x2b   :  { %256 = vmatpush.msra.mxu2 %v112_v42  ;;  %297 = vmatpush.msra.mxu3 %v113_v43  ;;  %v2527_v1 = vld [vmem:[#allocation11 + $0x1e0] sm:$0xff]  ;;  %v2529_v2 = vld [vmem:[#allocation11 + $0x1e8] sm:$0xff]  ;;  %v2531_v3 = vld [vmem:[#allocation11 + $0x1f8] sm:$0xff] }
  0x2c   :  { %175 = vmatpush.msra.mxu0 %v106_v44  ;;  %216 = vmatpush.msra.mxu1 %v107_v45  ;;  %v2533_v4 = vld [vmem:[#allocation11 + $0x1f0] sm:$0xff]  ;;  %v2535_v5 = vld [vmem:[#allocation11 + $0x1c0] sm:$0xff]  ;;  %v2537_v6 = vld [vmem:[#allocation11 + $0x1c8] sm:$0xff] }
  0x2d   :  { %257 = vmatpush.msra.mxu2 %v108_v46  ;;  %298 = vmatpush.msra.mxu3 %v109_v47  ;;  %v2541_v7 = vld [vmem:[#allocation11 + $0x1d8] sm:$0xff]  ;;  %v2543_v8 = vld [vmem:[#allocation11 + $0x1d0] sm:$0xff]  ;;  %v2546_v9 = vld [vmem:[#allocation11 + $0x1a0] sm:$0xff] }
  0x2e   :  { %176 = vmatpush.msra.mxu0 %v102_v48  ;;  %217 = vmatpush.msra.mxu1 %v103_v49  ;;  %v2548_v10 = vld [vmem:[#allocation11 + $0x1a8] sm:$0xff]  ;;  %v2553_v11 = vld [vmem:[#allocation11 + $0x1b8] sm:$0xff]  ;;  %v2555_v12 = vld [vmem:[#allocation11 + $0x1b0] sm:$0xff] }
  0x2f   :  { %258 = vmatpush.msra.mxu2 %v104_v50  ;;  %299 = vmatpush.msra.mxu3 %v105_v51  ;;  %v83_v13 = vld [vmem:[#allocation5 + $0x8] sm:$0xff]  ;;  %v2567_v16 = vld [vmem:[#allocation11 + $0x198] sm:$0xff]  ;;  %v2569_v17 = vld [vmem:[#allocation11 + $0x190] sm:$0xff] }
  0x30   :  { %177 = vmatpush.msra.mxu0 %v98_v52  ;;  %218 = vmatpush.msra.mxu1 %v99_v53  ;;  %v2561_v14 = vld [vmem:[#allocation11 + $0x180] sm:$0xff]  ;;  %v2563_v15 = vld [vmem:[#allocation11 + $0x188] sm:$0xff]  ;;  %v2577_v20 = vld [vmem:[#allocation11 + $0x178] sm:$0xff] }
  0x31   :  { %259 = vmatpush.msra.mxu2 %v100_v54  ;;  %300 = vmatpush.msra.mxu3 %v101_v55  ;;  %v2571_v18 = vld [vmem:[#allocation11 + $0x160] sm:$0xff]  ;;  %v2573_v19 = vld [vmem:[#allocation11 + $0x168] sm:$0xff]  ;;  %v2579_v21 = vld [vmem:[#allocation11 + $0x170] sm:$0xff] }
  0x32   :  { %178 = vmatpush.msra.mxu0 %v94_v56  ;;  %219 = vmatpush.msra.mxu1 %v95_v57  ;;  %v2582_v22 = vld [vmem:[#allocation11 + $0x140] sm:$0xff]  ;;  %v2584_v23 = vld [vmem:[#allocation11 + $0x148] sm:$0xff]  ;;  %v2589_v24 = vld [vmem:[#allocation11 + $0x158] sm:$0xff] }
  0x33   :  { %260 = vmatpush.msra.mxu2 %v96_v58  ;;  %301 = vmatpush.msra.mxu3 %v97_v59  ;;  %v2591_v25 = vld [vmem:[#allocation11 + $0x150] sm:$0xff]  ;;  %v2597_v27 = vld [vmem:[#allocation11 + $0x120] sm:$0xff]  ;;  %v2599_v28 = vld [vmem:[#allocation11 + $0x128] sm:$0xff] }
  0x34   :  { %179 = vmatpush.msra.mxu0 %v90_v60  ;;  %220 = vmatpush.msra.mxu1 %v91_v61  ;;  %v84_v26 = vld [vmem:[#allocation5 + $0x10] sm:$0xff]  ;;  %v2603_v29 = vld [vmem:[#allocation11 + $0x138] sm:$0xff]  ;;  %v2607_v31 = vld [vmem:[#allocation11 + $0x100] sm:$0xff] }
  0x35   :  { %261 = vmatpush.msra.mxu2 %v92_v62  ;;  %302 = vmatpush.msra.mxu3 %v93_v63  ;;  %v2605_v30 = vld [vmem:[#allocation11 + $0x130] sm:$0xff]  ;;  %v2609_v32 = vld [vmem:[#allocation11 + $0x108] sm:$0xff]  ;;  %v2613_v33 = vld [vmem:[#allocation11 + $0x118] sm:$0xff] }
  0x36   :  { %180 = vmatmul.f32.vlgmr.msra.gmra.mxu0 %v82_v0  ;;  %221 = vmatmul.f32.vlgmr.msra.gmra.mxu1 %v82_v0  ;;  %v2615_v34 = vld [vmem:[#allocation11 + $0x110] sm:$0xff]  ;;  %v2618_v35 = vld [vmem:[#allocation11 + $0xe0] sm:$0xff]  ;;  %v2620_v36 = vld [vmem:[#allocation11 + $0xe8] sm:$0xff] }
  0x37   :  { %262 = vmatmul.f32.vlgmr.msra.gmra.mxu2 %v82_v0  ;;  %303 = vmatmul.f32.vlgmr.msra.gmra.mxu3 %v82_v0  ;;  %v2625_v37 = vld [vmem:[#allocation11 + $0xf8] sm:$0xff]  ;;  %v2627_v38 = vld [vmem:[#allocation11 + $0xf0] sm:$0xff]  ;;  %v2633_v40 = vld [vmem:[#allocation11 + $0xc0] sm:$0xff] }
  0x38   :  { %436 = vmatpush.msrb.mxu0 %v2527_v1  ;;  %456 = vmatpush.msrb.mxu1 %v2529_v2  ;;  %v85_v39 = vld [vmem:[#allocation5 + $0x18] sm:$0xff]  ;;  %v2635_v41 = vld [vmem:[#allocation11 + $0xc8] sm:$0xff]  ;;  %v2643_v44 = vld [vmem:[#allocation11 + $0xa0] sm:$0xff] }
  0x39   :  { %496 = vmatpush.msrb.mxu3 %v2531_v3  ;;  %476 = vmatpush.msrb.mxu2 %v2533_v4  ;;  %v2639_v42 = vld [vmem:[#allocation11 + $0xd8] sm:$0xff]  ;;  %v2641_v43 = vld [vmem:[#allocation11 + $0xd0] sm:$0xff]  ;;  %v2645_v45 = vld [vmem:[#allocation11 + $0xa8] sm:$0xff] }
  0x3a   :  { %437 = vmatpush.msrb.mxu0 %v2535_v5  ;;  %457 = vmatpush.msrb.mxu1 %v2537_v6  ;;  %v2649_v46 = vld [vmem:[#allocation11 + $0xb8] sm:$0xff]  ;;  %v2651_v47 = vld [vmem:[#allocation11 + $0xb0] sm:$0xff]  ;;  %v2654_v48 = vld [vmem:[#allocation11 + $0x80] sm:$0xff] }
  0x3b   :  { %497 = vmatpush.msrb.mxu3 %v2541_v7  ;;  %477 = vmatpush.msrb.mxu2 %v2543_v8  ;;  %v2656_v49 = vld [vmem:[#allocation11 + $0x88] sm:$0xff]  ;;  %v2661_v50 = vld [vmem:[#allocation11 + $0x98] sm:$0xff]  ;;  %v2663_v51 = vld [vmem:[#allocation11 + $0x90] sm:$0xff] }
  0x3c   :  { %438 = vmatpush.msrb.mxu0 %v2546_v9  ;;  %458 = vmatpush.msrb.mxu1 %v2548_v10  ;;  %v86_v52 = vld [vmem:[#allocation5 + $0x20] sm:$0xff]  ;;  %v2671_v54 = vld [vmem:[#allocation11 + $0x68] sm:$0xff]  ;;  %v2677_v56 = vld [vmem:[#allocation11 + $0x70] sm:$0xff] }
  0x3d   :  { %498 = vmatpush.msrb.mxu3 %v2553_v11  ;;  %478 = vmatpush.msrb.mxu2 %v2555_v12  ;;  %v2669_v53 = vld [vmem:[#allocation11 + $0x60] sm:$0xff]  ;;  %v2675_v55 = vld [vmem:[#allocation11 + $0x78] sm:$0xff]  ;;  %v2681_v58 = vld [vmem:[#allocation11 + $0x48] sm:$0xff] }
  0x3e   :  { %183 = vmatmul.f32.gmra.mxu0 %v83_v13  ;;  %224 = vmatmul.f32.gmra.mxu1 %v83_v13  ;;  %v2679_v57 = vld [vmem:[#allocation11 + $0x40] sm:$0xff]  ;;  %3663 = vst [vmem:[#allocation21_spill] sm:$0xff] %v2681_v58  ;;  %v2685_v59 = vld [vmem:[#allocation11 + $0x58] sm:$0xff]  ;;  %v2687_v60 = vld [vmem:[#allocation11 + $0x50] sm:$0xff] }
  0x3f   :  { %265 = vmatmul.f32.gmra.mxu2 %v83_v13  ;;  %306 = vmatmul.f32.gmra.mxu3 %v83_v13  ;;  %v2690_v61 = vld [vmem:[#allocation11 + $0x20] sm:$0xff]  ;;  %v2692_v62 = vld [vmem:[#allocation11 + $0x28] sm:$0xff]  ;;  %v2697_v63 = vld [vmem:[#allocation11 + $0x30] sm:$0xff] }
  0x40   :  { %439 = vmatpush.msrb.mxu0 %v2561_v14  ;;  %459 = vmatpush.msrb.mxu1 %v2563_v15  ;;  %v2699_v0 = vld [vmem:[#allocation11 + $0x38] sm:$0xff]  ;;  %v87_v13 = vld [vmem:[#allocation5 + $0x28] sm:$0xff] }
  0x41   :  { %499 = vmatpush.msrb.mxu3 %v2567_v16  ;;  %479 = vmatpush.msrb.mxu2 %v2569_v17  ;;  %3664 = vst [vmem:[#allocation22_spill] sm:$0xff] %v2699_v0 }
  0x42   :  { %440 = vmatpush.msrb.mxu0 %v2571_v18  ;;  %460 = vmatpush.msrb.mxu1 %v2573_v19 }
  0x43   :  { %500 = vmatpush.msrb.mxu3 %v2577_v20  ;;  %480 = vmatpush.msrb.mxu2 %v2579_v21 }
  0x44   :  { %441 = vmatpush.msrb.mxu0 %v2582_v22  ;;  %461 = vmatpush.msrb.mxu1 %v2584_v23 }
  0x45   :  { %501 = vmatpush.msrb.mxu3 %v2589_v24  ;;  %481 = vmatpush.msrb.mxu2 %v2591_v25 }
  0x46   :  { %186 = vmatmul.f32.gmra.mxu0 %v84_v26  ;;  %227 = vmatmul.f32.gmra.mxu1 %v84_v26 }
  0x47   :  { %268 = vmatmul.f32.gmra.mxu2 %v84_v26  ;;  %309 = vmatmul.f32.gmra.mxu3 %v84_v26  ;;  %v2705_v26 = vld [vmem:[#allocation11] sm:$0xff] }
  0x48   :  { %442 = vmatpush.msrb.mxu0 %v2597_v27  ;;  %462 = vmatpush.msrb.mxu1 %v2599_v28 }
  0x49   :  { %502 = vmatpush.msrb.mxu3 %v2603_v29  ;;  %482 = vmatpush.msrb.mxu2 %v2605_v30 }
  0x4a   :  { %443 = vmatpush.msrb.mxu0 %v2607_v31  ;;  %463 = vmatpush.msrb.mxu1 %v2609_v32 }
  0x4b   :  { %503 = vmatpush.msrb.mxu3 %v2613_v33  ;;  %483 = vmatpush.msrb.mxu2 %v2615_v34 }
  0x4c   :  { %444 = vmatpush.msrb.mxu0 %v2618_v35  ;;  %464 = vmatpush.msrb.mxu1 %v2620_v36 }
  0x4d   :  { %504 = vmatpush.msrb.mxu3 %v2625_v37  ;;  %484 = vmatpush.msrb.mxu2 %v2627_v38 }
  0x4e   :  { %189 = vmatmul.f32.gmra.mxu0 %v85_v39  ;;  %230 = vmatmul.f32.gmra.mxu1 %v85_v39 }
  0x4f   :  { %271 = vmatmul.f32.gmra.mxu2 %v85_v39  ;;  %312 = vmatmul.f32.gmra.mxu3 %v85_v39  ;;  %v2707_v39 = vld [vmem:[#allocation11 + $0x8] sm:$0xff] }
  0x50   :  { %445 = vmatpush.msrb.mxu0 %v2633_v40  ;;  %465 = vmatpush.msrb.mxu1 %v2635_v41 }
  0x51   :  { %505 = vmatpush.msrb.mxu3 %v2639_v42  ;;  %485 = vmatpush.msrb.mxu2 %v2641_v43 }
  0x52   :  { %446 = vmatpush.msrb.mxu0 %v2643_v44  ;;  %466 = vmatpush.msrb.mxu1 %v2645_v45 }
  0x53   :  { %506 = vmatpush.msrb.mxu3 %v2649_v46  ;;  %486 = vmatpush.msrb.mxu2 %v2651_v47 }
  0x54   :  { %447 = vmatpush.msrb.mxu0 %v2654_v48  ;;  %467 = vmatpush.msrb.mxu1 %v2656_v49 }
  0x55   :  { %507 = vmatpush.msrb.mxu3 %v2661_v50  ;;  %487 = vmatpush.msrb.mxu2 %v2663_v51 }
  0x56   :  { %192 = vmatmul.f32.gmra.mxu0 %v86_v52  ;;  %233 = vmatmul.f32.gmra.mxu1 %v86_v52 }
  0x57   :  { %274 = vmatmul.f32.gmra.mxu2 %v86_v52  ;;  %315 = vmatmul.f32.gmra.mxu3 %v86_v52  ;;  %v2711_v52 = vld [vmem:[#allocation11 + $0x10] sm:$0xff] }
  0x58   :  { %448 = vmatpush.msrb.mxu0 %v2669_v53  ;;  %468 = vmatpush.msrb.mxu1 %v2671_v54 }
  0x59   :  { %508 = vmatpush.msrb.mxu3 %v2675_v55  ;;  %488 = vmatpush.msrb.mxu2 %v2677_v56 }
  0x5a   :  { %449 = vmatpush.msrb.mxu0 %v2679_v57  ;;  %469 = vmatpush.msrb.mxu1 %v2681_v58  ;;  %v2713_v58 = vld [vmem:[#allocation11 + $0x18] sm:$0xff] }
  0x5b   :  { %509 = vmatpush.msrb.mxu3 %v2685_v59  ;;  %489 = vmatpush.msrb.mxu2 %v2687_v60 }
  0x5c   :  { %450 = vmatpush.msrb.mxu0 %v2690_v61  ;;  %470 = vmatpush.msrb.mxu1 %v2692_v62 }
  0x5d   :  { %490 = vmatpush.msrb.mxu2 %v2697_v63  ;;  %510 = vmatpush.msrb.mxu3 %v2699_v0  ;;  %v88_v0 = vld [vmem:[#allocation5 + $0x30] sm:$0xff] }
  0x5e   :  { %195 = vmatmul.f32.gmra.mxu0 %v87_v13  ;;  %236 = vmatmul.f32.gmra.mxu1 %v87_v13 }
  0x5f   :  { %277 = vmatmul.f32.gmra.mxu2 %v87_v13  ;;  %318 = vmatmul.f32.gmra.mxu3 %v87_v13  ;;  %v89_v13 = vld [vmem:[#allocation5 + $0x38] sm:$0xff] }
  0x60   :  { %451 = vmatpush.msrb.mxu0 %v2705_v26  ;;  %471 = vmatpush.msrb.mxu1 %v2707_v39 }
  0x61   :  { %491 = vmatpush.msrb.mxu2 %v2711_v52  ;;  %511 = vmatpush.msrb.mxu3 %v2713_v58 }
  0x62   :  { %653 = vmatpush.msra.mxu0 %v2527_v1  ;;  %673 = vmatpush.msra.mxu1 %v2529_v2 }
  0x63   :  { %693 = vmatpush.msra.mxu2 %v2533_v4  ;;  %713 = vmatpush.msra.mxu3 %v2531_v3 }
  0x64   :  { %654 = vmatpush.msra.mxu0 %v2535_v5  ;;  %674 = vmatpush.msra.mxu1 %v2537_v6 }
  0x65   :  { %694 = vmatpush.msra.mxu2 %v2543_v8  ;;  %714 = vmatpush.msra.mxu3 %v2541_v7 }
  0x66   :  { %198 = vmatmul.f32.gmra.mxu0 %v88_v0  ;;  %239 = vmatmul.f32.gmra.mxu1 %v88_v0 }
  0x67   :  { %280 = vmatmul.f32.gmra.mxu2 %v88_v0  ;;  %321 = vmatmul.f32.gmra.mxu3 %v88_v0  ;;  %v2479_v0 = vmov 0.0  }
  0x68   :  { %655 = vmatpush.msra.mxu0 %v2546_v9  ;;  %675 = vmatpush.msra.mxu1 %v2548_v10 }
  0x69   :  { %695 = vmatpush.msra.mxu2 %v2555_v12  ;;  %715 = vmatpush.msra.mxu3 %v2553_v11 }
  0x6a   :  { %656 = vmatpush.msra.mxu0 %v2561_v14  ;;  %676 = vmatpush.msra.mxu1 %v2563_v15 }
  0x6b   :  { %696 = vmatpush.msra.mxu2 %v2569_v17  ;;  %716 = vmatpush.msra.mxu3 %v2567_v16 }
  0x6c   :  { %657 = vmatpush.msra.mxu0 %v2571_v18  ;;  %677 = vmatpush.msra.mxu1 %v2573_v19 }
  0x6d   :  { %697 = vmatpush.msra.mxu2 %v2579_v21  ;;  %717 = vmatpush.msra.mxu3 %v2577_v20 }
  0x6e   :  { %201 = vmatmul.f32.gmra.mxu0 %v89_v13  ;;  %242 = vmatmul.f32.gmra.mxu1 %v89_v13 }
  0x6f   :  { %283 = vmatmul.f32.gmra.mxu2 %v89_v13  ;;  %324 = vmatmul.f32.gmra.mxu3 %v89_v13  ;;  %v3665_v13 = vld [vmem:[#allocation21_spill] sm:$0xff] }
  0x70   :  { %658 = vmatpush.msra.mxu0 %v2582_v22  ;;  %678 = vmatpush.msra.mxu1 %v2584_v23 }
  0x71   :  { %698 = vmatpush.msra.mxu2 %v2591_v25  ;;  %718 = vmatpush.msra.mxu3 %v2589_v24 }
  0x72   :  { %659 = vmatpush.msra.mxu0 %v2597_v27  ;;  %679 = vmatpush.msra.mxu1 %v2599_v28 }
  0x73   :  { %699 = vmatpush.msra.mxu2 %v2605_v30  ;;  %719 = vmatpush.msra.mxu3 %v2603_v29 }
  0x74   :  { %660 = vmatpush.msra.mxu0 %v2607_v31  ;;  %680 = vmatpush.msra.mxu1 %v2609_v32 }
  0x75   :  { %700 = vmatpush.msra.mxu2 %v2615_v34  ;;  %720 = vmatpush.msra.mxu3 %v2613_v33 }
  0x76   :  { %452 = vmatmul.f32.vlgmr.msrb.gmra.mxu0 %v2479_v0  ;;  %472 = vmatmul.f32.vlgmr.msrb.gmra.mxu1 %v2479_v0 }
  0x77   :  { %492 = vmatmul.f32.vlgmr.msrb.gmra.mxu2 %v2479_v0  ;;  %512 = vmatmul.f32.vlgmr.msrb.gmra.mxu3 %v2479_v0  ;;  %v3666_v0 = vld [vmem:[#allocation22_spill] sm:$0xff] }
  0x78   :  { %661 = vmatpush.msra.mxu0 %v2618_v35  ;;  %681 = vmatpush.msra.mxu1 %v2620_v36 }
  0x79   :  { %701 = vmatpush.msra.mxu2 %v2627_v38  ;;  %721 = vmatpush.msra.mxu3 %v2625_v37 }
  0x7a   :  { %662 = vmatpush.msra.mxu0 %v2633_v40  ;;  %682 = vmatpush.msra.mxu1 %v2635_v41 }
  0x7b   :  { %702 = vmatpush.msra.mxu2 %v2641_v43  ;;  %722 = vmatpush.msra.mxu3 %v2639_v42 }
  0x7c   :  { %663 = vmatpush.msra.mxu0 %v2643_v44  ;;  %683 = vmatpush.msra.mxu1 %v2645_v45 }
  0x7d   :  { %703 = vmatpush.msra.mxu2 %v2651_v47  ;;  %723 = vmatpush.msra.mxu3 %v2649_v46 }
  0x7e   :  { %664 = vmatpush.msra.mxu0 %v2654_v48  ;;  %684 = vmatpush.msra.mxu1 %v2656_v49 }
  0x7f   :  { %704 = vmatpush.msra.mxu2 %v2663_v51  ;;  %724 = vmatpush.msra.mxu3 %v2661_v50 }
  0x80   :  { %665 = vmatpush.msra.mxu0 %v2669_v53  ;;  %685 = vmatpush.msra.mxu1 %v2671_v54 }
  0x81   :  { %705 = vmatpush.msra.mxu2 %v2677_v56  ;;  %725 = vmatpush.msra.mxu3 %v2675_v55 }
  0x82   :  { %666 = vmatpush.msra.mxu0 %v2679_v57  ;;  %686 = vmatpush.msra.mxu1 %v3665_v13 }
  0x83   :  { %706 = vmatpush.msra.mxu2 %v2687_v60  ;;  %726 = vmatpush.msra.mxu3 %v2685_v59 }
  0x84   :  { %667 = vmatpush.msra.mxu0 %v2690_v61  ;;  %687 = vmatpush.msra.mxu1 %v2692_v62 }
  0x85   :  { %707 = vmatpush.msra.mxu2 %v2697_v63  ;;  %727 = vmatpush.msra.mxu3 %v3666_v0 }
  0x86   :  { %668 = vmatpush.msra.mxu0 %v2705_v26  ;;  %688 = vmatpush.msra.mxu1 %v2707_v39 }
  0x87   :  { %708 = vmatpush.msra.mxu2 %v2711_v52  ;;  %728 = vmatpush.msra.mxu3 %v2713_v58 }
  0x88   :  { %871 = vmatpush.msrb.mxu0 %v2527_v1  ;;  %891 = vmatpush.msrb.mxu1 %v2529_v2 }
  0x89   :  { %911 = vmatpush.msrb.mxu2 %v2533_v4  ;;  %931 = vmatpush.msrb.mxu3 %v2531_v3  ;;  %v154_v3 = vld [vmem:[#allocation10] sm:$0xf] }
  0x8a   :  { %872 = vmatpush.msrb.mxu0 %v2535_v5  ;;  %892 = vmatpush.msrb.mxu1 %v2537_v6  ;;  %v156_v4 = vperm.slane %v154_v3, 0  ;;  %v157_v5 = vperm.slane %v154_v3, 1 }
  0x8b   :  { %912 = vmatpush.msrb.mxu2 %v2543_v8  ;;  %932 = vmatpush.msrb.mxu3 %v2541_v7 }
  0x8c   :  { %873 = vmatpush.msrb.mxu0 %v2546_v9  ;;  %893 = vmatpush.msrb.mxu1 %v2548_v10 }
  0x8d   :  { %913 = vmatpush.msrb.mxu2 %v2555_v12  ;;  %933 = vmatpush.msrb.mxu3 %v2553_v11  ;;  %v2855_v12 = vperm.slane %v154_v3, 2 }
  0x8e   :  { %874 = vmatpush.msrb.mxu0 %v2561_v14  ;;  %894 = vmatpush.msrb.mxu1 %v2563_v15  ;;  %v159_v14 = vperm.slane %v154_v3, 3 }
  0x8f   :  { %914 = vmatpush.msrb.mxu2 %v2569_v17  ;;  %934 = vmatpush.msrb.mxu3 %v2567_v16 }
  0x90   :  { %875 = vmatpush.msrb.mxu0 %v2571_v18  ;;  %895 = vmatpush.msrb.mxu1 %v2573_v19 }
  0x91   :  { %915 = vmatpush.msrb.mxu2 %v2579_v21  ;;  %935 = vmatpush.msrb.mxu3 %v2577_v20 }
  0x92   :  { %876 = vmatpush.msrb.mxu0 %v2582_v22  ;;  %896 = vmatpush.msrb.mxu1 %v2584_v23 }
  0x93   :  { %916 = vmatpush.msrb.mxu2 %v2591_v25  ;;  %936 = vmatpush.msrb.mxu3 %v2589_v24 }
  0x94   :  { %877 = vmatpush.msrb.mxu0 %v2597_v27  ;;  %897 = vmatpush.msrb.mxu1 %v2599_v28 }
  0x95   :  { %917 = vmatpush.msrb.mxu2 %v2605_v30  ;;  %937 = vmatpush.msrb.mxu3 %v2603_v29 }
  0x96   :  { %878 = vmatpush.msrb.mxu0 %v2607_v31  ;;  %898 = vmatpush.msrb.mxu1 %v2609_v32 }
  0x97   :  { %918 = vmatpush.msrb.mxu2 %v2615_v34  ;;  %938 = vmatpush.msrb.mxu3 %v2613_v33 }
  0x98   :  { %879 = vmatpush.msrb.mxu0 %v2618_v35  ;;  %899 = vmatpush.msrb.mxu1 %v2620_v36 }
  0x99   :  { %919 = vmatpush.msrb.mxu2 %v2627_v38  ;;  %939 = vmatpush.msrb.mxu3 %v2625_v37 }
  0x9a   :  { %880 = vmatpush.msrb.mxu0 %v2633_v40  ;;  %900 = vmatpush.msrb.mxu1 %v2635_v41 }
  0x9b   :  { %920 = vmatpush.msrb.mxu2 %v2641_v43  ;;  %940 = vmatpush.msrb.mxu3 %v2639_v42 }
  0x9c   :  { %881 = vmatpush.msrb.mxu0 %v2643_v44  ;;  %901 = vmatpush.msrb.mxu1 %v2645_v45 }
  0x9d   :  { %921 = vmatpush.msrb.mxu2 %v2651_v47  ;;  %941 = vmatpush.msrb.mxu3 %v2649_v46 }
  0x9e   :  { %882 = vmatpush.msrb.mxu0 %v2654_v48  ;;  %902 = vmatpush.msrb.mxu1 %v2656_v49 }
  0x9f   :  { %922 = vmatpush.msrb.mxu2 %v2663_v51  ;;  %942 = vmatpush.msrb.mxu3 %v2661_v50 }
  0xa0   :  { %883 = vmatpush.msrb.mxu0 %v2669_v53  ;;  %903 = vmatpush.msrb.mxu1 %v2671_v54 }
  0xa1   :  { %923 = vmatpush.msrb.mxu2 %v2677_v56  ;;  %943 = vmatpush.msrb.mxu3 %v2675_v55 }
  0xa2   :  { %884 = vmatpush.msrb.mxu0 %v2679_v57  ;;  %904 = vmatpush.msrb.mxu1 %v3665_v13 }
  0xa3   :  { %924 = vmatpush.msrb.mxu2 %v2687_v60  ;;  %944 = vmatpush.msrb.mxu3 %v2685_v59 }
  0xa4   :  { %885 = vmatpush.msrb.mxu0 %v2690_v61  ;;  %905 = vmatpush.msrb.mxu1 %v2692_v62 }
  0xa5   :  { %925 = vmatpush.msrb.mxu2 %v2697_v63  ;;  %945 = vmatpush.msrb.mxu3 %v3666_v0 }
  0xa6   :  { %886 = vmatpush.msrb.mxu0 %v2705_v26  ;;  %906 = vmatpush.msrb.mxu1 %v2707_v39 }
  0xa7   :  { %926 = vmatpush.msrb.mxu2 %v2711_v52  ;;  %946 = vmatpush.msrb.mxu3 %v2713_v58 }
  0xb3   :  { %v181_v1 = vpop.f32.mrf.mxu0  ;;  %v222_v2 = vpop.f32.mrf.mxu1 }
  0xb4   :  { %v182_v52 = vadd.f32 %v181_v1, %v156_v4  ;;  %v223_v13 = vadd.f32 %v222_v2, %v157_v5 }
  0xba   :  { %v2847_v6 = vpop.f32.mrf.mxu2  ;;  %v2849_v7 = vpop.f32.mrf.mxu3 }
  0xbb   :  { %v184_v8 = vpop.f32.mrf.mxu0  ;;  %v225_v9 = vpop.f32.mrf.mxu1 }
  0xbc   :  { %v2851_v10 = vadd.f32 %v184_v8, %v156_v4  ;;  %v2853_v11 = vadd.f32 %v225_v9, %v157_v5 }
  0xc2   :  { %v266_v15 = vpop.f32.mrf.mxu2  ;;  %v307_v16 = vpop.f32.mrf.mxu3 }
  0xc3   :  { %v2858_v17 = vadd.f32 %v266_v15, %v2855_v12  ;;  %v2860_v18 = vadd.f32 %v307_v16, %v159_v14  ;;  %v187_v19 = vpop.f32.mrf.mxu0  ;;  %v228_v20 = vpop.f32.mrf.mxu1 }
  0xc4   :  { %v2862_v21 = vadd.f32 %v187_v19, %v156_v4  ;;  %v2864_v22 = vadd.f32 %v228_v20, %v157_v5 }
  0xca   :  { %v269_v23 = vpop.f32.mrf.mxu2  ;;  %v310_v24 = vpop.f32.mrf.mxu3 }
  0xcb   :  { %v2867_v25 = vadd.f32 %v269_v23, %v2855_v12  ;;  %v2869_v27 = vadd.f32 %v310_v24, %v159_v14  ;;  %v190_v28 = vpop.f32.mrf.mxu0  ;;  %v231_v29 = vpop.f32.mrf.mxu1 }
  0xcc   :  { %v2871_v30 = vadd.f32 %v190_v28, %v156_v4  ;;  %v2873_v31 = vadd.f32 %v231_v29, %v157_v5  ;;  %v305_v28 = vadd.f32 %v2849_v7, %v159_v14 }
  0xce   :  { %3667 = vst [vmem:[#allocation21_spill] sm:$0xff] %v2871_v30  ;;  %v3103_v30 = vld [vmem:[#allocation11 + $0x30] sm:$0xff] }
  0xcf   :  { %3668 = vst [vmem:[#allocation22_spill] sm:$0xff] %v2873_v31  ;;  %v3099_v31 = vld [vmem:[#allocation11 + $0x28] sm:$0xff] }
  0xd2   :  { %v272_v32 = vpop.f32.mrf.mxu2  ;;  %v313_v33 = vpop.f32.mrf.mxu3 }
  0xd3   :  { %v2876_v34 = vadd.f32 %v272_v32, %v2855_v12  ;;  %v2878_v35 = vadd.f32 %v313_v33, %v159_v14  ;;  %v193_v36 = vpop.f32.mrf.mxu0  ;;  %v234_v37 = vpop.f32.mrf.mxu1 }
  0xd4   :  { %v2880_v38 = vadd.f32 %v193_v36, %v156_v4  ;;  %v2882_v40 = vadd.f32 %v234_v37, %v157_v5 }
  0xd5   :  { %3669 = vst [vmem:[#allocation23_spill] sm:$0xff] %v2876_v34 }
  0xd6   :  { %3670 = vst [vmem:[#allocation24_spill] sm:$0xff] %v2878_v35  ;;  %v3097_v35 = vld [vmem:[#allocation11 + $0x20] sm:$0xff] }
  0xd7   :  { %3671 = vst [vmem:[#allocation25_spill] sm:$0xff] %v2880_v38  ;;  %v3090_v38 = vld [vmem:[#allocation11 + $0x50] sm:$0xff] }
  0xd8   :  { %3672 = vst [vmem:[#allocation26_spill] sm:$0xff] %v2882_v40  ;;  %v3088_v40 = vld [vmem:[#allocation11 + $0x48] sm:$0xff] }
  0xd9   :  { %3706 = vst [vmem:[#allocation60_spill] sm:$0xff] %v3088_v40 }
  0xda   :  { %v275_v41 = vpop.f32.mrf.mxu2  ;;  %v316_v42 = vpop.f32.mrf.mxu3 }
  0xdb   :  { %v2885_v43 = vadd.f32 %v275_v41, %v2855_v12  ;;  %v2887_v44 = vadd.f32 %v316_v42, %v159_v14  ;;  %v196_v45 = vpop.f32.mrf.mxu0  ;;  %v237_v46 = vpop.f32.mrf.mxu1  ;;  %v264_v41 = vadd.f32 %v2847_v6, %v2855_v12 }
  0xdc   :  { %v2889_v47 = vadd.f32 %v196_v45, %v156_v4  ;;  %v2891_v48 = vadd.f32 %v237_v46, %v157_v5 }
  0xdd   :  { %3673 = vst [vmem:[#allocation27_spill] sm:$0xff] %v2885_v43  ;;  %v3082_v43 = vld [vmem:[#allocation11 + $0x78] sm:$0xff] }
  0xde   :  { %3674 = vst [vmem:[#allocation28_spill] sm:$0xff] %v2887_v44 }
  0xdf   :  { %3675 = vst [vmem:[#allocation29_spill] sm:$0xff] %v2889_v47  ;;  %v3080_v47 = vld [vmem:[#allocation11 + $0x70] sm:$0xff] }
  0xe0   :  { %3676 = vst [vmem:[#allocation30_spill] sm:$0xff] %v2891_v48  ;;  %v3076_v48 = vld [vmem:[#allocation11 + $0x68] sm:$0xff] }
  0xe1   :  { %3702 = vst [vmem:[#allocation56_spill] sm:$0xff] %v3076_v48 }
  0xe2   :  { %v278_v49 = vpop.f32.mrf.mxu2  ;;  %v319_v50 = vpop.f32.mrf.mxu3  ;;  %3703 = vst [vmem:[#allocation57_spill] sm:$0xff] %v3080_v47 }
  0xe3   :  { %v2894_v51 = vadd.f32 %v278_v49, %v2855_v12  ;;  %v2896_v53 = vadd.f32 %v319_v50, %v159_v14  ;;  %v199_v54 = vpop.f32.mrf.mxu0  ;;  %v240_v55 = vpop.f32.mrf.mxu1  ;;  %3704 = vst [vmem:[#allocation58_spill] sm:$0xff] %v3082_v43 }
  0xe4   :  { %v2898_v56 = vadd.f32 %v199_v54, %v156_v4  ;;  %v2900_v57 = vadd.f32 %v240_v55, %v157_v5 }
  0xe5   :  { %3677 = vst [vmem:[#allocation31_spill] sm:$0xff] %v2894_v51 }
  0xe6   :  { %3678 = vst [vmem:[#allocation32_spill] sm:$0xff] %v2896_v53  ;;  %v3068_v53 = vld [vmem:[#allocation11 + $0x90] sm:$0xff] }
  0xe7   :  { %3679 = vst [vmem:[#allocation33_spill] sm:$0xff] %v2898_v56  ;;  %v3056_v56 = vld [vmem:[#allocation11 + $0xb0] sm:$0xff] }
  0xe8   :  { %3680 = vst [vmem:[#allocation34_spill] sm:$0xff] %v2900_v57  ;;  %v3054_v57 = vld [vmem:[#allocation11 + $0xa8] sm:$0xff] }
  0xea   :  { %v281_v58 = vpop.f32.mrf.mxu2  ;;  %v322_v59 = vpop.f32.mrf.mxu3 }
  0xeb   :  { %v2903_v60 = vadd.f32 %v281_v58, %v2855_v12  ;;  %v2905_v61 = vadd.f32 %v322_v59, %v159_v14  ;;  %v202_v62 = vpop.f32.mrf.mxu0  ;;  %v243_v63 = vpop.f32.mrf.mxu1 }
  0xec   :  { %v2907_v26 = vadd.f32 %v202_v62, %v156_v4  ;;  %v2909_v39 = vadd.f32 %v243_v63, %v157_v5 }
  0xed   :  { %3681 = vst [vmem:[#allocation35_spill] sm:$0xff] %v2903_v60  ;;  %v3048_v60 = vld [vmem:[#allocation11 + $0xd8] sm:$0xff] }
  0xee   :  { %3682 = vst [vmem:[#allocation36_spill] sm:$0xff] %v2905_v61  ;;  %v3052_v61 = vld [vmem:[#allocation11 + $0xa0] sm:$0xff] }
  0xef   :  { %3683 = vst [vmem:[#allocation37_spill] sm:$0xff] %v2907_v26 }
  0xf0   :  { %3684 = vst [vmem:[#allocation38_spill] sm:$0xff] %v2909_v39 }
  0xf2   :  { %v284_v0 = vpop.f32.mrf.mxu2  ;;  %v325_v3 = vpop.f32.mrf.mxu3 }
  0xf3   :  { %v2912_v8 = vadd.f32 %v284_v0, %v2855_v12  ;;  %v2914_v9 = vadd.f32 %v325_v3, %v159_v14  ;;  %v453_v15 = vpop.f32.mrf.mxu0  ;;  %v473_v16 = vpop.f32.mrf.mxu1 }
  0xf4   :  { %v516_v19 = vadd.f32 %v453_v15, %v182_v52  ;;  %v517_v20 = vadd.f32 %v473_v16, %v223_v13 }
  0xf5   :  { %3685 = vst [vmem:[#allocation39_spill] sm:$0xff] %v2912_v8  ;;  %v3040_v8 = vld [vmem:[#allocation11 + $0xc8] sm:$0xff] }
  0xf6   :  { %3686 = vst [vmem:[#allocation40_spill] sm:$0xff] %v2914_v9  ;;  %v2154_v23 = vmul.f32 -1.442695, %v516_v19  ;;  %v2155_v24 = vmul.f32 -1.442695, %v517_v20  ;;  %v3042_v9 = vld [vmem:[#allocation11 + $0xd0] sm:$0xff] }
  0xf8   :  { %2189 = vpow2.f32 %v2154_v23 }
  0xf9   :  { %2191 = vpow2.f32 %v2155_v24 }
  0xfa   :  { %v513_v29 = vpop.f32.mrf.mxu3  ;;  %v493_v36 = vpop.f32.mrf.mxu2 }
  0xfb   :  { %v519_v1 = vadd.f32 %v513_v29, %v305_v28  ;;  %v518_v46 = vadd.f32 %v493_v36, %v264_v41 }
  0xfd   :  { %v2156_v2 = vmul.f32 -1.442695, %v519_v1 }
  0xfe   :  { %v2190_v4 = vpop.eup %2189 }
  0xff   :  { %v2192_v5 = vpop.eup %2191  ;;  %v523_v32 = vadd.f32 1.0, %v2190_v4  ;;  %2193 = vpow2.f32 %v2156_v2 }
 0x100   :  { %v542_v33 = vadd.f32 1.0, %v2192_v5 }
 0x101   :  { %2195 = vrcp.f32 %v523_v32  ;;  %v535_v55 = vand.u32 2147483648, %v523_v32  ;;  %v533_v62 = vand.u32 2147483647, %v523_v32  ;;  %vm529_vm2 = vweird.f32 %v523_v32 }
 0x102   :  { %2197 = vrcp.f32 %v542_v33  ;;  %v554_v58 = vand.u32 2147483648, %v542_v33  ;;  %v552_v52 = vand.u32 2147483647, %v542_v33  ;;  %vm548_vm3 = vweird.f32 %v542_v33 }
 0x103   :  { %v536_v12 = vor.u32 1.1754944e-38, %v535_v55  ;;  %vm534_vm5 = vcmp.eq.f32.partialorder %v533_v62, 8.507059e+37 }
 0x104   :  { %v555_v15 = vor.u32 1.1754944e-38, %v554_v58  ;;  %vm553_vm7 = vcmp.eq.f32.partialorder %v552_v52, 8.507059e+37 }
 0x105   :  { %v2194_v37 = vpop.eup %2193 }
 0x106   :  { %v562_v42 = vadd.f32 1.0, %v2194_v37 }
 0x107   :  { %v2196_v45 = vpop.eup %2195 }
 0x108   :  { %v2198_v7 = vpop.eup %2197  ;;  %v525_v14 = vmul.f32 %v2196_v45, %v523_v32  ;;  %2199 = vrcp.f32 %v562_v42  ;;  %vm530_vm0 = vweird.f32 %v2196_v45  ;;  %v574_v32 = vand.u32 2147483648, %v562_v42 }
 0x109   :  { %v544_v49 = vmul.f32 %v2198_v7, %v542_v33  ;;  %2201 = vtanh.f32 %v518_v46  ;;  %vm549_vm1 = vweird.f32 %v2198_v7  ;;  %vm531_vm4 = vmor %vm529_vm2, %vm530_vm0  ;;  %vm568_vm9 = vweird.f32 %v562_v42 }
 0x10a   :  { %v526_v50 = vsub.f32 1.0, %v525_v14  ;;  %vm550_vm6 = vmor %vm548_vm3, %vm549_vm1  ;;  %v572_v33 = vand.u32 2147483647, %v562_v42  ;;  %v575_v37 = vor.u32 1.1754944e-38, %v574_v32 }
 0x10b   :  { %v545_v54 = vsub.f32 1.0, %v544_v49 }
 0x10c   :  { %v527_v59 = vmul.f32 %v2196_v45, %v526_v50  ;;  %vm573_vm11 = vcmp.eq.f32.partialorder %v572_v33, 8.507059e+37 }
 0x10d   :  { %v546_v63 = vmul.f32 %v2198_v7, %v545_v54 }
 0x10e   :  { %v2200_v13 = vpop.eup %2199  ;;  %v528_v6 = vadd.f32 %v2196_v45, %v527_v59 }
 0x10f   :  { %v547_v0 = vadd.f32 %v2198_v7, %v546_v63  ;;  %v564_v3 = vmul.f32 %v2200_v13, %v562_v42  ;;  %v2202_v19 = vpop.eup %2201  ;;  %vm569_vm8 = vweird.f32 %v2200_v13 }
 0x110   :  { %v532_v16 = vsel %vm531_vm4, %v2196_v45, %v528_v6  ;;  %vm570_vm10 = vmor %vm568_vm9, %vm569_vm8 }
 0x111   :  { %v537_v20 = vsel %vm534_vm5, %v536_v12, %v532_v16  ;;  %v551_v23 = vsel %vm550_vm6, %v2198_v7, %v547_v0  ;;  %v565_v24 = vsub.f32 1.0, %v564_v3 }
 0x112   :  { %v556_v28 = vsel %vm553_vm7, %v555_v15, %v551_v23  ;;  %v579_v29 = vmul.f32 %v2202_v19, %v537_v20 }
 0x113   :  { %v578_v1 = vmul.f32 0.0, %v556_v28  ;;  %v566_v2 = vmul.f32 %v2200_v13, %v565_v24 }
 0x115   :  { %v2919_v4 = vadd.f32 %v579_v29, %v578_v1  ;;  %v567_v5 = vadd.f32 %v2200_v13, %v566_v2 }
 0x117   :  { %2203 = vtanh.f32 %v2919_v4  ;;  %v571_v36 = vsel %vm570_vm10, %v2200_v13, %v567_v5 }
 0x118   :  { %v576_v45 = vsel %vm573_vm11, %v575_v37, %v571_v36 }
 0x11d   :  { %v2204_v41 = vpop.eup %2203 }
 0x11e   :  { %v582_v46 = vmul.f32 %v2204_v41, %v576_v45 }
 0x120   :  { %583 = vst [vmem:[#allocation13] sm:$0xff] %v582_v46  ;;  %669 = vmatmul.f32.vlgmr.msra.gmra.mxu0 %v582_v46  ;;  %689 = vmatmul.f32.vlgmr.msra.gmra.mxu1 %v582_v46 }
 0x121   :  { %709 = vmatmul.f32.vlgmr.msra.gmra.mxu2 %v582_v46  ;;  %729 = vmatmul.f32.vlgmr.msra.gmra.mxu3 %v582_v46 }
 0x19d   :  { %v670_v7 = vpop.f32.mrf.mxu0  ;;  %v690_v14 = vpop.f32.mrf.mxu1 }
 0x19e   :  { %v733_v49 = vadd.f32 %v670_v7, %v2851_v10  ;;  %v734_v50 = vadd.f32 %v690_v14, %v2853_v11 }
 0x1a0   :  { %v2157_v54 = vmul.f32 -1.442695, %v733_v49  ;;  %v2158_v42 = vmul.f32 -1.442695, %v734_v50 }
 0x1a2   :  { %2205 = vpow2.f32 %v2157_v54 }
 0x1a3   :  { %2207 = vpow2.f32 %v2158_v42 }
 0x1a4   :  { %v730_v55 = vpop.f32.mrf.mxu3  ;;  %v710_v6 = vpop.f32.mrf.mxu2 }
 0x1a5   :  { %v736_v58 = vadd.f32 %v730_v55, %v2860_v18  ;;  %v735_v11 = vadd.f32 %v710_v6, %v2858_v17 }
 0x1a7   :  { %v2159_v59 = vmul.f32 -1.442695, %v736_v58 }
 0x1a8   :  { %v2206_v62 = vpop.eup %2205 }
 0x1a9   :  { %v2208_v63 = vpop.eup %2207  ;;  %v740_v52 = vadd.f32 1.0, %v2206_v62  ;;  %2209 = vpow2.f32 %v2159_v59 }
 0x1aa   :  { %v759_v13 = vadd.f32 1.0, %v2208_v63 }
 0x1ab   :  { %2211 = vrcp.f32 %v740_v52  ;;  %v752_v20 = vand.u32 2147483648, %v740_v52  ;;  %v750_v28 = vand.u32 2147483647, %v740_v52  ;;  %vm746_vm14 = vweird.f32 %v740_v52 }
 0x1ac   :  { %2213 = vrcp.f32 %v759_v13  ;;  %v771_v23 = vand.u32 2147483648, %v759_v13  ;;  %v769_v1 = vand.u32 2147483647, %v759_v13  ;;  %vm765_vm15 = vweird.f32 %v759_v13 }
 0x1ad   :  { %v753_v17 = vor.u32 1.1754944e-38, %v752_v20  ;;  %vm751_vm2 = vcmp.eq.f32.partialorder %v750_v28, 8.507059e+37  ;;  %v2958_v20 = vld [vmem:[#allocation11 + $0x1b0] sm:$0xff]  ;;  %v2968_v28 = vld [vmem:[#allocation11 + $0x188] sm:$0xff] }
 0x1ae   :  { %v772_v36 = vor.u32 1.1754944e-38, %v771_v23  ;;  %vm770_vm3 = vcmp.eq.f32.partialorder %v769_v1, 8.507059e+37  ;;  %v2962_v23 = vld [vmem:[#allocation11 + $0x1b8] sm:$0xff]  ;;  %3693 = vst [vmem:[#allocation47_spill] sm:$0xff] %v2968_v28 }
 0x1af   :  { %v2210_v12 = vpop.eup %2209  ;;  %3691 = vst [vmem:[#allocation45_spill] sm:$0xff] %v2962_v23  ;;  %v2974_v1 = vld [vmem:[#allocation11 + $0x198] sm:$0xff] }
 0x1b0   :  { %v779_v10 = vadd.f32 1.0, %v2210_v12  ;;  %v2932_v12 = vld [vmem:[#allocation11 + $0x1e8] sm:$0xff] }
 0x1b1   :  { %v2212_v0 = vpop.eup %2211  ;;  %3687 = vst [vmem:[#allocation41_spill] sm:$0xff] %v2932_v12  ;;  %1109 = vmatpush.msra.mxu1 %v2932_v12 }
 0x1b2   :  { %v2214_v3 = vpop.eup %2213  ;;  %v742_v15 = vmul.f32 %v2212_v0, %v740_v52  ;;  %2215 = vrcp.f32 %v779_v10  ;;  %vm747_vm12 = vweird.f32 %v2212_v0  ;;  %v791_v58 = vand.u32 2147483648, %v779_v10 }
 0x1b3   :  { %v761_v16 = vmul.f32 %v2214_v3, %v759_v13  ;;  %2217 = vtanh.f32 %v735_v11  ;;  %vm766_vm13 = vweird.f32 %v2214_v3  ;;  %vm748_vm0 = vmor %vm746_vm14, %vm747_vm12  ;;  %vm785_vm5 = vweird.f32 %v779_v10  ;;  %v2942_v11 = vld [vmem:[#allocation11 + $0x1c0] sm:$0xff] }
 0x1b4   :  { %v743_v19 = vsub.f32 1.0, %v742_v15  ;;  %vm767_vm1 = vmor %vm765_vm15, %vm766_vm13  ;;  %v789_v59 = vand.u32 2147483647, %v779_v10  ;;  %v792_v63 = vor.u32 1.1754944e-38, %v791_v58  ;;  %3689 = vst [vmem:[#allocation43_spill] sm:$0xff] %v2942_v11  ;;  %v2946_v15 = vld [vmem:[#allocation11 + $0x1d0] sm:$0xff] }
 0x1b5   :  { %v762_v18 = vsub.f32 1.0, %v761_v16  ;;  %v2950_v16 = vld [vmem:[#allocation11 + $0x1d8] sm:$0xff]  ;;  %v3026_v58 = vld [vmem:[#allocation11 + $0xe0] sm:$0xff] }
 0x1b6   :  { %v744_v24 = vmul.f32 %v2212_v0, %v743_v19  ;;  %vm790_vm7 = vcmp.eq.f32.partialorder %v789_v59, 8.507059e+37  ;;  %v2954_v19 = vld [vmem:[#allocation11 + $0x1a0] sm:$0xff]  ;;  %v3028_v59 = vld [vmem:[#allocation11 + $0xe8] sm:$0xff] }
 0x1b7   :  { %v763_v29 = vmul.f32 %v2214_v3, %v762_v18  ;;  %v2956_v18 = vld [vmem:[#allocation11 + $0x1a8] sm:$0xff] }
 0x1b8   :  { %v2216_v2 = vpop.eup %2215  ;;  %v745_v5 = vadd.f32 %v2212_v0, %v744_v24  ;;  %v2966_v24 = vld [vmem:[#allocation11 + $0x180] sm:$0xff] }
 0x1b9   :  { %v764_v32 = vadd.f32 %v2214_v3, %v763_v29  ;;  %v781_v33 = vmul.f32 %v2216_v2, %v779_v10  ;;  %v2218_v41 = vpop.eup %2217  ;;  %vm786_vm4 = vweird.f32 %v2216_v2  ;;  %v2938_v10 = vld [vmem:[#allocation11 + $0x1f8] sm:$0xff]  ;;  %3692 = vst [vmem:[#allocation46_spill] sm:$0xff] %v2966_v24  ;;  %v2970_v29 = vld [vmem:[#allocation11 + $0x190] sm:$0xff] }
 0x1ba   :  { %v749_v37 = vsel %vm748_vm0, %v2212_v0, %v745_v5  ;;  %vm787_vm6 = vmor %vm785_vm5, %vm786_vm4  ;;  %v2934_v0 = vld [vmem:[#allocation11 + $0x1f0] sm:$0xff]  ;;  %1149 = vmatpush.msra.mxu3 %v2938_v10  ;;  %3694 = vst [vmem:[#allocation48_spill] sm:$0xff] %v2970_v29  ;;  %v2980_v5 = vld [vmem:[#allocation11 + $0x168] sm:$0xff] }
 0x1bb   :  { %v754_v45 = vsel %vm751_vm2, %v753_v17, %v749_v37  ;;  %v768_v46 = vsel %vm767_vm1, %v2214_v3, %v764_v32  ;;  %v782_v7 = vsub.f32 1.0, %v781_v33  ;;  %3688 = vst [vmem:[#allocation42_spill] sm:$0xff] %v2934_v0  ;;  %1129 = vmatpush.msra.mxu2 %v2934_v0  ;;  %v2944_v3 = vld [vmem:[#allocation11 + $0x1c8] sm:$0xff]  ;;  %v2982_v17 = vld [vmem:[#allocation11 + $0x170] sm:$0xff]  ;;  %v2986_v32 = vld [vmem:[#allocation11 + $0x178] sm:$0xff] }
 0x1bc   :  { %v773_v14 = vsel %vm770_vm3, %v772_v36, %v768_v46  ;;  %v796_v49 = vmul.f32 %v2218_v41, %v754_v45  ;;  %3690 = vst [vmem:[#allocation44_spill] sm:$0xff] %v2944_v3  ;;  %1110 = vmatpush.msra.mxu1 %v2944_v3  ;;  %1150 = vmatpush.msra.mxu3 %v2950_v16  ;;  %v2990_v33 = vld [vmem:[#allocation11 + $0x140] sm:$0xff]  ;;  %v2992_v36 = vld [vmem:[#allocation11 + $0x148] sm:$0xff]  ;;  %v2994_v37 = vld [vmem:[#allocation11 + $0x150] sm:$0xff] }
 0x1bd   :  { %v795_v50 = vmul.f32 %v773_v14, %v2919_v4  ;;  %v783_v54 = vmul.f32 %v2216_v2, %v782_v7  ;;  %v2930_v4 = vld [vmem:[#allocation11 + $0x1e0] sm:$0xff]  ;;  %1130 = vmatpush.msra.mxu2 %v2946_v15  ;;  %3695 = vst [vmem:[#allocation49_spill] sm:$0xff] %v2986_v32  ;;  %v2998_v41 = vld [vmem:[#allocation11 + $0x158] sm:$0xff]  ;;  %v3004_v46 = vld [vmem:[#allocation11 + $0x128] sm:$0xff] }
 0x1be   :  { %1089 = vmatpush.msra.mxu0 %v2930_v4  ;;  %1111 = vmatpush.msra.mxu1 %v2956_v18  ;;  %3696 = vst [vmem:[#allocation50_spill] sm:$0xff] %v2994_v37  ;;  %v3002_v45 = vld [vmem:[#allocation11 + $0x120] sm:$0xff]  ;;  %v3006_v7 = vld [vmem:[#allocation11 + $0x130] sm:$0xff]  ;;  %v3010_v14 = vld [vmem:[#allocation11 + $0x138] sm:$0xff] }
 0x1bf   :  { %v2927_v42 = vadd.f32 %v796_v49, %v795_v50  ;;  %v784_v55 = vadd.f32 %v2216_v2, %v783_v54  ;;  %1131 = vmatpush.msra.mxu2 %v2958_v20  ;;  %1151 = vmatpush.msra.mxu3 %v2962_v23  ;;  %3697 = vst [vmem:[#allocation51_spill] sm:$0xff] %v3004_v46  ;;  %v3014_v49 = vld [vmem:[#allocation11 + $0x100] sm:$0xff]  ;;  %v3016_v50 = vld [vmem:[#allocation11 + $0x108] sm:$0xff]  ;;  %v3018_v54 = vld [vmem:[#allocation11 + $0x110] sm:$0xff] }
 0x1c0   :  { %1090 = vmatpush.msra.mxu0 %v2942_v11  ;;  %1112 = vmatpush.msra.mxu1 %v2968_v28  ;;  %3698 = vst [vmem:[#allocation52_spill] sm:$0xff] %v3006_v7 }
 0x1c1   :  { %2219 = vtanh.f32 %v2927_v42  ;;  %v788_v62 = vsel %vm787_vm6, %v2216_v2, %v784_v55  ;;  %1132 = vmatpush.msra.mxu2 %v2970_v29  ;;  %1152 = vmatpush.msra.mxu3 %v2974_v1  ;;  %v2978_v2 = vld [vmem:[#allocation11 + $0x160] sm:$0xff]  ;;  %3699 = vst [vmem:[#allocation53_spill] sm:$0xff] %v3010_v14  ;;  %v3022_v55 = vld [vmem:[#allocation11 + $0x118] sm:$0xff] }
 0x1c2   :  { %v793_v13 = vsel %vm790_vm7, %v792_v63, %v788_v62  ;;  %1091 = vmatpush.msra.mxu0 %v2954_v19  ;;  %1113 = vmatpush.msra.mxu1 %v2980_v5  ;;  %v3030_v62 = vld [vmem:[#allocation11 + $0xf0] sm:$0xff]  ;;  %v3034_v63 = vld [vmem:[#allocation11 + $0xf8] sm:$0xff] }
 0x1c3   :  { %1133 = vmatpush.msra.mxu2 %v2982_v17  ;;  %1153 = vmatpush.msra.mxu3 %v2986_v32 }
 0x1c4   :  { %1092 = vmatpush.msra.mxu0 %v2966_v24  ;;  %1114 = vmatpush.msra.mxu1 %v2992_v36 }
 0x1c5   :  { %1134 = vmatpush.msra.mxu2 %v2994_v37  ;;  %1154 = vmatpush.msra.mxu3 %v2998_v41 }
 0x1c6   :  { %1093 = vmatpush.msra.mxu0 %v2978_v2  ;;  %1115 = vmatpush.msra.mxu1 %v3004_v46 }
 0x1c7   :  { %v2220_v52 = vpop.eup %2219  ;;  %1135 = vmatpush.msra.mxu2 %v3006_v7  ;;  %1155 = vmatpush.msra.mxu3 %v3010_v14 }
 0x1c8   :  { %v799_v6 = vmul.f32 %v2220_v52, %v793_v13  ;;  %1094 = vmatpush.msra.mxu0 %v2990_v33  ;;  %1116 = vmatpush.msra.mxu1 %v3016_v50 }
 0x1c9   :  { %1136 = vmatpush.msra.mxu2 %v3018_v54  ;;  %1156 = vmatpush.msra.mxu3 %v3022_v55 }
 0x1ca   :  { %801 = vst [vmem:[#allocation13 + $0x8] sm:$0xff] %v799_v6  ;;  %887 = vmatmul.f32.vlgmr.msrb.gmra.mxu0 %v799_v6  ;;  %907 = vmatmul.f32.vlgmr.msrb.gmra.mxu1 %v799_v6 }
 0x1cb   :  { %927 = vmatmul.f32.vlgmr.msrb.gmra.mxu2 %v799_v6  ;;  %947 = vmatmul.f32.vlgmr.msrb.gmra.mxu3 %v799_v6  ;;  %v3038_v6 = vld [vmem:[#allocation11 + $0xc0] sm:$0xff] }
 0x1cc   :  { %1095 = vmatpush.msra.mxu0 %v3002_v45  ;;  %1117 = vmatpush.msra.mxu1 %v3028_v59 }
 0x1cd   :  { %1137 = vmatpush.msra.mxu2 %v3030_v62  ;;  %1157 = vmatpush.msra.mxu3 %v3034_v63 }
 0x1ce   :  { %1096 = vmatpush.msra.mxu0 %v3014_v49  ;;  %1118 = vmatpush.msra.mxu1 %v3040_v8 }
 0x1cf   :  { %1138 = vmatpush.msra.mxu2 %v3042_v9  ;;  %1158 = vmatpush.msra.mxu3 %v3048_v60 }
 0x1d0   :  { %1097 = vmatpush.msra.mxu0 %v3026_v58  ;;  %1119 = vmatpush.msra.mxu1 %v3054_v57 }
 0x1d1   :  { %1139 = vmatpush.msra.mxu2 %v3056_v56 }
 0x1d2   :  { %1098 = vmatpush.msra.mxu0 %v3038_v6 }
 0x1d3   :  { %1140 = vmatpush.msra.mxu2 %v3068_v53 }
 0x1d4   :  { %1099 = vmatpush.msra.mxu0 %v3052_v61 }
 0x1d5   :  { %1141 = vmatpush.msra.mxu2 %v3080_v47 }
 0x1d7   :  { %1142 = vmatpush.msra.mxu2 %v3090_v38 }
 0x1d9   :  { %1143 = vmatpush.msra.mxu2 %v3103_v30 }
 0x247   :  { %v888_v52 = vpop.f32.mrf.mxu0  ;;  %v908_v13 = vpop.f32.mrf.mxu1 }
 0x248   :  { %v951_v39 = vadd.f32 %v888_v52, %v2862_v21  ;;  %v952_v26 = vadd.f32 %v908_v13, %v2864_v22  ;;  %v3060_v22 = vld [vmem:[#allocation11 + $0xb8] sm:$0xff]  ;;  %v3064_v52 = vld [vmem:[#allocation11 + $0x80] sm:$0xff]  ;;  %v3066_v13 = vld [vmem:[#allocation11 + $0x88] sm:$0xff] }
 0x249   :  { %1159 = vmatpush.msra.mxu3 %v3060_v22  ;;  %1100 = vmatpush.msra.mxu0 %v3064_v52 }
 0x24a   :  { %v2160_v51 = vmul.f32 -1.442695, %v951_v39  ;;  %v2161_v21 = vmul.f32 -1.442695, %v952_v26  ;;  %1120 = vmatpush.msra.mxu1 %v3066_v13  ;;  %v3072_v26 = vld [vmem:[#allocation11 + $0x98] sm:$0xff]  ;;  %v3074_v39 = vld [vmem:[#allocation11 + $0x60] sm:$0xff] }
 0x24b   :  { %3700 = vst [vmem:[#allocation54_spill] sm:$0xff] %v3072_v26  ;;  %1160 = vmatpush.msra.mxu3 %v3072_v26  ;;  %1101 = vmatpush.msra.mxu0 %v3074_v39 }
 0x24c   :  { %2221 = vpow2.f32 %v2160_v51  ;;  %3701 = vst [vmem:[#allocation55_spill] sm:$0xff] %v3074_v39  ;;  %v3084_v51 = vld [vmem:[#allocation11 + $0x40] sm:$0xff]  ;;  %1121 = vmatpush.msra.mxu1 %v3076_v48  ;;  %v3105_v48 = vld [vmem:[#allocation11 + $0x38] sm:$0xff] }
 0x24d   :  { %2223 = vpow2.f32 %v2161_v21  ;;  %3705 = vst [vmem:[#allocation59_spill] sm:$0xff] %v3084_v51  ;;  %v3092_v21 = vld [vmem:[#allocation11 + $0x58] sm:$0xff]  ;;  %1161 = vmatpush.msra.mxu3 %v3082_v43  ;;  %1102 = vmatpush.msra.mxu0 %v3084_v51  ;;  %v3115_v51 = vld [vmem:[#allocation11 + $0x10] sm:$0xff] }
 0x24e   :  { %v948_v44 = vpop.f32.mrf.mxu3  ;;  %1122 = vmatpush.msra.mxu1 %v3088_v40  ;;  %v3117_v40 = vld [vmem:[#allocation11 + $0x18] sm:$0xff]  ;;  %1144 = vmatpush.msra.mxu2 %v3115_v51 }
 0x24f   :  { %v954_v34 = vadd.f32 %v948_v44, %v2869_v27  ;;  %1162 = vmatpush.msra.mxu3 %v3092_v21  ;;  %v3109_v27 = vld [vmem:[#allocation11] sm:$0xff]  ;;  %v3111_v44 = vld [vmem:[#allocation11 + $0x8] sm:$0xff]  ;;  %1103 = vmatpush.msra.mxu0 %v3097_v35 }
 0x250   :  { %1123 = vmatpush.msra.mxu1 %v3099_v31  ;;  %1347 = vmatpush.msrb.mxu2 %v2934_v0 }
 0x251   :  { %v2162_v39 = vmul.f32 -1.442695, %v954_v34  ;;  %1163 = vmatpush.msra.mxu3 %v3105_v48  ;;  %1104 = vmatpush.msra.mxu0 %v3109_v27 }
 0x252   :  { %v2222_v43 = vpop.eup %2221  ;;  %1124 = vmatpush.msra.mxu1 %v3111_v44  ;;  %1348 = vmatpush.msrb.mxu2 %v2946_v15 }
 0x253   :  { %v2224_v47 = vpop.eup %2223  ;;  %v3119_v26 = vadd.f32 1.0, %v2222_v43  ;;  %2225 = vpow2.f32 %v2162_v39  ;;  %1164 = vmatpush.msra.mxu3 %v3117_v40  ;;  %1307 = vmatpush.msrb.mxu0 %v2930_v4  ;;  %v928_v43 = vpop.f32.mrf.mxu2 }
 0x254   :  { %v3123_v34 = vadd.f32 1.0, %v2224_v47  ;;  %1327 = vmatpush.msrb.mxu1 %v2932_v12  ;;  %v953_v0 = vadd.f32 %v928_v43, %v2867_v25  ;;  %1349 = vmatpush.msrb.mxu2 %v2958_v20 }
 0x255   :  { %2227 = vrcp.f32 %v3119_v26  ;;  %1367 = vmatpush.msrb.mxu3 %v2938_v10  ;;  %1308 = vmatpush.msrb.mxu0 %v2942_v11  ;;  %vm964_vm10 = vweird.f32 %v3119_v26 }
 0x256   :  { %2229 = vrcp.f32 %v3123_v34  ;;  %1328 = vmatpush.msrb.mxu1 %v2944_v3  ;;  %1350 = vmatpush.msrb.mxu2 %v2970_v29  ;;  %v968_v29 = vand.u32 2147483647, %v3119_v26  ;;  %vm983_vm11 = vweird.f32 %v3123_v34 }
 0x257   :  { %1368 = vmatpush.msrb.mxu3 %v2950_v16  ;;  %1309 = vmatpush.msrb.mxu0 %v2954_v19 }
 0x258   :  { %1329 = vmatpush.msrb.mxu1 %v2956_v18  ;;  %1351 = vmatpush.msrb.mxu2 %v2982_v17  ;;  %vm969_vm14 = vcmp.eq.f32.partialorder %v968_v29, 8.507059e+37 }
 0x259   :  { %v2226_v47 = vpop.eup %2225  ;;  %1369 = vmatpush.msrb.mxu3 %v2962_v23  ;;  %1310 = vmatpush.msrb.mxu0 %v2966_v24  ;;  %v970_v23 = vand.u32 2147483648, %v3119_v26 }
 0x25a   :  { %v3139_v39 = vadd.f32 1.0, %v2226_v47  ;;  %1330 = vmatpush.msrb.mxu1 %v2968_v28  ;;  %v989_v28 = vand.u32 2147483648, %v3123_v34  ;;  %1352 = vmatpush.msrb.mxu2 %v2994_v37 }
 0x25b   :  { %v2228_v12 = vpop.eup %2227  ;;  %1370 = vmatpush.msrb.mxu3 %v2974_v1  ;;  %1311 = vmatpush.msrb.mxu0 %v2978_v2 }
 0x25c   :  { %v2230_v11 = vpop.eup %2229  ;;  %v960_v3 = vmul.f32 %v2228_v12, %v3119_v26  ;;  %2231 = vrcp.f32 %v3139_v39  ;;  %1331 = vmatpush.msrb.mxu1 %v2980_v5  ;;  %vm965_vm8 = vweird.f32 %v2228_v12  ;;  %1353 = vmatpush.msrb.mxu2 %v3006_v7  ;;  %v1009_v29 = vand.u32 2147483648, %v3139_v39 }
 0x25d   :  { %v979_v47 = vmul.f32 %v2230_v11, %v3123_v34  ;;  %2233 = vtanh.f32 %v953_v0  ;;  %1371 = vmatpush.msrb.mxu3 %v2986_v32  ;;  %1312 = vmatpush.msrb.mxu0 %v2990_v33  ;;  %vm984_vm9 = vweird.f32 %v2230_v11  ;;  %vm966_vm12 = vmor %vm964_vm10, %vm965_vm8  ;;  %vm1003_vm1 = vweird.f32 %v3139_v39 }
 0x25e   :  { %v961_v25 = vsub.f32 1.0, %v960_v3  ;;  %1332 = vmatpush.msrb.mxu1 %v2992_v36  ;;  %vm985_vm13 = vmor %vm983_vm11, %vm984_vm9  ;;  %1354 = vmatpush.msrb.mxu2 %v3018_v54 }
 0x25f   :  { %v980_v43 = vsub.f32 1.0, %v979_v47  ;;  %v987_v47 = vand.u32 2147483647, %v3123_v34  ;;  %1372 = vmatpush.msrb.mxu3 %v2998_v41  ;;  %1313 = vmatpush.msrb.mxu0 %v3002_v45 }
 0x260   :  { %v962_v24 = vmul.f32 %v2228_v12, %v961_v25  ;;  %1333 = vmatpush.msrb.mxu1 %v3004_v46  ;;  %v971_v25 = vor.u32 1.1754944e-38, %v970_v23  ;;  %1355 = vmatpush.msrb.mxu2 %v3030_v62 }
 0x261   :  { %v981_v3 = vmul.f32 %v2230_v11, %v980_v43  ;;  %1373 = vmatpush.msrb.mxu3 %v3010_v14  ;;  %1314 = vmatpush.msrb.mxu0 %v3014_v49  ;;  %vm988_vm15 = vcmp.eq.f32.partialorder %v987_v47, 8.507059e+37  ;;  %v1010_v47 = vor.u32 1.1754944e-38, %v1009_v29  ;;  %v3720_v29 = vld [vmem:[#allocation47_spill] sm:$0xff] }
 0x262   :  { %v3165_v0 = vpop.eup %2231  ;;  %v963_v32 = vadd.f32 %v2228_v12, %v962_v24  ;;  %v990_v24 = vor.u32 1.1754944e-38, %v989_v28  ;;  %1334 = vmatpush.msrb.mxu1 %v3016_v50  ;;  %1356 = vmatpush.msrb.mxu2 %v3042_v9 }
 0x263   :  { %v982_v43 = vadd.f32 %v2230_v11, %v981_v3  ;;  %v999_v37 = vmul.f32 %v3165_v0, %v3139_v39  ;;  %v2234_v34 = vpop.eup %2233  ;;  %1374 = vmatpush.msrb.mxu3 %v3022_v55  ;;  %1315 = vmatpush.msrb.mxu0 %v3026_v58  ;;  %vm1004_vm0 = vweird.f32 %v3165_v0 }
 0x264   :  { %v967_v26 = vsel %vm966_vm12, %v2228_v12, %v963_v32  ;;  %1335 = vmatpush.msrb.mxu1 %v3028_v59  ;;  %1357 = vmatpush.msrb.mxu2 %v3056_v56  ;;  %v1007_v32 = vand.u32 2147483647, %v3139_v39  ;;  %vm1005_vm2 = vmor %vm1003_vm1, %vm1004_vm0  ;;  %v3712_v39 = vld [vmem:[#allocation59_spill] sm:$0xff] }
 0x265   :  { %v972_v46 = vsel %vm969_vm14, %v971_v25, %v967_v26  ;;  %v986_v23 = vsel %vm985_vm13, %v2230_v11, %v982_v43  ;;  %v1000_v3 = vsub.f32 1.0, %v999_v37  ;;  %1375 = vmatpush.msrb.mxu3 %v3034_v63  ;;  %1316 = vmatpush.msrb.mxu0 %v3038_v6  ;;  %v3707_v37 = vld [vmem:[#allocation54_spill] sm:$0xff]  ;;  %v3710_v25 = vld [vmem:[#allocation57_spill] sm:$0xff] }
 0x266   :  { %v991_v7 = vsel %vm988_vm15, %v990_v24, %v986_v23  ;;  %v1014_v14 = vmul.f32 %v2234_v34, %v972_v46  ;;  %1336 = vmatpush.msrb.mxu1 %v3040_v8  ;;  %1358 = vmatpush.msrb.mxu2 %v3068_v53  ;;  %v3711_v43 = vld [vmem:[#allocation58_spill] sm:$0xff]  ;;  %vm1008_vm3 = vcmp.eq.f32.partialorder %v1007_v32, 8.507059e+37  ;;  %v3713_v24 = vld [vmem:[#allocation60_spill] sm:$0xff]  ;;  %v3714_v23 = vld [vmem:[#allocation41_spill] sm:$0xff] }
 0x267   :  { %v1013_v12 = vmul.f32 %v991_v7, %v2927_v42  ;;  %v1001_v28 = vmul.f32 %v3165_v0, %v1000_v3  ;;  %1376 = vmatpush.msrb.mxu3 %v3048_v60  ;;  %1317 = vmatpush.msrb.mxu0 %v3052_v61  ;;  %v3708_v7 = vld [vmem:[#allocation55_spill] sm:$0xff]  ;;  %v3715_v3 = vld [vmem:[#allocation42_spill] sm:$0xff] }
 0x268   :  { %1337 = vmatpush.msrb.mxu1 %v3054_v57  ;;  %1359 = vmatpush.msrb.mxu2 %v3710_v25 }
 0x269   :  { %v3189_v11 = vadd.f32 %v1014_v14, %v1013_v12  ;;  %v1002_v42 = vadd.f32 %v3165_v0, %v1001_v28  ;;  %1377 = vmatpush.msrb.mxu3 %v3060_v22  ;;  %1318 = vmatpush.msrb.mxu0 %v3064_v52  ;;  %v3709_v14 = vld [vmem:[#allocation56_spill] sm:$0xff]  ;;  %v3716_v12 = vld [vmem:[#allocation43_spill] sm:$0xff] }
 0x26a   :  { %1338 = vmatpush.msrb.mxu1 %v3066_v13  ;;  %1360 = vmatpush.msrb.mxu2 %v3090_v38  ;;  %v3717_v28 = vld [vmem:[#allocation44_spill] sm:$0xff] }
 0x26b   :  { %2235 = vtanh.f32 %v3189_v11  ;;  %1378 = vmatpush.msrb.mxu3 %v3707_v37  ;;  %v1006_v46 = vsel %vm1005_vm2, %v3165_v0, %v1002_v42  ;;  %1319 = vmatpush.msrb.mxu0 %v3708_v7  ;;  %v3719_v42 = vld [vmem:[#allocation46_spill] sm:$0xff] }
 0x26c   :  { %1339 = vmatpush.msrb.mxu1 %v3709_v14  ;;  %v1011_v34 = vsel %vm1008_vm3, %v1010_v47, %v1006_v46  ;;  %1361 = vmatpush.msrb.mxu2 %v3103_v30 }
 0x26d   :  { %1379 = vmatpush.msrb.mxu3 %v3711_v43  ;;  %1320 = vmatpush.msrb.mxu0 %v3712_v39 }
 0x26e   :  { %1340 = vmatpush.msrb.mxu1 %v3713_v24  ;;  %1362 = vmatpush.msrb.mxu2 %v3115_v51 }
 0x26f   :  { %1380 = vmatpush.msrb.mxu3 %v3092_v21  ;;  %1321 = vmatpush.msrb.mxu0 %v3097_v35 }
 0x270   :  { %1341 = vmatpush.msrb.mxu1 %v3099_v31 }
 0x271   :  { %v2236_v26 = vpop.eup %2235  ;;  %1381 = vmatpush.msrb.mxu3 %v3105_v48  ;;  %1322 = vmatpush.msrb.mxu0 %v3109_v27 }
 0x272   :  { %v1017_v0 = vmul.f32 %v2236_v26, %v1011_v34  ;;  %1342 = vmatpush.msrb.mxu1 %v3111_v44 }
 0x273   :  { %1382 = vmatpush.msrb.mxu3 %v3117_v40 }
 0x274   :  { %1019 = vst [vmem:[#allocation13 + $0x10] sm:$0xff] %v1017_v0  ;;  %1105 = vmatmul.f32.vlgmr.msra.gmra.mxu0 %v1017_v0  ;;  %1125 = vmatmul.f32.vlgmr.msra.gmra.mxu1 %v1017_v0 }
 0x275   :  { %1145 = vmatmul.f32.vlgmr.msra.gmra.mxu2 %v1017_v0  ;;  %1165 = vmatmul.f32.vlgmr.msra.gmra.mxu3 %v1017_v0 }
 0x276   :  { %1525 = vmatpush.msra.mxu0 %v2930_v4  ;;  %1545 = vmatpush.msra.mxu1 %v3714_v23  ;;  %v3718_v4 = vld [vmem:[#allocation45_spill] sm:$0xff] }
 0x277   :  { %1565 = vmatpush.msra.mxu2 %v3715_v3  ;;  %1585 = vmatpush.msra.mxu3 %v2938_v10  ;;  %v3721_v10 = vld [vmem:[#allocation48_spill] sm:$0xff] }
 0x278   :  { %1526 = vmatpush.msra.mxu0 %v3716_v12  ;;  %1546 = vmatpush.msra.mxu1 %v3717_v28 }
 0x279   :  { %1566 = vmatpush.msra.mxu2 %v2946_v15  ;;  %1586 = vmatpush.msra.mxu3 %v2950_v16  ;;  %v3722_v15 = vld [vmem:[#allocation49_spill] sm:$0xff]  ;;  %v3723_v16 = vld [vmem:[#allocation50_spill] sm:$0xff] }
 0x27a   :  { %1527 = vmatpush.msra.mxu0 %v2954_v19  ;;  %1547 = vmatpush.msra.mxu1 %v2956_v18  ;;  %v3724_v19 = vld [vmem:[#allocation51_spill] sm:$0xff]  ;;  %v3725_v18 = vld [vmem:[#allocation52_spill] sm:$0xff] }
 0x27b   :  { %1567 = vmatpush.msra.mxu2 %v2958_v20  ;;  %1587 = vmatpush.msra.mxu3 %v3718_v4  ;;  %v3726_v20 = vld [vmem:[#allocation53_spill] sm:$0xff] }
 0x27c   :  { %1528 = vmatpush.msra.mxu0 %v3719_v42  ;;  %1548 = vmatpush.msra.mxu1 %v3720_v29 }
 0x27d   :  { %1568 = vmatpush.msra.mxu2 %v3721_v10  ;;  %1588 = vmatpush.msra.mxu3 %v2974_v1 }
 0x27e   :  { %1529 = vmatpush.msra.mxu0 %v2978_v2  ;;  %1549 = vmatpush.msra.mxu1 %v2980_v5 }
 0x27f   :  { %1569 = vmatpush.msra.mxu2 %v2982_v17  ;;  %1589 = vmatpush.msra.mxu3 %v3722_v15  ;;  %v3731_v15 = vld [vmem:[#allocation25_spill] sm:$0xff] }
 0x280   :  { %1530 = vmatpush.msra.mxu0 %v2990_v33  ;;  %1550 = vmatpush.msra.mxu1 %v2992_v36 }
 0x281   :  { %1570 = vmatpush.msra.mxu2 %v3723_v16  ;;  %1590 = vmatpush.msra.mxu3 %v2998_v41 }
 0x282   :  { %1531 = vmatpush.msra.mxu0 %v3002_v45  ;;  %1551 = vmatpush.msra.mxu1 %v3724_v19  ;;  %v3730_v45 = vld [vmem:[#allocation23_spill] sm:$0xff]  ;;  %v3732_v19 = vld [vmem:[#allocation26_spill] sm:$0xff] }
 0x283   :  { %1571 = vmatpush.msra.mxu2 %v3725_v18  ;;  %1591 = vmatpush.msra.mxu3 %v3726_v20 }
 0x284   :  { %1532 = vmatpush.msra.mxu0 %v3014_v49  ;;  %1552 = vmatpush.msra.mxu1 %v3016_v50 }
 0x285   :  { %1572 = vmatpush.msra.mxu2 %v3018_v54  ;;  %1592 = vmatpush.msra.mxu3 %v3022_v55 }
 0x286   :  { %1533 = vmatpush.msra.mxu0 %v3026_v58  ;;  %1553 = vmatpush.msra.mxu1 %v3028_v59 }
 0x287   :  { %1573 = vmatpush.msra.mxu2 %v3030_v62  ;;  %1593 = vmatpush.msra.mxu3 %v3034_v63 }
 0x288   :  { %1534 = vmatpush.msra.mxu0 %v3038_v6  ;;  %1554 = vmatpush.msra.mxu1 %v3040_v8 }
 0x289   :  { %1574 = vmatpush.msra.mxu2 %v3042_v9  ;;  %1594 = vmatpush.msra.mxu3 %v3048_v60  ;;  %v3728_v60 = vld [vmem:[#allocation22_spill] sm:$0xff] }
 0x28a   :  { %1535 = vmatpush.msra.mxu0 %v3052_v61  ;;  %1555 = vmatpush.msra.mxu1 %v3054_v57 }
 0x28b   :  { %1575 = vmatpush.msra.mxu2 %v3056_v56  ;;  %1595 = vmatpush.msra.mxu3 %v3060_v22  ;;  %v3727_v56 = vld [vmem:[#allocation21_spill] sm:$0xff] }
 0x28c   :  { %1536 = vmatpush.msra.mxu0 %v3064_v52  ;;  %1556 = vmatpush.msra.mxu1 %v3066_v13 }
 0x28d   :  { %1576 = vmatpush.msra.mxu2 %v3068_v53  ;;  %1596 = vmatpush.msra.mxu3 %v3707_v37 }
 0x28e   :  { %1537 = vmatpush.msra.mxu0 %v3708_v7  ;;  %1557 = vmatpush.msra.mxu1 %v3709_v14 }
 0x28f   :  { %1577 = vmatpush.msra.mxu2 %v3710_v25  ;;  %1597 = vmatpush.msra.mxu3 %v3711_v43 }
 0x290   :  { %1538 = vmatpush.msra.mxu0 %v3712_v39  ;;  %1558 = vmatpush.msra.mxu1 %v3713_v24 }
 0x291   :  { %1578 = vmatpush.msra.mxu2 %v3090_v38  ;;  %1598 = vmatpush.msra.mxu3 %v3092_v21 }
 0x292   :  { %1539 = vmatpush.msra.mxu0 %v3097_v35  ;;  %1559 = vmatpush.msra.mxu1 %v3099_v31 }
 0x293   :  { %1579 = vmatpush.msra.mxu2 %v3103_v30  ;;  %1599 = vmatpush.msra.mxu3 %v3105_v48  ;;  %v3729_v48 = vld [vmem:[#allocation24_spill] sm:$0xff] }
 0x294   :  { %1540 = vmatpush.msra.mxu0 %v3109_v27  ;;  %1560 = vmatpush.msra.mxu1 %v3111_v44 }
 0x295   :  { %1580 = vmatpush.msra.mxu2 %v3115_v51  ;;  %1600 = vmatpush.msra.mxu3 %v3117_v40 }
 0x2f1   :  { %v1106_v53 = vpop.f32.mrf.mxu0  ;;  %v1126_v38 = vpop.f32.mrf.mxu1 }
 0x2f2   :  { %v1169_v57 = vadd.f32 %v1106_v53, %v3727_v56  ;;  %v1170_v35 = vadd.f32 %v1126_v38, %v3728_v60  ;;  %v3733_v56 = vld [vmem:[#allocation28_spill] sm:$0xff] }
 0x2f4   :  { %v2163_v61 = vmul.f32 -1.442695, %v1169_v57  ;;  %v2164_v31 = vmul.f32 -1.442695, %v1170_v35 }
 0x2f6   :  { %2237 = vpow2.f32 %v2163_v61 }
 0x2f7   :  { %2239 = vpow2.f32 %v2164_v31 }
 0x2f8   :  { %v1166_v30 = vpop.f32.mrf.mxu3  ;;  %v1146_v40 = vpop.f32.mrf.mxu2 }
 0x2f9   :  { %v1172_v8 = vadd.f32 %v1166_v30, %v3729_v48  ;;  %v1171_v49 = vadd.f32 %v1146_v40, %v3730_v45 }
 0x2fb   :  { %v2165_v9 = vmul.f32 -1.442695, %v1172_v8 }
 0x2fc   :  { %v2238_v1 = vpop.eup %2237 }
 0x2fd   :  { %v2240_v2 = vpop.eup %2239  ;;  %v1176_v5 = vadd.f32 1.0, %v2238_v1  ;;  %2241 = vpow2.f32 %v2165_v9 }
 0x2fe   :  { %v1195_v17 = vadd.f32 1.0, %v2240_v2  ;;  %v3734_v2 = vld [vmem:[#allocation27_spill] sm:$0xff] }
 0x2ff   :  { %2243 = vrcp.f32 %v1176_v5  ;;  %v1188_v62 = vand.u32 2147483648, %v1176_v5  ;;  %v1186_v22 = vand.u32 2147483647, %v1176_v5  ;;  %vm1182_vm6 = vweird.f32 %v1176_v5 }
 0x300   :  { %2245 = vrcp.f32 %v1195_v17  ;;  %v1207_v63 = vand.u32 2147483648, %v1195_v17  ;;  %v1205_v13 = vand.u32 2147483647, %v1195_v17  ;;  %vm1201_vm7 = vweird.f32 %v1195_v17 }
 0x301   :  { %v1189_v27 = vor.u32 1.1754944e-38, %v1188_v62  ;;  %vm1187_vm10 = vcmp.eq.f32.partialorder %v1186_v22, 8.507059e+37 }
 0x302   :  { %v1208_v37 = vor.u32 1.1754944e-38, %v1207_v63  ;;  %vm1206_vm11 = vcmp.eq.f32.partialorder %v1205_v13, 8.507059e+37 }
 0x303   :  { %v2242_v33 = vpop.eup %2241 }
 0x304   :  { %v1215_v36 = vadd.f32 1.0, %v2242_v33 }
 0x305   :  { %v2244_v41 = vpop.eup %2243 }
 0x306   :  { %v2246_v50 = vpop.eup %2245  ;;  %v1178_v54 = vmul.f32 %v2244_v41, %v1176_v5  ;;  %2247 = vrcp.f32 %v1215_v36  ;;  %vm1183_vm4 = vweird.f32 %v2244_v41  ;;  %v1227_v23 = vand.u32 2147483648, %v1215_v36 }
 0x307   :  { %v1197_v55 = vmul.f32 %v2246_v50, %v1195_v17  ;;  %2249 = vtanh.f32 %v1171_v49  ;;  %vm1202_vm5 = vweird.f32 %v2246_v50  ;;  %vm1184_vm8 = vmor %vm1182_vm6, %vm1183_vm4  ;;  %vm1221_vm13 = vweird.f32 %v1215_v36 }
 0x308   :  { %v1179_v58 = vsub.f32 1.0, %v1178_v54  ;;  %vm1203_vm9 = vmor %vm1201_vm7, %vm1202_vm5  ;;  %v1225_v3 = vand.u32 2147483647, %v1215_v36  ;;  %v1228_v28 = vor.u32 1.1754944e-38, %v1227_v23 }
 0x309   :  { %v1198_v59 = vsub.f32 1.0, %v1197_v55 }
 0x30a   :  { %v1180_v6 = vmul.f32 %v2244_v41, %v1179_v58  ;;  %vm1226_vm15 = vcmp.eq.f32.partialorder %v1225_v3, 8.507059e+37  ;;  %v3306_v3 = vld [vmem:[#allocation11 + $0x1e8] sm:$0xff] }
 0x30b   :  { %v1199_v52 = vmul.f32 %v2246_v50, %v1198_v59 }
 0x30c   :  { %v2248_v51 = vpop.eup %2247  ;;  %v1181_v21 = vadd.f32 %v2244_v41, %v1180_v6 }
 0x30d   :  { %v1200_v44 = vadd.f32 %v2246_v50, %v1199_v52  ;;  %v1217_v32 = vmul.f32 %v2248_v51, %v1215_v36  ;;  %v2250_v7 = vpop.eup %2249  ;;  %vm1222_vm12 = vweird.f32 %v2248_v51 }
 0x30e   :  { %v1185_v46 = vsel %vm1184_vm8, %v2244_v41, %v1181_v21  ;;  %vm1223_vm14 = vmor %vm1221_vm13, %vm1222_vm12 }
 0x30f   :  { %v1190_v14 = vsel %vm1187_vm10, %v1189_v27, %v1185_v46  ;;  %v1204_v47 = vsel %vm1203_vm9, %v2246_v50, %v1200_v44  ;;  %v1218_v25 = vsub.f32 1.0, %v1217_v32 }
 0x310   :  { %v1209_v43 = vsel %vm1206_vm11, %v1208_v37, %v1204_v47  ;;  %v1232_v39 = vmul.f32 %v2250_v7, %v1190_v14 }
 0x311   :  { %v1231_v24 = vmul.f32 %v1209_v43, %v3189_v11  ;;  %v1219_v26 = vmul.f32 %v2248_v51, %v1218_v25 }
 0x313   :  { %v3293_v34 = vadd.f32 %v1232_v39, %v1231_v24  ;;  %v1220_v0 = vadd.f32 %v2248_v51, %v1219_v26 }
 0x315   :  { %2251 = vtanh.f32 %v3293_v34  ;;  %v1224_v12 = vsel %vm1223_vm14, %v2248_v51, %v1220_v0 }
 0x316   :  { %v1229_v42 = vsel %vm1226_vm15, %v1228_v28, %v1224_v12  ;;  %v3308_v12 = vld [vmem:[#allocation11 + $0x1f0] sm:$0xff]  ;;  %v3312_v28 = vld [vmem:[#allocation11 + $0x1f8] sm:$0xff] }
 0x31b   :  { %v2252_v4 = vpop.eup %2251 }
 0x31c   :  { %v1235_v29 = vmul.f32 %v2252_v4, %v1229_v42  ;;  %v3316_v4 = vld [vmem:[#allocation11 + $0x1c0] sm:$0xff]  ;;  %v3318_v42 = vld [vmem:[#allocation11 + $0x1c8] sm:$0xff] }
 0x31e   :  { %1237 = vst [vmem:[#allocation13 + $0x18] sm:$0xff] %v1235_v29  ;;  %1323 = vmatmul.f32.vlgmr.msrb.gmra.mxu0 %v1235_v29  ;;  %1343 = vmatmul.f32.vlgmr.msrb.gmra.mxu1 %v1235_v29 }
 0x31f   :  { %1363 = vmatmul.f32.vlgmr.msrb.gmra.mxu2 %v1235_v29  ;;  %1383 = vmatmul.f32.vlgmr.msrb.gmra.mxu3 %v1235_v29  ;;  %v3320_v29 = vld [vmem:[#allocation11 + $0x1d0] sm:$0xff] }
 0x320   :  { %1763 = vmatpush.msrb.mxu1 %v3306_v3  ;;  %1783 = vmatpush.msrb.mxu2 %v3308_v12 }
 0x321   :  { %1803 = vmatpush.msrb.mxu3 %v3312_v28 }
 0x322   :  { %1764 = vmatpush.msrb.mxu1 %v3318_v42  ;;  %1784 = vmatpush.msrb.mxu2 %v3320_v29 }
 0x39b   :  { %v1324_v11 = vpop.f32.mrf.mxu0  ;;  %v1344_v10 = vpop.f32.mrf.mxu1 }
 0x39c   :  { %v1387_v16 = vadd.f32 %v1324_v11, %v3731_v15  ;;  %v1388_v18 = vadd.f32 %v1344_v10, %v3732_v19  ;;  %v3324_v11 = vld [vmem:[#allocation11 + $0x1d8] sm:$0xff]  ;;  %v3328_v10 = vld [vmem:[#allocation11 + $0x1a0] sm:$0xff]  ;;  %v3330_v15 = vld [vmem:[#allocation11 + $0x1a8] sm:$0xff] }
 0x39d   :  { %1804 = vmatpush.msrb.mxu3 %v3324_v11  ;;  %1765 = vmatpush.msrb.mxu1 %v3330_v15  ;;  %v3336_v19 = vld [vmem:[#allocation11 + $0x1b8] sm:$0xff] }
 0x39e   :  { %v2166_v20 = vmul.f32 -1.442695, %v1387_v16  ;;  %v2167_v53 = vmul.f32 -1.442695, %v1388_v18  ;;  %v3332_v16 = vld [vmem:[#allocation11 + $0x1b0] sm:$0xff]  ;;  %v3340_v18 = vld [vmem:[#allocation11 + $0x180] sm:$0xff] }
 0x39f   :  { %1785 = vmatpush.msrb.mxu2 %v3332_v16  ;;  %1805 = vmatpush.msrb.mxu3 %v3336_v19 }
 0x3a0   :  { %2253 = vpow2.f32 %v2166_v20  ;;  %v3342_v20 = vld [vmem:[#allocation11 + $0x188] sm:$0xff] }
 0x3a1   :  { %2255 = vpow2.f32 %v2167_v53  ;;  %v3344_v53 = vld [vmem:[#allocation11 + $0x190] sm:$0xff]  ;;  %1766 = vmatpush.msrb.mxu1 %v3342_v20 }
 0x3a2   :  { %v1384_v38 = vpop.f32.mrf.mxu3  ;;  %v1364_v48 = vpop.f32.mrf.mxu2  ;;  %1786 = vmatpush.msrb.mxu2 %v3344_v53 }
 0x3a3   :  { %v1390_v57 = vadd.f32 %v1384_v38, %v3733_v56  ;;  %v1389_v5 = vadd.f32 %v1364_v48, %v3734_v2  ;;  %v3348_v38 = vld [vmem:[#allocation11 + $0x198] sm:$0xff]  ;;  %v3352_v56 = vld [vmem:[#allocation11 + $0x160] sm:$0xff] }
 0x3a4   :  { %1806 = vmatpush.msrb.mxu3 %v3348_v38  ;;  %v3372_v48 = vld [vmem:[#allocation11 + $0x158] sm:$0xff] }
 0x3a5   :  { %v2168_v60 = vmul.f32 -1.442695, %v1390_v57  ;;  %v3354_v57 = vld [vmem:[#allocation11 + $0x168] sm:$0xff]  ;;  %v3384_v2 = vld [vmem:[#allocation11 + $0x138] sm:$0xff] }
 0x3a6   :  { %v2254_v35 = vpop.eup %2253  ;;  %1767 = vmatpush.msrb.mxu1 %v3354_v57 }
 0x3a7   :  { %v2256_v61 = vpop.eup %2255  ;;  %v1394_v31 = vadd.f32 1.0, %v2254_v35  ;;  %2257 = vpow2.f32 %v2168_v60  ;;  %v3356_v60 = vld [vmem:[#allocation11 + $0x170] sm:$0xff]  ;;  %v3360_v35 = vld [vmem:[#allocation11 + $0x178] sm:$0xff] }
 0x3a8   :  { %v1413_v30 = vadd.f32 1.0, %v2256_v61  ;;  %1787 = vmatpush.msrb.mxu2 %v3356_v60  ;;  %1807 = vmatpush.msrb.mxu3 %v3360_v35  ;;  %v3364_v61 = vld [vmem:[#allocation11 + $0x140] sm:$0xff] }
 0x3a9   :  { %2259 = vrcp.f32 %v1394_v31  ;;  %v1406_v45 = vand.u32 2147483648, %v1394_v31  ;;  %v1404_v54 = vand.u32 2147483647, %v1394_v31  ;;  %vm1400_vm2 = vweird.f32 %v1394_v31 }
 0x3aa   :  { %2261 = vrcp.f32 %v1413_v30  ;;  %v1425_v49 = vand.u32 2147483648, %v1413_v30  ;;  %v1423_v58 = vand.u32 2147483647, %v1413_v30  ;;  %vm1419_vm3 = vweird.f32 %v1413_v30  ;;  %1808 = vmatpush.msrb.mxu3 %v3372_v48 }
 0x3ab   :  { %v1407_v63 = vor.u32 1.1754944e-38, %v1406_v45  ;;  %vm1405_vm6 = vcmp.eq.f32.partialorder %v1404_v54, 8.507059e+37  ;;  %v3404_v45 = vld [vmem:[#allocation11 + $0xf0] sm:$0xff] }
 0x3ac   :  { %v1426_v52 = vor.u32 1.1754944e-38, %v1425_v49  ;;  %vm1424_vm7 = vcmp.eq.f32.partialorder %v1423_v58, 8.507059e+37  ;;  %1809 = vmatpush.msrb.mxu3 %v3384_v2  ;;  %v3408_v49 = vld [vmem:[#allocation11 + $0xf8] sm:$0xff]  ;;  %v3414_v58 = vld [vmem:[#allocation11 + $0xc8] sm:$0xff] }
 0x3ad   :  { %v2258_v8 = vpop.eup %2257 }
 0x3ae   :  { %v1433_v9 = vadd.f32 1.0, %v2258_v8  ;;  %v3376_v8 = vld [vmem:[#allocation11 + $0x120] sm:$0xff] }
 0x3af   :  { %v2260_v1 = vpop.eup %2259 }
 0x3b0   :  { %v2262_v17 = vpop.eup %2261  ;;  %v1396_v40 = vmul.f32 %v2260_v1, %v1394_v31  ;;  %2263 = vrcp.f32 %v1433_v9  ;;  %vm1401_vm0 = vweird.f32 %v2260_v1  ;;  %v1445_v25 = vand.u32 2147483648, %v1433_v9  ;;  %v3366_v31 = vld [vmem:[#allocation11 + $0x148] sm:$0xff] }
 0x3b1   :  { %v1415_v33 = vmul.f32 %v2262_v17, %v1413_v30  ;;  %2265 = vtanh.f32 %v1389_v5  ;;  %vm1420_vm1 = vweird.f32 %v2262_v17  ;;  %vm1402_vm4 = vmor %vm1400_vm2, %vm1401_vm0  ;;  %vm1439_vm9 = vweird.f32 %v1433_v9  ;;  %v3368_v30 = vld [vmem:[#allocation11 + $0x150] sm:$0xff]  ;;  %1768 = vmatpush.msrb.mxu1 %v3366_v31  ;;  %v3388_v5 = vld [vmem:[#allocation11 + $0x100] sm:$0xff] }
 0x3b2   :  { %v1397_v36 = vsub.f32 1.0, %v1396_v40  ;;  %vm1421_vm5 = vmor %vm1419_vm3, %vm1420_vm1  ;;  %v1443_v43 = vand.u32 2147483647, %v1433_v9  ;;  %v1446_v24 = vor.u32 1.1754944e-38, %v1445_v25  ;;  %1788 = vmatpush.msrb.mxu2 %v3368_v30  ;;  %v3392_v40 = vld [vmem:[#allocation11 + $0x110] sm:$0xff]  ;;  %v3448_v25 = vld [vmem:[#allocation11 + $0x60] sm:$0xff] }
 0x3b3   :  { %v1416_v41 = vsub.f32 1.0, %v1415_v33  ;;  %v3396_v33 = vld [vmem:[#allocation11 + $0x118] sm:$0xff]  ;;  %3737 = vst [vmem:[#allocation54_spill] sm:$0xff] %v3448_v25 }
 0x3b4   :  { %v1398_v50 = vmul.f32 %v2260_v1, %v1397_v36  ;;  %vm1444_vm11 = vcmp.eq.f32.partialorder %v1443_v43, 8.507059e+37  ;;  %1810 = vmatpush.msrb.mxu3 %v3396_v33  ;;  %v3400_v36 = vld [vmem:[#allocation11 + $0xe0] sm:$0xff]  ;;  %v3450_v43 = vld [vmem:[#allocation11 + $0x68] sm:$0xff] }
 0x3b5   :  { %v1417_v55 = vmul.f32 %v2262_v17, %v1416_v41  ;;  %v3402_v41 = vld [vmem:[#allocation11 + $0xe8] sm:$0xff]  ;;  %3738 = vst [vmem:[#allocation55_spill] sm:$0xff] %v3450_v43 }
 0x3b6   :  { %v2264_v59 = vpop.eup %2263  ;;  %v1399_v62 = vadd.f32 %v2260_v1, %v1398_v50  ;;  %1811 = vmatpush.msrb.mxu3 %v3408_v49 }
 0x3b7   :  { %v1418_v6 = vadd.f32 %v2262_v17, %v1417_v55  ;;  %v1435_v22 = vmul.f32 %v2264_v59, %v1433_v9  ;;  %v2266_v51 = vpop.eup %2265  ;;  %vm1440_vm8 = vweird.f32 %v2264_v59  ;;  %v3378_v9 = vld [vmem:[#allocation11 + $0x128] sm:$0xff]  ;;  %v3412_v55 = vld [vmem:[#allocation11 + $0xc0] sm:$0xff] }
 0x3b8   :  { %v1403_v13 = vsel %vm1402_vm4, %v2260_v1, %v1399_v62  ;;  %vm1441_vm10 = vmor %vm1439_vm9, %vm1440_vm8  ;;  %v3380_v1 = vld [vmem:[#allocation11 + $0x130] sm:$0xff]  ;;  %1769 = vmatpush.msrb.mxu1 %v3378_v9  ;;  %v3735_v62 = vld [vmem:[#allocation29_spill] sm:$0xff] }
 0x3b9   :  { %v1408_v21 = vsel %vm1405_vm6, %v1407_v63, %v1403_v13  ;;  %v1422_v27 = vsel %vm1421_vm5, %v2262_v17, %v1418_v6  ;;  %v1436_v44 = vsub.f32 1.0, %v1435_v22  ;;  %1789 = vmatpush.msrb.mxu2 %v3380_v1  ;;  %v3390_v17 = vld [vmem:[#allocation11 + $0x108] sm:$0xff]  ;;  %v3736_v6 = vld [vmem:[#allocation30_spill] sm:$0xff]  ;;  %v3426_v13 = vld [vmem:[#allocation11 + $0xa0] sm:$0xff] }
 0x3ba   :  { %v1427_v32 = vsel %vm1424_vm7, %v1426_v52, %v1422_v27  ;;  %v1450_v37 = vmul.f32 %v2266_v51, %v1408_v21  ;;  %1770 = vmatpush.msrb.mxu1 %v3390_v17  ;;  %v3422_v52 = vld [vmem:[#allocation11 + $0xd8] sm:$0xff]  ;;  %v3428_v51 = vld [vmem:[#allocation11 + $0xa8] sm:$0xff]  ;;  %v3430_v21 = vld [vmem:[#allocation11 + $0xb0] sm:$0xff] }
 0x3bb   :  { %v1449_v46 = vmul.f32 %v1427_v32, %v3293_v34  ;;  %v1437_v7 = vmul.f32 %v2264_v59, %v1436_v44  ;;  %v3304_v34 = vld [vmem:[#allocation11 + $0x1e0] sm:$0xff]  ;;  %1790 = vmatpush.msrb.mxu2 %v3392_v40  ;;  %1812 = vmatpush.msrb.mxu3 %v3422_v52  ;;  %v3434_v32 = vld [vmem:[#allocation11 + $0xb8] sm:$0xff] }
 0x3bc   :  { %1743 = vmatpush.msrb.mxu0 %v3304_v34  ;;  %1771 = vmatpush.msrb.mxu1 %v3402_v41 }
 0x3bd   :  { %v3301_v14 = vadd.f32 %v1450_v37, %v1449_v46  ;;  %v1438_v47 = vadd.f32 %v2264_v59, %v1437_v7  ;;  %1791 = vmatpush.msrb.mxu2 %v3404_v45  ;;  %1813 = vmatpush.msrb.mxu3 %v3434_v32  ;;  %v3438_v37 = vld [vmem:[#allocation11 + $0x80] sm:$0xff]  ;;  %v3440_v46 = vld [vmem:[#allocation11 + $0x88] sm:$0xff]  ;;  %v3442_v7 = vld [vmem:[#allocation11 + $0x90] sm:$0xff] }
 0x3be   :  { %1744 = vmatpush.msrb.mxu0 %v3316_v4  ;;  %1772 = vmatpush.msrb.mxu1 %v3414_v58 }
 0x3bf   :  { %2267 = vtanh.f32 %v3301_v14  ;;  %v1442_v39 = vsel %vm1441_vm10, %v2264_v59, %v1438_v47  ;;  %v3416_v59 = vld [vmem:[#allocation11 + $0xd0] sm:$0xff]  ;;  %v3446_v47 = vld [vmem:[#allocation11 + $0x98] sm:$0xff] }
 0x3c0   :  { %v1447_v0 = vsel %vm1444_vm11, %v1446_v24, %v1442_v39  ;;  %1745 = vmatpush.msrb.mxu0 %v3328_v10  ;;  %1792 = vmatpush.msrb.mxu2 %v3416_v59  ;;  %v3454_v39 = vld [vmem:[#allocation11 + $0x70] sm:$0xff]  ;;  %v3456_v24 = vld [vmem:[#allocation11 + $0x78] sm:$0xff] }
 0x3c1   :  { %1773 = vmatpush.msrb.mxu1 %v3428_v51  ;;  %1814 = vmatpush.msrb.mxu3 %v3446_v47  ;;  %3739 = vst [vmem:[#allocation56_spill] sm:$0xff] %v3454_v39 }
 0x3c2   :  { %1746 = vmatpush.msrb.mxu0 %v3340_v18  ;;  %1793 = vmatpush.msrb.mxu2 %v3430_v21  ;;  %3740 = vst [vmem:[#allocation57_spill] sm:$0xff] %v3456_v24 }
 0x3c3   :  { %1774 = vmatpush.msrb.mxu1 %v3440_v46  ;;  %1815 = vmatpush.msrb.mxu3 %v3456_v24 }
 0x3c4   :  { %1747 = vmatpush.msrb.mxu0 %v3352_v56  ;;  %1794 = vmatpush.msrb.mxu2 %v3442_v7 }
 0x3c5   :  { %v2268_v26 = vpop.eup %2267  ;;  %1775 = vmatpush.msrb.mxu1 %v3450_v43 }
 0x3c6   :  { %v1453_v23 = vmul.f32 %v2268_v26, %v1447_v0  ;;  %1748 = vmatpush.msrb.mxu0 %v3364_v61  ;;  %v3458_v26 = vld [vmem:[#allocation11 + $0x40] sm:$0xff]  ;;  %1795 = vmatpush.msrb.mxu2 %v3454_v39 }
 0x3c7   :  { %3741 = vst [vmem:[#allocation58_spill] sm:$0xff] %v3458_v26 }
 0x3c8   :  { %1455 = vst [vmem:[#allocation13 + $0x20] sm:$0xff] %v1453_v23  ;;  %1541 = vmatmul.f32.vlgmr.msra.gmra.mxu0 %v1453_v23  ;;  %1561 = vmatmul.f32.vlgmr.msra.gmra.mxu1 %v1453_v23 }
 0x3c9   :  { %1581 = vmatmul.f32.vlgmr.msra.gmra.mxu2 %v1453_v23  ;;  %1601 = vmatmul.f32.vlgmr.msra.gmra.mxu3 %v1453_v23  ;;  %v3462_v23 = vld [vmem:[#allocation11 + $0x48] sm:$0xff] }
 0x3ca   :  { %1749 = vmatpush.msrb.mxu0 %v3376_v8  ;;  %3742 = vst [vmem:[#allocation59_spill] sm:$0xff] %v3462_v23  ;;  %1776 = vmatpush.msrb.mxu1 %v3462_v23  ;;  %v3491_v23 = vld [vmem:[#allocation11 + $0x18] sm:$0xff] }
 0x3cc   :  { %1750 = vmatpush.msrb.mxu0 %v3388_v5 }
 0x3ce   :  { %1751 = vmatpush.msrb.mxu0 %v3400_v36 }
 0x3d0   :  { %1752 = vmatpush.msrb.mxu0 %v3412_v55 }
 0x3d2   :  { %1753 = vmatpush.msrb.mxu0 %v3426_v13 }
 0x3d4   :  { %1754 = vmatpush.msrb.mxu0 %v3438_v37 }
 0x3d6   :  { %1755 = vmatpush.msrb.mxu0 %v3448_v25 }
 0x3d8   :  { %1756 = vmatpush.msrb.mxu0 %v3458_v26  ;;  %v3489_v26 = vld [vmem:[#allocation11 + $0x10] sm:$0xff] }
 0x445   :  { %v1542_v50 = vpop.f32.mrf.mxu0  ;;  %v1562_v54 = vpop.f32.mrf.mxu1 }
 0x446   :  { %v1605_v63 = vadd.f32 %v1542_v50, %v3735_v62  ;;  %v1606_v22 = vadd.f32 %v1562_v54, %v3736_v6  ;;  %v3464_v50 = vld [vmem:[#allocation11 + $0x50] sm:$0xff]  ;;  %v3466_v54 = vld [vmem:[#allocation11 + $0x58] sm:$0xff]  ;;  %v3743_v62 = vld [vmem:[#allocation32_spill] sm:$0xff] }
 0x447   :  { %v3471_v6 = vld [vmem:[#allocation11 + $0x20] sm:$0xff]  ;;  %1796 = vmatpush.msrb.mxu2 %v3464_v50  ;;  %1816 = vmatpush.msrb.mxu3 %v3466_v54 }
 0x448   :  { %v2169_v27 = vmul.f32 -1.442695, %v1605_v63  ;;  %v2170_v44 = vmul.f32 -1.442695, %v1606_v22  ;;  %v3473_v22 = vld [vmem:[#allocation11 + $0x28] sm:$0xff]  ;;  %1757 = vmatpush.msrb.mxu0 %v3471_v6 }
 0x449   :  { %1777 = vmatpush.msrb.mxu1 %v3473_v22 }
 0x44a   :  { %2269 = vpow2.f32 %v2169_v27  ;;  %v3477_v27 = vld [vmem:[#allocation11 + $0x30] sm:$0xff] }
 0x44b   :  { %2271 = vpow2.f32 %v2170_v44  ;;  %v3479_v44 = vld [vmem:[#allocation11 + $0x38] sm:$0xff]  ;;  %1797 = vmatpush.msrb.mxu2 %v3477_v27 }
 0x44c   :  { %v1602_v0 = vpop.f32.mrf.mxu3  ;;  %1817 = vmatpush.msrb.mxu3 %v3479_v44 }
 0x44d   :  { %v1608_v63 = vadd.f32 %v1602_v0, %v3743_v62  ;;  %v3483_v0 = vld [vmem:[#allocation11] sm:$0xff]  ;;  %v3485_v62 = vld [vmem:[#allocation11 + $0x8] sm:$0xff]  ;;  %1798 = vmatpush.msrb.mxu2 %v3489_v26 }
 0x44e   :  { %1758 = vmatpush.msrb.mxu0 %v3483_v0  ;;  %1778 = vmatpush.msrb.mxu1 %v3485_v62 }
 0x44f   :  { %v2171_v43 = vmul.f32 -1.442695, %v1608_v63  ;;  %1818 = vmatpush.msrb.mxu3 %v3491_v23  ;;  %2001 = vmatpush.msra.mxu2 %v3308_v12 }
 0x450   :  { %v2270_v24 = vpop.eup %2269  ;;  %1961 = vmatpush.msra.mxu0 %v3304_v34  ;;  %1981 = vmatpush.msra.mxu1 %v3306_v3  ;;  %v3744_v3 = vld [vmem:[#allocation31_spill] sm:$0xff] }
 0x451   :  { %v2272_v39 = vpop.eup %2271  ;;  %v3493_v25 = vadd.f32 1.0, %v2270_v24  ;;  %2273 = vpow2.f32 %v2171_v43  ;;  %2021 = vmatpush.msra.mxu3 %v3312_v28  ;;  %v1582_v43 = vpop.f32.mrf.mxu2  ;;  %2002 = vmatpush.msra.mxu2 %v3320_v29 }
 0x452   :  { %v3497_v63 = vadd.f32 1.0, %v2272_v39  ;;  %1962 = vmatpush.msra.mxu0 %v3316_v4  ;;  %1982 = vmatpush.msra.mxu1 %v3318_v42  ;;  %v1607_v12 = vadd.f32 %v1582_v43, %v3744_v3 }
 0x453   :  { %2275 = vrcp.f32 %v3493_v25  ;;  %2022 = vmatpush.msra.mxu3 %v3324_v11  ;;  %2003 = vmatpush.msra.mxu2 %v3332_v16  ;;  %vm1618_vm14 = vweird.f32 %v3493_v25 }
 0x454   :  { %2277 = vrcp.f32 %v3497_v63  ;;  %1963 = vmatpush.msra.mxu0 %v3328_v10  ;;  %1983 = vmatpush.msra.mxu1 %v3330_v15  ;;  %v1624_v10 = vand.u32 2147483648, %v3493_v25  ;;  %v1643_v15 = vand.u32 2147483648, %v3497_v63  ;;  %vm1637_vm15 = vweird.f32 %v3497_v63 }
 0x455   :  { %2023 = vmatpush.msra.mxu3 %v3336_v19  ;;  %2004 = vmatpush.msra.mxu2 %v3344_v53  ;;  %v1622_v19 = vand.u32 2147483647, %v3493_v25 }
 0x456   :  { %1964 = vmatpush.msra.mxu0 %v3340_v18  ;;  %1984 = vmatpush.msra.mxu1 %v3342_v20  ;;  %v1641_v20 = vand.u32 2147483647, %v3497_v63 }
 0x457   :  { %v2274_v39 = vpop.eup %2273  ;;  %2024 = vmatpush.msra.mxu3 %v3348_v38  ;;  %2005 = vmatpush.msra.mxu2 %v3356_v60  ;;  %vm1623_vm2 = vcmp.eq.f32.partialorder %v1622_v19, 8.507059e+37 }
 0x458   :  { %v3513_v24 = vadd.f32 1.0, %v2274_v39  ;;  %1965 = vmatpush.msra.mxu0 %v3352_v56  ;;  %1985 = vmatpush.msra.mxu1 %v3354_v57  ;;  %v1625_v56 = vor.u32 1.1754944e-38, %v1624_v10  ;;  %vm1642_vm3 = vcmp.eq.f32.partialorder %v1641_v20, 8.507059e+37 }
 0x459   :  { %v2276_v34 = vpop.eup %2275  ;;  %2025 = vmatpush.msra.mxu3 %v3360_v35  ;;  %2006 = vmatpush.msra.mxu2 %v3368_v30  ;;  %v1644_v35 = vor.u32 1.1754944e-38, %v1643_v15 }
 0x45a   :  { %v2278_v28 = vpop.eup %2277  ;;  %v1614_v4 = vmul.f32 %v2276_v34, %v3493_v25  ;;  %2279 = vrcp.f32 %v3513_v24  ;;  %vm1619_vm12 = vweird.f32 %v2276_v34  ;;  %1966 = vmatpush.msra.mxu0 %v3364_v61  ;;  %1986 = vmatpush.msra.mxu1 %v3366_v31  ;;  %vm1657_vm5 = vweird.f32 %v3513_v24 }
 0x45b   :  { %v1633_v42 = vmul.f32 %v2278_v28, %v3497_v63  ;;  %2281 = vtanh.f32 %v1607_v12  ;;  %vm1638_vm13 = vweird.f32 %v2278_v28  ;;  %2026 = vmatpush.msra.mxu3 %v3372_v48  ;;  %vm1620_vm0 = vmor %vm1618_vm14, %vm1619_vm12  ;;  %2007 = vmatpush.msra.mxu2 %v3380_v1 }
 0x45c   :  { %v1615_v29 = vsub.f32 1.0, %v1614_v4  ;;  %1967 = vmatpush.msra.mxu0 %v3376_v8  ;;  %1987 = vmatpush.msra.mxu1 %v3378_v9  ;;  %vm1639_vm1 = vmor %vm1637_vm15, %vm1638_vm13 }
 0x45d   :  { %v1634_v11 = vsub.f32 1.0, %v1633_v42  ;;  %2027 = vmatpush.msra.mxu3 %v3384_v2  ;;  %2008 = vmatpush.msra.mxu2 %v3392_v40  ;;  %v1663_v40 = vand.u32 2147483648, %v3513_v24 }
 0x45e   :  { %v1616_v16 = vmul.f32 %v2276_v34, %v1615_v29  ;;  %1968 = vmatpush.msra.mxu0 %v3388_v5  ;;  %1988 = vmatpush.msra.mxu1 %v3390_v17 }
 0x45f   :  { %v1635_v18 = vmul.f32 %v2278_v28, %v1634_v11  ;;  %2028 = vmatpush.msra.mxu3 %v3396_v33  ;;  %2009 = vmatpush.msra.mxu2 %v3404_v45  ;;  %v1661_v33 = vand.u32 2147483647, %v3513_v24  ;;  %v3746_v45 = vld [vmem:[#allocation55_spill] sm:$0xff] }
 0x460   :  { %v3539_v53 = vpop.eup %2279  ;;  %v1617_v38 = vadd.f32 %v2276_v34, %v1616_v16  ;;  %1969 = vmatpush.msra.mxu0 %v3400_v36  ;;  %1989 = vmatpush.msra.mxu1 %v3402_v41  ;;  %v3745_v41 = vld [vmem:[#allocation54_spill] sm:$0xff] }
 0x461   :  { %v1636_v57 = vadd.f32 %v2278_v28, %v1635_v18  ;;  %v1653_v60 = vmul.f32 %v3539_v53, %v3513_v24  ;;  %v2282_v31 = vpop.eup %2281  ;;  %2029 = vmatpush.msra.mxu3 %v3408_v49  ;;  %2010 = vmatpush.msra.mxu2 %v3416_v59  ;;  %vm1658_vm4 = vweird.f32 %v3539_v53  ;;  %v1664_v49 = vor.u32 1.1754944e-38, %v1663_v40  ;;  %v3749_v59 = vld [vmem:[#allocation58_spill] sm:$0xff] }
 0x462   :  { %v1621_v61 = vsel %vm1620_vm0, %v2276_v34, %v1617_v38  ;;  %1970 = vmatpush.msra.mxu0 %v3412_v55  ;;  %1990 = vmatpush.msra.mxu1 %v3414_v58  ;;  %vm1659_vm6 = vmor %vm1657_vm5, %vm1658_vm4  ;;  %v3747_v55 = vld [vmem:[#allocation56_spill] sm:$0xff]  ;;  %v3748_v58 = vld [vmem:[#allocation57_spill] sm:$0xff]  ;;  %vm1662_vm7 = vcmp.eq.f32.partialorder %v1661_v33, 8.507059e+37 }
 0x463   :  { %v1626_v30 = vsel %vm1623_vm2, %v1625_v56, %v1621_v61  ;;  %v1640_v48 = vsel %vm1639_vm1, %v2278_v28, %v1636_v57  ;;  %v1654_v8 = vsub.f32 1.0, %v1653_v60  ;;  %2030 = vmatpush.msra.mxu3 %v3422_v52  ;;  %2011 = vmatpush.msra.mxu2 %v3430_v21  ;;  %v3750_v52 = vld [vmem:[#allocation59_spill] sm:$0xff] }
 0x464   :  { %v1645_v9 = vsel %vm1642_vm3, %v1644_v35, %v1640_v48  ;;  %v1668_v1 = vmul.f32 %v2282_v31, %v1626_v30  ;;  %1971 = vmatpush.msra.mxu0 %v3426_v13  ;;  %1991 = vmatpush.msra.mxu1 %v3428_v51  ;;  %v3754_v34 = vld [vmem:[#allocation35_spill] sm:$0xff] }
 0x465   :  { %v1667_v2 = vmul.f32 %v1645_v9, %v3301_v14  ;;  %v1655_v5 = vmul.f32 %v3539_v53, %v1654_v8  ;;  %2031 = vmatpush.msra.mxu3 %v3434_v32  ;;  %2012 = vmatpush.msra.mxu2 %v3442_v7 }
 0x466   :  { %1972 = vmatpush.msra.mxu0 %v3438_v37  ;;  %1992 = vmatpush.msra.mxu1 %v3440_v46  ;;  %v3751_v46 = vld [vmem:[#allocation33_spill] sm:$0xff] }
 0x467   :  { %v3563_v17 = vadd.f32 %v1668_v1, %v1667_v2  ;;  %v1656_v14 = vadd.f32 %v3539_v53, %v1655_v5  ;;  %2032 = vmatpush.msra.mxu3 %v3446_v47  ;;  %2013 = vmatpush.msra.mxu2 %v3747_v55  ;;  %v3752_v47 = vld [vmem:[#allocation34_spill] sm:$0xff] }
 0x468   :  { %1973 = vmatpush.msra.mxu0 %v3745_v41  ;;  %1993 = vmatpush.msra.mxu1 %v3746_v45 }
 0x469   :  { %2283 = vtanh.f32 %v3563_v17  ;;  %v1660_v36 = vsel %vm1659_vm6, %v3539_v53, %v1656_v14  ;;  %2033 = vmatpush.msra.mxu3 %v3748_v58  ;;  %2014 = vmatpush.msra.mxu2 %v3464_v50 }
 0x46a   :  { %1974 = vmatpush.msra.mxu0 %v3749_v59  ;;  %1994 = vmatpush.msra.mxu1 %v3750_v52  ;;  %v1665_v51 = vsel %vm1662_vm7, %v1664_v49, %v1660_v36  ;;  %v3755_v59 = vld [vmem:[#allocation37_spill] sm:$0xff] }
 0x46b   :  { %2034 = vmatpush.msra.mxu3 %v3466_v54  ;;  %2015 = vmatpush.msra.mxu2 %v3477_v27 }
 0x46c   :  { %1975 = vmatpush.msra.mxu0 %v3471_v6  ;;  %1995 = vmatpush.msra.mxu1 %v3473_v22  ;;  %v3753_v22 = vld [vmem:[#allocation36_spill] sm:$0xff] }
 0x46d   :  { %2035 = vmatpush.msra.mxu3 %v3479_v44  ;;  %2016 = vmatpush.msra.mxu2 %v3489_v26 }
 0x46e   :  { %1976 = vmatpush.msra.mxu0 %v3483_v0  ;;  %1996 = vmatpush.msra.mxu1 %v3485_v62 }
 0x46f   :  { %v2284_v13 = vpop.eup %2283  ;;  %2036 = vmatpush.msra.mxu3 %v3491_v23 }
 0x470   :  { %v1671_v21 = vmul.f32 %v2284_v13, %v1665_v51  ;;  %v3756_v13 = vld [vmem:[#allocation38_spill] sm:$0xff] }
 0x472   :  { %1673 = vst [vmem:[#allocation13 + $0x28] sm:$0xff] %v1671_v21  ;;  %1759 = vmatmul.f32.vlgmr.msrb.gmra.mxu0 %v1671_v21  ;;  %1779 = vmatmul.f32.vlgmr.msrb.gmra.mxu1 %v1671_v21 }
 0x473   :  { %1799 = vmatmul.f32.vlgmr.msrb.gmra.mxu2 %v1671_v21  ;;  %1819 = vmatmul.f32.vlgmr.msrb.gmra.mxu3 %v1671_v21 }
 0x4ef   :  { %v1760_v32 = vpop.f32.mrf.mxu0  ;;  %v1780_v37 = vpop.f32.mrf.mxu1 }
 0x4f0   :  { %v1823_v7 = vadd.f32 %v1760_v32, %v3751_v46  ;;  %v1824_v25 = vadd.f32 %v1780_v37, %v3752_v47  ;;  %v3757_v46 = vld [vmem:[#allocation40_spill] sm:$0xff] }
 0x4f2   :  { %v2172_v50 = vmul.f32 -1.442695, %v1823_v7  ;;  %v2173_v54 = vmul.f32 -1.442695, %v1824_v25 }
 0x4f4   :  { %2285 = vpow2.f32 %v2172_v50 }
 0x4f5   :  { %2287 = vpow2.f32 %v2173_v54 }
 0x4f6   :  { %v1820_v6 = vpop.f32.mrf.mxu3  ;;  %v1800_v23 = vpop.f32.mrf.mxu2 }
 0x4f7   :  { %v1826_v27 = vadd.f32 %v1820_v6, %v3753_v22  ;;  %v1825_v3 = vadd.f32 %v1800_v23, %v3754_v34 }
 0x4f9   :  { %v2174_v44 = vmul.f32 -1.442695, %v1826_v27 }
 0x4fa   :  { %v2286_v0 = vpop.eup %2285 }
 0x4fb   :  { %v2288_v62 = vpop.eup %2287  ;;  %v1830_v63 = vadd.f32 1.0, %v2286_v0  ;;  %2289 = vpow2.f32 %v2174_v44 }
 0x4fc   :  { %v1849_v26 = vadd.f32 1.0, %v2288_v62  ;;  %v3758_v62 = vld [vmem:[#allocation39_spill] sm:$0xff] }
 0x4fd   :  { %2291 = vrcp.f32 %v1830_v63  ;;  %v1842_v11 = vand.u32 2147483648, %v1830_v63  ;;  %v1840_v16 = vand.u32 2147483647, %v1830_v63  ;;  %vm1836_vm10 = vweird.f32 %v1830_v63 }
 0x4fe   :  { %2293 = vrcp.f32 %v1849_v26  ;;  %v1861_v10 = vand.u32 2147483648, %v1849_v26  ;;  %v1859_v18 = vand.u32 2147483647, %v1849_v26  ;;  %vm1855_vm11 = vweird.f32 %v1849_v26 }
 0x4ff   :  { %v1843_v38 = vor.u32 1.1754944e-38, %v1842_v11  ;;  %vm1841_vm14 = vcmp.eq.f32.partialorder %v1840_v16, 8.507059e+37 }
 0x500   :  { %v1862_v60 = vor.u32 1.1754944e-38, %v1861_v10  ;;  %vm1860_vm15 = vcmp.eq.f32.partialorder %v1859_v18, 8.507059e+37 }
 0x501   :  { %v2290_v43 = vpop.eup %2289 }
 0x502   :  { %v1869_v39 = vadd.f32 1.0, %v2290_v43 }
 0x503   :  { %v2292_v24 = vpop.eup %2291 }
 0x504   :  { %v2294_v12 = vpop.eup %2293  ;;  %v1832_v28 = vmul.f32 %v2292_v24, %v1830_v63  ;;  %2295 = vrcp.f32 %v1869_v39  ;;  %vm1837_vm8 = vweird.f32 %v2292_v24  ;;  %v1881_v40 = vand.u32 2147483648, %v1869_v39 }
 0x505   :  { %v1851_v4 = vmul.f32 %v2294_v12, %v1849_v26  ;;  %2297 = vtanh.f32 %v1825_v3  ;;  %vm1856_vm9 = vweird.f32 %v2294_v12  ;;  %vm1838_vm12 = vmor %vm1836_vm10, %vm1837_vm8  ;;  %vm1875_vm1 = vweird.f32 %v1869_v39 }
 0x506   :  { %v1833_v42 = vsub.f32 1.0, %v1832_v28  ;;  %vm1857_vm13 = vmor %vm1855_vm11, %vm1856_vm9  ;;  %v1879_v33 = vand.u32 2147483647, %v1869_v39  ;;  %v1882_v41 = vor.u32 1.1754944e-38, %v1881_v40 }
 0x507   :  { %v1852_v29 = vsub.f32 1.0, %v1851_v4 }
 0x508   :  { %v1834_v15 = vmul.f32 %v2292_v24, %v1833_v42  ;;  %vm1880_vm3 = vcmp.eq.f32.partialorder %v1879_v33, 8.507059e+37 }
 0x509   :  { %v1853_v19 = vmul.f32 %v2294_v12, %v1852_v29 }
 0x50a   :  { %v2296_v20 = vpop.eup %2295  ;;  %v1835_v53 = vadd.f32 %v2292_v24, %v1834_v15 }
 0x50b   :  { %v1854_v56 = vadd.f32 %v2294_v12, %v1853_v19  ;;  %v1871_v57 = vmul.f32 %v2296_v20, %v1869_v39  ;;  %v2298_v61 = vpop.eup %2297  ;;  %vm1876_vm0 = vweird.f32 %v2296_v20 }
 0x50c   :  { %v1839_v35 = vsel %vm1838_vm12, %v2292_v24, %v1835_v53  ;;  %vm1877_vm2 = vmor %vm1875_vm1, %vm1876_vm0 }
 0x50d   :  { %v1844_v31 = vsel %vm1841_vm14, %v1843_v38, %v1839_v35  ;;  %v1858_v30 = vsel %vm1857_vm13, %v2294_v12, %v1854_v56  ;;  %v1872_v48 = vsub.f32 1.0, %v1871_v57 }
 0x50e   :  { %v1863_v8 = vsel %vm1860_vm15, %v1862_v60, %v1858_v30  ;;  %v1886_v9 = vmul.f32 %v2298_v61, %v1844_v31 }
 0x50f   :  { %v1885_v1 = vmul.f32 %v1863_v8, %v3563_v17  ;;  %v1873_v2 = vmul.f32 %v2296_v20, %v1872_v48 }
 0x511   :  { %v3603_v5 = vadd.f32 %v1886_v9, %v1885_v1  ;;  %v1874_v14 = vadd.f32 %v2296_v20, %v1873_v2 }
 0x513   :  { %2299 = vtanh.f32 %v3603_v5  ;;  %v1878_v36 = vsel %vm1877_vm2, %v2296_v20, %v1874_v14 }
 0x514   :  { %v1883_v49 = vsel %vm1880_vm3, %v1882_v41, %v1878_v36 }
 0x519   :  { %v2300_v45 = vpop.eup %2299 }
 0x51a   :  { %v1889_v55 = vmul.f32 %v2300_v45, %v1883_v49 }
 0x51c   :  { %1891 = vst [vmem:[#allocation13 + $0x30] sm:$0xff] %v1889_v55  ;;  %1977 = vmatmul.f32.vlgmr.msra.gmra.mxu0 %v1889_v55  ;;  %1997 = vmatmul.f32.vlgmr.msra.gmra.mxu1 %v1889_v55 }
 0x51d   :  { %2017 = vmatmul.f32.vlgmr.msra.gmra.mxu2 %v1889_v55  ;;  %2037 = vmatmul.f32.vlgmr.msra.gmra.mxu3 %v1889_v55 }
 0x599   :  { %v1978_v17 = vpop.f32.mrf.mxu0  ;;  %v1998_v58 = vpop.f32.mrf.mxu1 }
 0x59a   :  { %v2041_v52 = vadd.f32 %v1978_v17, %v3755_v59  ;;  %v2042_v51 = vadd.f32 %v1998_v58, %v3756_v13 }
 0x59c   :  { %v2175_v21 = vmul.f32 -1.442695, %v2041_v52  ;;  %v2176_v32 = vmul.f32 -1.442695, %v2042_v51 }
 0x59e   :  { %2301 = vpow2.f32 %v2175_v21 }
 0x59f   :  { %2303 = vpow2.f32 %v2176_v32 }
 0x5a0   :  { %v2038_v37 = vpop.f32.mrf.mxu3  ;;  %v2018_v22 = vpop.f32.mrf.mxu2 }
 0x5a1   :  { %v2044_v7 = vadd.f32 %v2038_v37, %v3757_v46  ;;  %v2043_v63 = vadd.f32 %v2018_v22, %v3758_v62 }
 0x5a3   :  { %v2177_v47 = vmul.f32 -1.442695, %v2044_v7 }
 0x5a4   :  { %v2302_v25 = vpop.eup %2301 }
 0x5a5   :  { %v2304_v50 = vpop.eup %2303  ;;  %v2048_v54 = vadd.f32 1.0, %v2302_v25  ;;  %2305 = vpow2.f32 %v2177_v47 }
 0x5a6   :  { %v2067_v6 = vadd.f32 1.0, %v2304_v50 }
 0x5a7   :  { %2307 = vrcp.f32 %v2048_v54  ;;  %v2060_v34 = vand.u32 2147483648, %v2048_v54  ;;  %v2058_v28 = vand.u32 2147483647, %v2048_v54  ;;  %vm2054_vm6 = vweird.f32 %v2048_v54 }
 0x5a8   :  { %2309 = vrcp.f32 %v2067_v6  ;;  %v2079_v3 = vand.u32 2147483648, %v2067_v6  ;;  %v2077_v42 = vand.u32 2147483647, %v2067_v6  ;;  %vm2073_vm7 = vweird.f32 %v2067_v6 }
 0x5a9   :  { %v2061_v10 = vor.u32 1.1754944e-38, %v2060_v34  ;;  %vm2059_vm10 = vcmp.eq.f32.partialorder %v2058_v28, 8.507059e+37 }
 0x5aa   :  { %v2080_v19 = vor.u32 1.1754944e-38, %v2079_v3  ;;  %vm2078_vm11 = vcmp.eq.f32.partialorder %v2077_v42, 8.507059e+37 }
 0x5ab   :  { %v2306_v27 = vpop.eup %2305 }
 0x5ac   :  { %v2087_v44 = vadd.f32 1.0, %v2306_v27 }
 0x5ad   :  { %v2308_v0 = vpop.eup %2307 }
 0x5ae   :  { %v2310_v26 = vpop.eup %2309  ;;  %v2050_v23 = vmul.f32 %v2308_v0, %v2048_v54  ;;  %2311 = vrcp.f32 %v2087_v44  ;;  %vm2055_vm4 = vweird.f32 %v2308_v0  ;;  %v2099_v48 = vand.u32 2147483648, %v2087_v44 }
 0x5af   :  { %v2069_v43 = vmul.f32 %v2310_v26, %v2067_v6  ;;  %2313 = vtanh.f32 %v2043_v63  ;;  %vm2074_vm5 = vweird.f32 %v2310_v26  ;;  %vm2056_vm8 = vmor %vm2054_vm6, %vm2055_vm4  ;;  %vm2093_vm13 = vweird.f32 %v2087_v44 }
 0x5b0   :  { %v2051_v39 = vsub.f32 1.0, %v2050_v23  ;;  %vm2075_vm9 = vmor %vm2073_vm7, %vm2074_vm5  ;;  %v2097_v8 = vand.u32 2147483647, %v2087_v44  ;;  %v2100_v1 = vor.u32 1.1754944e-38, %v2099_v48 }
 0x5b1   :  { %v2070_v24 = vsub.f32 1.0, %v2069_v43 }
 0x5b2   :  { %v2052_v12 = vmul.f32 %v2308_v0, %v2051_v39  ;;  %vm2098_vm15 = vcmp.eq.f32.partialorder %v2097_v8, 8.507059e+37 }
 0x5b3   :  { %v2071_v4 = vmul.f32 %v2310_v26, %v2070_v24 }
 0x5b4   :  { %v2312_v29 = vpop.eup %2311  ;;  %v2053_v11 = vadd.f32 %v2308_v0, %v2052_v12 }
 0x5b5   :  { %v2072_v15 = vadd.f32 %v2310_v26, %v2071_v4  ;;  %v2089_v16 = vmul.f32 %v2312_v29, %v2087_v44  ;;  %v2314_v20 = vpop.eup %2313  ;;  %vm2094_vm12 = vweird.f32 %v2312_v29 }
 0x5b6   :  { %v2057_v18 = vsel %vm2056_vm8, %v2308_v0, %v2053_v11  ;;  %vm2095_vm14 = vmor %vm2093_vm13, %vm2094_vm12 }
 0x5b7   :  { %v2062_v53 = vsel %vm2059_vm10, %v2061_v10, %v2057_v18  ;;  %v2076_v38 = vsel %vm2075_vm9, %v2310_v26, %v2072_v15  ;;  %v2090_v56 = vsub.f32 1.0, %v2089_v16 }
 0x5b8   :  { %v2081_v57 = vsel %vm2078_vm11, %v2080_v19, %v2076_v38  ;;  %v2104_v60 = vmul.f32 %v2314_v20, %v2062_v53 }
 0x5b9   :  { %v2103_v35 = vmul.f32 %v2081_v57, %v3603_v5  ;;  %v2091_v61 = vmul.f32 %v2312_v29, %v2090_v56 }
 0x5bb   :  { %v2105_v31 = vadd.f32 %v2104_v60, %v2103_v35  ;;  %v2092_v30 = vadd.f32 %v2312_v29, %v2091_v61 }
 0x5bd   :  { %2315 = vtanh.f32 %v2105_v31  ;;  %2116 = vst [vmem:[#allocation14] sm:$0xff] %v2105_v31  ;;  %v2096_v9 = vsel %vm2095_vm14, %v2312_v29, %v2092_v30 }
 0x5be   :  { %2140 = dma.vmem_to_hbm [thread:$0]  %s2136_s3, 128, %s2138_s17, [#allocation15]   ;;  %v2101_v5 = vsel %vm2098_vm15, %v2100_v1, %v2096_v9 }
 0x5c3   :  { %v2316_v2 = vpop.eup %2315 }
 0x5c4   :  { %v2107_v14 = vmul.f32 %v2316_v2, %v2101_v5 }
 0x5c6   :  { %2109 = vst [vmem:[#allocation13 + $0x38] sm:$0xff] %v2107_v14 }
 0x5c7   :  { %2129 = dma.vmem_to_hbm [thread:$0]  %s2122_s19, 1024, %s2124_s21, [#allocation7], %s2475_s30, %s2475_s30, %s2476_s6  }
 0x5c8   :  { %2467 = dma.done.wait [#allocation7], 1024  }
 0x5c9   :  { %2468 = vsyncadd [#allocation7], 4294966272 }
 0x5ca   :  { %2469 = dma.done.wait [#allocation15], 128  }
 0x5cb   :  { %2470 = vsyncadd [#allocation15], 4294967168 }
 0x5cc   :  { %2149 = vsyncpa [#allocation6], 1 }
 0x5cd   :  { %2150 = vsyncpa [#allocation9], 1 }
 0x5ce   :  { %2151 = vsyncpa [#allocation12], 1 }
 0x5cf   :  { %2152 = vsyncpa [#allocation7], 1 }
 0x5d0   :  { %2153 = vsyncpa [#allocation15], 1 }

</bundles_post_ra>
